<compile_context>
chip_gen: v5e
topology: v5e:2x2
jax: 0.10.0
libtpu: 0.0.40
codegen_flags: <defaults>
</compile_context>

<pallas_src>
import functools
import math

import jax
import jax.numpy as jnp
from jax import lax
from jax.experimental import pallas as pl
from jax.experimental.pallas import tpu as pltpu


# ----------------------------------------------------------------------------
# In-kernel helpers
# ----------------------------------------------------------------------------
def _layernorm(x, g, b, eps=1e-5):
    mu = jnp.mean(x, axis=-1, keepdims=True)
    xc = x - mu
    var = jnp.mean(xc * xc, axis=-1, keepdims=True)
    return xc * lax.rsqrt(var + eps) * g + b


def _leaky_relu(x, slope=0.01):
    return jnp.where(x > 0, x, slope * x)


def _seq_len_after_cnn(L, K, n_conv):
    L1 = L - K + 1            # conv1, pad 0
    cur = L1                  # conv2, pad 1 -> same length
    for _ in range(n_conv):
        Lc = cur - K + 1      # conv3 conv, pad 0
        cur = (Lc - 2) // 2 + 1  # maxpool k=2 s=2
    return cur


# ----------------------------------------------------------------------------
# Fully fused forward kernel: `Bblk` batch rows per grid step.
# ----------------------------------------------------------------------------
def fused_forward_kernel(
    x_ref,            # (Bblk, L, 1)        input rows, channels-last
    cls_ref,          # (1, D)              cls token (f32)
    w1_ref,           # (K, 1, D)           conv1 weight (C_in = 1), f32
    cb_ref,           # (2 + n_conv, D)     packed conv biases, f32
    w2_ref,           # (KDpad, D)          conv2 weight, im2col layout, bf16
    w3_ref,           # (n_conv, KDpad, D)  conv3 weights, im2col layout, bf16
    pe_ref,           # (S1, D)             sinusoidal positional embeddings, f32
    wqkv_ref,         # (n_layers, D, 3D)   bf16
    wo_ref,           # (n_layers, D, D)    bf16
    wf1_ref,          # (n_layers, D, d_hid) bf16
    wf2_ref,          # (n_layers, d_hid, D) bf16
    tvec_ref,         # (n_layers, 8, Vmax) packed per-layer vectors, f32
    wh1_ref,          # (D, D)              head fc1, bf16
    wh2_ref,          # (D, nc)             head fc2, bf16
    hvec_ref,         # (6, D)              packed head vectors, f32
    hte_ref,          # (Bblk, S1, D)       output: encoder states
    logits_ref,       # (Bblk, 1, nc)       output: logits
    *, K, L, D, d_hid, n_head, n_layers, n_conv, num_classes, Bblk, KDpad):

    f32 = jnp.float32
    bf16 = jnp.bfloat16
    L1 = L - K + 1
    S1 = _seq_len_after_cnn(L, K, n_conv) + 1
    pad_lanes = KDpad - K * D

    def im2col_slab(src, n_out):
        # Shifted taps built purely from vreg-resident values; lane-pad to KDpad
        # so the conv matmul is one aligned 128-deep bf16 MXU pass.
        taps = [src[k:k + n_out, :] for k in range(K)]
        if pad_lanes:
            taps.append(jnp.zeros((n_out, pad_lanes), f32))
        return jnp.concatenate(taps, axis=-1).astype(bf16)       # (n_out, KDpad)

    def conv_stack(x):                                           # x: (L, 1) f32
        # ---- conv1: C_in = 1, k=3, pad=0 — broadcast taps on the VPU --------
        acc = jnp.zeros((L1, D), f32)
        for k in range(K):
            acc = acc + x[k:k + L1, :] * w1_ref[k]
        h = _leaky_relu(acc + cb_ref[0:1, :])                    # (L1, D)

        # ---- conv2: k=3, pad=1 (same length) — zero rows stay in vregs ------
        zrow = jnp.zeros((1, D), f32)
        hp = jnp.concatenate([zrow, h, zrow], axis=0)            # (L1+2, D)
        h = jnp.dot(im2col_slab(hp, L1), w2_ref[...], preferred_element_type=f32)
        h = _leaky_relu(h + cb_ref[1:2, :])                      # (L1, D)

        # ---- conv3 blocks: k=3, pad=0, then MaxPool1d(k=2, s=2) -------------
        cur = L1
        for blk in range(n_conv):
            Lc = cur - K + 1
            y = jnp.dot(im2col_slab(h, Lc), w3_ref[blk], preferred_element_type=f32)
            y = _leaky_relu(y + cb_ref[2 + blk:3 + blk, :])      # (Lc, D)
            # MaxPool: pairwise max (VPU), then decimate even rows with an
            # iota-built 0/1 selection matmul (MXU slot has slack) — no scratch,
            # no strided loads, no risky reshapes.
            P = (Lc - 2) // 2 + 1
            m = jnp.maximum(y[:Lc - 1, :], y[1:Lc, :])           # m[i]=max(y[i],y[i+1])
            ri = lax.broadcasted_iota(jnp.int32, (P, Lc - 1), 0)
            ci = lax.broadcasted_iota(jnp.int32, (P, Lc - 1), 1)
            sel = jnp.where(ci == 2 * ri, jnp.float32(1.0), jnp.float32(0.0))
            h = jnp.dot(sel, m, preferred_element_type=f32)      # (P, D)
            cur = P
        return h                                                 # (S1 - 1, D)

    # ---- conv stack per batch row; stack rows (sublane/M axis) for the TE ----
    embs = []
    for b in range(Bblk):
        h = conv_stack(x_ref[b].astype(f32))
        e = jnp.concatenate([cls_ref[...], h], axis=0) + pe_ref[...]   # (S1, D)
        embs.append(e)
    emb = embs[0] if Bblk == 1 else jnp.concatenate(embs, axis=0)      # (Bblk*S1, D)

    # ---- transformer encoder stack (post-LN, ReLU FFN) -----------------------
    dh = D // n_head
    scale = 1.0 / math.sqrt(dh)
    # TODO(synk): if n_layers is ever scaled up, switch this static unroll to
    # lax.fori_loop (weights are already stacked / dynamically indexable).
    for li in range(n_layers):
        tv = tvec_ref[li]                                        # (8, Vmax) f32
        bqkv = tv[0:1, 0:3 * D]
        bo = tv[1:2, 0:D]
        g1, be1 = tv[2:3, 0:D], tv[3:4, 0:D]
        bf1 = tv[4:5, 0:d_hid]
        bf2 = tv[5:6, 0:D]
        g2, be2 = tv[6:7, 0:D], tv[7:8, 0:D]

        wqkv_l = wqkv_ref[li]
        wo_l = wo_ref[li]
        wf1_l = wf1_ref[li]
        wf2_l = wf2_ref[li]

        # Fused QKV on the stacked (Bblk*S1, D) operand, bf16 MXU, f32 accum.
        qkv = jnp.dot(emb.astype(bf16), wqkv_l, preferred_element_type=f32) + bqkv

        attn_rows = []
        for b in range(Bblk):
            r0 = b * S1
            attn_b = jnp.zeros((S1, D), f32)
            for hh in range(n_head):
                c0 = hh * dh
                qh = qkv[r0:r0 + S1, c0:c0 + dh].astype(bf16)
                kh = qkv[r0:r0 + S1, D + c0:D + c0 + dh].astype(bf16)
                vh = qkv[r0:r0 + S1, 2 * D + c0:2 * D + c0 + dh].astype(bf16)
                # contract the head dim of both operands directly (no transpose)
                s = lax.dot_general(qh, kh, (((1,), (1,)), ((), ())),
                                    preferred_element_type=f32) * scale  # (S1,S1)
                s = s - jnp.max(s, axis=-1, keepdims=True)
                p = jnp.exp(s)
                p = p * pl.reciprocal(jnp.sum(p, axis=-1, keepdims=True), approx=True)
                ho = jnp.dot(p.astype(bf16), vh, preferred_element_type=f32)
                # accumulate the out-projection per head — no lane concat of heads
                attn_b = attn_b + jnp.dot(ho.astype(bf16), wo_l[c0:c0 + dh, :],
                                          preferred_element_type=f32)
            attn_rows.append(attn_b)
        attn = (attn_rows[0] if Bblk == 1
                else jnp.concatenate(attn_rows, axis=0)) + bo            # (Bblk*S1, D)

        h1 = _layernorm(emb + attn, g1, be1)                             # residual+LN1
        f = jnp.dot(h1.astype(bf16), wf1_l, preferred_element_type=f32) + bf1
        f = jnp.maximum(f, 0.0)
        f = jnp.dot(f.astype(bf16), wf2_l, preferred_element_type=f32) + bf2
        emb = _layernorm(h1 + f, g2, be2)                                # residual+LN2

    for b in range(Bblk):
        hte_ref[b] = emb[b * S1:(b + 1) * S1, :].astype(hte_ref.dtype)

    # ---- classification head on the cls rows (stacked over the batch) --------
    hv = hvec_ref[...]                                                   # (6, D) f32
    cls_rows = [emb[b * S1:b * S1 + 1, :] for b in range(Bblk)]
    cls = cls_rows[0] if Bblk == 1 else jnp.concatenate(cls_rows, axis=0)  # (Bblk, D)
    cls = _layernorm(cls, hv[0:1, :], hv[1:2, :])
    cls = jnp.dot(cls.astype(bf16), wh1_ref[...], preferred_element_type=f32) + hv[2:3, :]
    cls = _layernorm(cls, hv[3:4, :], hv[4:5, :])
    out = (jnp.dot(cls.astype(bf16), wh2_ref[...], preferred_element_type=f32)
           + hv[5:6, 0:num_classes])
    for b in range(Bblk):
        logits_ref[b] = out[b:b + 1, :].astype(logits_ref.dtype)


# ----------------------------------------------------------------------------
# Host-side glue
# ----------------------------------------------------------------------------
def sinusoidal_pe(seq_len, d_model):
    pos = jnp.arange(seq_len, dtype=jnp.float32)[:, None]
    div = jnp.power(10000.0, -jnp.arange(0, d_model, 2, dtype=jnp.float32) / d_model)
    pe = jnp.zeros((seq_len, d_model), jnp.float32)
    pe = pe.at[:, 0::2].set(jnp.sin(pos * div))
    pe = pe.at[:, 1::2].set(jnp.cos(pos * div))
    return pe


def _rows_per_grid_step(batch):
    """Batch rows handled per grid step.

    v7x has 2 TensorCores per chip: keep one row per grid step so the
    "parallel" grid axis shards the batch across cores.  v5e/v6e are
    single-TC, so a batch grid is just a serial loop — fold everything into
    one step and let the row-parallel matmuls run on a stacked operand.
    """
    try:
        kind = jax.devices()[0].device_kind.lower()
    except Exception:  # pragma: no cover - defensive
        kind = ""
    if "v7" in kind or "7x" in kind:
        return 1
    return batch


def one_d_cnn_transformer_forward(x, params, cnn_cfg, tf_cfg, rows_per_step=None):
    """x: (B, L) float32 (PyTorch forward does unsqueeze(1) -> one input channel)."""
    B, L = x.shape
    K = 3
    D = tf_cfg["embedding_dim"]
    n_conv = cnn_cfg["n_conv"]
    n_head = tf_cfg["n_head"]
    n_layers = tf_cfg["n_layers"]
    d_hid = tf_cfg["d_hid"]
    nc = tf_cfg["num_classes"]
    Vmax = max(3 * D, d_hid, D)
    KDpad = -(-(K * D) // 128) * 128          # im2col contraction padded to 128

    if rows_per_step is None:
        rows_per_step = _rows_per_grid_step(B)
    Bblk = rows_per_step if (rows_per_step and B % rows_per_step == 0) else 1

    S1 = _seq_len_after_cnn(L, K, n_conv) + 1
    pe = sinusoidal_pe(S1, D)
    x3 = x.reshape(B, L, 1)                   # channels-last single channel

    kernel = functools.partial(
        fused_forward_kernel, K=K, L=L, D=D, d_hid=d_hid, n_head=n_head,
        n_layers=n_layers, n_conv=n_conv, num_classes=nc, Bblk=Bblk, KDpad=KDpad)

    def full(shape):
        return pl.BlockSpec(shape, lambda g: (0,) * len(shape))

    hte, logits = pl.pallas_call(
        kernel,
        out_shape=(jax.ShapeDtypeStruct((B, S1, D), x.dtype),
                   jax.ShapeDtypeStruct((B, 1, nc), x.dtype)),
        grid=(B // Bblk,),
        in_specs=[
            pl.BlockSpec((Bblk, L, 1), lambda g: (g, 0, 0)),   # x rows
            full((1, D)),                                      # cls token
            full((K, 1, D)),                                   # conv1 weight
            full((2 + n_conv, D)),                             # packed conv biases
            full((KDpad, D)),                                  # conv2 weight (im2col)
            full((n_conv, KDpad, D)),                          # conv3 weights (im2col)
            full((S1, D)),                                     # positional embeddings
            full((n_layers, D, 3 * D)),                        # wqkv
            full((n_layers, D, D)),                            # wo
            full((n_layers, D, d_hid)),                        # ffn w1
            full((n_layers, d_hid, D)),                        # ffn w2
            full((n_layers, 8, Vmax)),                         # packed per-layer vectors
            full((D, D)),                                      # head fc1 weight
            full((D, nc)),                                     # head fc2 weight
            full((6, D)),                                      # packed head vectors
        ],
        out_specs=(pl.BlockSpec((Bblk, S1, D), lambda g: (g, 0, 0)),
                   pl.BlockSpec((Bblk, 1, nc), lambda g: (g, 0, 0))),
        compiler_params=pltpu.CompilerParams(
            dimension_semantics=("parallel",)),
    )(x3, params["cls_token"], params["conv1_w"], params["conv_b"],
      params["conv2_w"], params["conv3_w"], pe,
      params["wqkv"], params["wo"], params["wf1"], params["wf2"], params["tvec"],
      params["head_w1"], params["head_w2"], params["head_vec"])

    return logits[:, 0, :], hte


def init_params(key, cnn_cfg, tf_cfg):
    D = cnn_cfg["d_model"]
    Ci = cnn_cfg["in_channels"]
    K = 3
    n_conv = cnn_cfg["n_conv"]
    d_hid = tf_cfg["d_hid"]
    n_layers = tf_cfg["n_layers"]
    nc = tf_cfg["num_classes"]
    Vmax = max(3 * D, d_hid, D)
    KDpad = -(-(K * D) // 128) * 128
    bf16 = jnp.bfloat16

    keys = iter(jax.random.split(key, 128))

    def w(shape, scale=0.1):
        return scale * jax.random.normal(next(keys), shape, jnp.float32)

    def pad_lane(v, width):
        return jnp.pad(v, ((0, 0), (0, width - v.shape[1])))

    def pad_sublane(m, rows):
        return jnp.pad(m, ((0, rows - m.shape[0]), (0, 0)))

    conv_b = jnp.concatenate([w((1, D)) for _ in range(2 + n_conv)], axis=0)

    wqkv = jnp.stack([w((D, 3 * D)) for _ in range(n_layers)]).astype(bf16)
    wo = jnp.stack([w((D, D)) for _ in range(n_layers)]).astype(bf16)
    wf1 = jnp.stack([w((D, d_hid)) for _ in range(n_layers)]).astype(bf16)
    wf2 = jnp.stack([w((d_hid, D)) for _ in range(n_layers)]).astype(bf16)

    tvecs = []
    for _ in range(n_layers):
        rows = [
            pad_lane(w((1, 3 * D)), Vmax),                    # qkv bias
            pad_lane(w((1, D)), Vmax),                        # out-proj bias
            pad_lane(jnp.ones((1, D), jnp.float32), Vmax),    # ln1 gamma
            pad_lane(jnp.zeros((1, D), jnp.float32), Vmax),   # ln1 beta
            pad_lane(w((1, d_hid)), Vmax),                    # ffn b1
            pad_lane(w((1, D)), Vmax),                        # ffn b2
            pad_lane(jnp.ones((1, D), jnp.float32), Vmax),    # ln2 gamma
            pad_lane(jnp.zeros((1, D), jnp.float32), Vmax),   # ln2 beta
        ]
        tvecs.append(jnp.concatenate(rows, axis=0))
    tvec = jnp.stack(tvecs)                                   # (n_layers, 8, Vmax)

    head_vec = jnp.concatenate([
        jnp.ones((1, D), jnp.float32),                        # head ln1 gamma
        jnp.zeros((1, D), jnp.float32),                       # head ln1 beta
        w((1, D)),                                            # fc1 bias
        jnp.ones((1, D), jnp.float32),                        # head ln2 gamma
        jnp.zeros((1, D), jnp.float32),                       # head ln2 beta
        pad_lane(w((1, nc)), D),                              # fc2 bias (padded to D)
    ], axis=0)                                                # (6, D)

    # NOTE: weights are stored in x @ W ("in, out") layout and bf16; loading real
    # PyTorch checkpoints requires transposing nn.Linear / permuting Conv1d weights
    # (plus im2col (K*C_in, C_out) repacking and zero-padding to KDpad rows).
    return dict(
        cls_token=jnp.zeros((1, D), jnp.float32),   # PyTorch builds a fresh zero Parameter
        conv1_w=w((K, Ci, D)),                                # (K, 1, D), f32 (VPU path)
        conv2_w=pad_sublane(w((K * D, D)), KDpad).astype(bf16),
        conv3_w=jnp.stack([pad_sublane(w((K * D, D)), KDpad)
                           for _ in range(n_conv)]).astype(bf16),
        conv_b=conv_b,
        wqkv=wqkv, wo=wo, wf1=wf1, wf2=wf2, tvec=tvec,
        head_w1=w((D, D)).astype(bf16), head_w2=w((D, nc)).astype(bf16),
        head_vec=head_vec,
    )


if __name__ == "__main__":
    cnn_config = dict(n_conv=1, n_filters=32, d_model=32, d_proj=32, in_channels=1)
    transformer_config = dict(n_head=2, n_layers=2, d_hid=64, dropout=0.0,
                              embedding_dim=32, num_classes=4)
    B, L = 2, 64

    params = init_params(jax.random.PRNGKey(0), cnn_config, transformer_config)
    x = jax.random.normal(jax.random.PRNGKey(0), (B, L), jnp.float32)

    fwd = jax.jit(functools.partial(one_d_cnn_transformer_forward,
                                    cnn_cfg=cnn_config, tf_cfg=transformer_config))
    logits, h_te = fwd(x, params)
    jax.block_until_ready((logits, h_te))

    expected_S1 = _seq_len_after_cnn(L, 3, cnn_config["n_conv"]) + 1
    assert logits.shape == (B, transformer_config["num_classes"])
    assert h_te.shape == (B, expected_S1, transformer_config["embedding_dim"])
    print("KERNEL_OK")
</pallas_src>

<mosaic_0001>
module attributes {stable_mosaic.version = 11 : i64} {
  func.func @fused_forward_kernel(%arg0: i32, %arg1: memref<2x64x1xf32, #tpu.memory_space<vmem>>, %arg2: memref<1x32xf32, #tpu.memory_space<vmem>>, %arg3: memref<3x1x32xf32, #tpu.memory_space<vmem>>, %arg4: memref<3x32xf32, #tpu.memory_space<vmem>>, %arg5: memref<128x32xbf16, #tpu.memory_space<vmem>>, %arg6: memref<1x128x32xbf16, #tpu.memory_space<vmem>>, %arg7: memref<31x32xf32, #tpu.memory_space<vmem>>, %arg8: memref<2x32x96xbf16, #tpu.memory_space<vmem>>, %arg9: memref<2x32x32xbf16, #tpu.memory_space<vmem>>, %arg10: memref<2x32x64xbf16, #tpu.memory_space<vmem>>, %arg11: memref<2x64x32xbf16, #tpu.memory_space<vmem>>, %arg12: memref<2x8x96xf32, #tpu.memory_space<vmem>>, %arg13: memref<32x32xbf16, #tpu.memory_space<vmem>>, %arg14: memref<32x4xbf16, #tpu.memory_space<vmem>>, %arg15: memref<6x32xf32, #tpu.memory_space<vmem>>, %arg16: memref<2x31x32xf32, #tpu.memory_space<vmem>>, %arg17: memref<2x1x4xf32, #tpu.memory_space<vmem>>) attributes {dimension_semantics = [#tpu.dimension_semantics<parallel>], iteration_bounds = array<i64: 1>, scalar_prefetch = 0 : i64, scratch_operands = 0 : i64, tpu.core_type = #tpu.core_type<tc>, window_params = [{transform_indices = @transform_0, window_bounds = array<i64: 2, 64, 1>}, {pipeline_mode = #tpu.pipeline_mode<synchronous>, transform_indices = @transform_1, window_bounds = array<i64: 1, 32>}, {pipeline_mode = #tpu.pipeline_mode<synchronous>, transform_indices = @transform_2, window_bounds = array<i64: 3, 1, 32>}, {pipeline_mode = #tpu.pipeline_mode<synchronous>, transform_indices = @transform_3, window_bounds = array<i64: 3, 32>}, {pipeline_mode = #tpu.pipeline_mode<synchronous>, transform_indices = @transform_4, window_bounds = array<i64: 128, 32>}, {pipeline_mode = #tpu.pipeline_mode<synchronous>, transform_indices = @transform_5, window_bounds = array<i64: 1, 128, 32>}, {pipeline_mode = #tpu.pipeline_mode<synchronous>, transform_indices = @transform_6, window_bounds = array<i64: 31, 32>}, {pipeline_mode = #tpu.pipeline_mode<synchronous>, transform_indices = @transform_7, window_bounds = array<i64: 2, 32, 96>}, {pipeline_mode = #tpu.pipeline_mode<synchronous>, transform_indices = @transform_8, window_bounds = array<i64: 2, 32, 32>}, {pipeline_mode = #tpu.pipeline_mode<synchronous>, transform_indices = @transform_9, window_bounds = array<i64: 2, 32, 64>}, {pipeline_mode = #tpu.pipeline_mode<synchronous>, transform_indices = @transform_10, window_bounds = array<i64: 2, 64, 32>}, {pipeline_mode = #tpu.pipeline_mode<synchronous>, transform_indices = @transform_11, window_bounds = array<i64: 2, 8, 96>}, {pipeline_mode = #tpu.pipeline_mode<synchronous>, transform_indices = @transform_12, window_bounds = array<i64: 32, 32>}, {pipeline_mode = #tpu.pipeline_mode<synchronous>, transform_indices = @transform_13, window_bounds = array<i64: 32, 4>}, {pipeline_mode = #tpu.pipeline_mode<synchronous>, transform_indices = @transform_14, window_bounds = array<i64: 6, 32>}, {transform_indices = @transform_15, window_bounds = array<i64: 2, 31, 32>}, {transform_indices = @transform_16, window_bounds = array<i64: 2, 1, 4>}]} {
    %c0 = arith.constant 0 : index
    %c0_0 = arith.constant 0 : index
    %c0_1 = arith.constant 0 : index
    %0 = vector.load %arg1[%c0, %c0_0, %c0_1] : memref<2x64x1xf32, #tpu.memory_space<vmem>>, vector<1x64x1xf32>
    %1 = vector.shape_cast %0 : vector<1x64x1xf32> to vector<64x1xf32>
    %cst = arith.constant 0.000000e+00 : f32
    %2 = vector.broadcast %cst : f32 to vector<62x32xf32>
    %3 = vector.extract_strided_slice %1 {offsets = [0, 0], sizes = [62, 1], strides = [1, 1]} : vector<64x1xf32> to vector<62x1xf32>
    %c0_2 = arith.constant 0 : index
    %c0_3 = arith.constant 0 : index
    %c0_4 = arith.constant 0 : index
    %4 = vector.load %arg3[%c0_2, %c0_3, %c0_4] : memref<3x1x32xf32, #tpu.memory_space<vmem>>, vector<1x1x32xf32>
    %5 = vector.shape_cast %4 : vector<1x1x32xf32> to vector<1x32xf32>
    %6 = vector.broadcast %3 : vector<62x1xf32> to vector<62x32xf32>
    %7 = vector.broadcast %5 : vector<1x32xf32> to vector<62x32xf32>
    %8 = arith.mulf %6, %7 : vector<62x32xf32>
    %9 = arith.addf %2, %8 : vector<62x32xf32>
    %10 = vector.extract_strided_slice %1 {offsets = [1, 0], sizes = [62, 1], strides = [1, 1]} : vector<64x1xf32> to vector<62x1xf32>
    %c1 = arith.constant 1 : index
    %c0_5 = arith.constant 0 : index
    %c0_6 = arith.constant 0 : index
    %11 = vector.load %arg3[%c1, %c0_5, %c0_6] : memref<3x1x32xf32, #tpu.memory_space<vmem>>, vector<1x1x32xf32>
    %12 = vector.shape_cast %11 : vector<1x1x32xf32> to vector<1x32xf32>
    %13 = vector.broadcast %10 : vector<62x1xf32> to vector<62x32xf32>
    %14 = vector.broadcast %12 : vector<1x32xf32> to vector<62x32xf32>
    %15 = arith.mulf %13, %14 : vector<62x32xf32>
    %16 = arith.addf %9, %15 : vector<62x32xf32>
    %17 = vector.extract_strided_slice %1 {offsets = [2, 0], sizes = [62, 1], strides = [1, 1]} : vector<64x1xf32> to vector<62x1xf32>
    %c2 = arith.constant 2 : index
    %c0_7 = arith.constant 0 : index
    %c0_8 = arith.constant 0 : index
    %18 = vector.load %arg3[%c2, %c0_7, %c0_8] : memref<3x1x32xf32, #tpu.memory_space<vmem>>, vector<1x1x32xf32>
    %19 = vector.shape_cast %18 : vector<1x1x32xf32> to vector<1x32xf32>
    %20 = vector.broadcast %17 : vector<62x1xf32> to vector<62x32xf32>
    %21 = vector.broadcast %19 : vector<1x32xf32> to vector<62x32xf32>
    %22 = arith.mulf %20, %21 : vector<62x32xf32>
    %23 = arith.addf %16, %22 : vector<62x32xf32>
    %c0_9 = arith.constant 0 : index
    %c0_10 = arith.constant 0 : index
    %24 = vector.load %arg4[%c0_9, %c0_10] : memref<3x32xf32, #tpu.memory_space<vmem>>, vector<1x32xf32>
    %25 = vector.broadcast %24 : vector<1x32xf32> to vector<62x32xf32>
    %26 = arith.addf %23, %25 : vector<62x32xf32>
    %cst_11 = arith.constant 0.000000e+00 : f32
    %27 = vector.broadcast %cst_11 : f32 to vector<62x32xf32>
    %28 = arith.cmpf ogt, %26, %27 : vector<62x32xf32>
    %cst_12 = arith.constant 0.00999999977 : f32
    %29 = vector.broadcast %cst_12 : f32 to vector<62x32xf32>
    %30 = arith.mulf %29, %26 : vector<62x32xf32>
    %31 = arith.select %28, %26, %30 : vector<62x32xi1>, vector<62x32xf32>
    %cst_13 = arith.constant 0.000000e+00 : f32
    %32 = vector.broadcast %cst_13 : f32 to vector<1x32xf32>
    %33 = tpu.concatenate %32, %31, %32 in 0 : vector<1x32xf32>, vector<62x32xf32>, vector<1x32xf32> -> vector<64x32xf32>
    %34 = vector.extract_strided_slice %33 {offsets = [0, 0], sizes = [62, 32], strides = [1, 1]} : vector<64x32xf32> to vector<62x32xf32>
    %35 = vector.extract_strided_slice %33 {offsets = [1, 0], sizes = [62, 32], strides = [1, 1]} : vector<64x32xf32> to vector<62x32xf32>
    %36 = vector.extract_strided_slice %33 {offsets = [2, 0], sizes = [62, 32], strides = [1, 1]} : vector<64x32xf32> to vector<62x32xf32>
    %cst_14 = arith.constant 0.000000e+00 : f32
    %37 = vector.broadcast %cst_14 : f32 to vector<62x32xf32>
    %38 = tpu.concatenate %34, %35, %36, %37 in 1 : vector<62x32xf32>, vector<62x32xf32>, vector<62x32xf32>, vector<62x32xf32> -> vector<62x128xf32>
    %39 = arith.truncf %38 : vector<62x128xf32> to vector<62x128xbf16>
    %c0_15 = arith.constant 0 : index
    %c0_16 = arith.constant 0 : index
    %40 = vector.load %arg5[%c0_15, %c0_16] : memref<128x32xbf16, #tpu.memory_space<vmem>>, vector<128x32xbf16>
    %cst_17 = arith.constant dense<0.000000e+00> : vector<62x32xf32>
    %41 = tpu.matmul %39, %40, %cst_17 {dimension_numbers = #tpu.dot_dimension_numbers<[1], [0], [0], [1], [0, 0, 1, 1], [], []>} : vector<62x128xbf16>, vector<128x32xbf16>, vector<62x32xf32> -> vector<62x32xf32>
    %c1_18 = arith.constant 1 : index
    %c0_19 = arith.constant 0 : index
    %42 = vector.load %arg4[%c1_18, %c0_19] : memref<3x32xf32, #tpu.memory_space<vmem>>, vector<1x32xf32>
    %43 = vector.broadcast %42 : vector<1x32xf32> to vector<62x32xf32>
    %44 = arith.addf %41, %43 : vector<62x32xf32>
    %cst_20 = arith.constant 0.000000e+00 : f32
    %45 = vector.broadcast %cst_20 : f32 to vector<62x32xf32>
    %46 = arith.cmpf ogt, %44, %45 : vector<62x32xf32>
    %cst_21 = arith.constant 0.00999999977 : f32
    %47 = vector.broadcast %cst_21 : f32 to vector<62x32xf32>
    %48 = arith.mulf %47, %44 : vector<62x32xf32>
    %49 = arith.select %46, %44, %48 : vector<62x32xi1>, vector<62x32xf32>
    %50 = vector.extract_strided_slice %49 {offsets = [0, 0], sizes = [60, 32], strides = [1, 1]} : vector<62x32xf32> to vector<60x32xf32>
    %51 = vector.extract_strided_slice %49 {offsets = [1, 0], sizes = [60, 32], strides = [1, 1]} : vector<62x32xf32> to vector<60x32xf32>
    %52 = vector.extract_strided_slice %49 {offsets = [2, 0], sizes = [60, 32], strides = [1, 1]} : vector<62x32xf32> to vector<60x32xf32>
    %cst_22 = arith.constant 0.000000e+00 : f32
    %53 = vector.broadcast %cst_22 : f32 to vector<60x32xf32>
    %54 = tpu.concatenate %50, %51, %52, %53 in 1 : vector<60x32xf32>, vector<60x32xf32>, vector<60x32xf32>, vector<60x32xf32> -> vector<60x128xf32>
    %55 = arith.truncf %54 : vector<60x128xf32> to vector<60x128xbf16>
    %c0_23 = arith.constant 0 : index
    %c0_24 = arith.constant 0 : index
    %c0_25 = arith.constant 0 : index
    %56 = vector.load %arg6[%c0_23, %c0_24, %c0_25] : memref<1x128x32xbf16, #tpu.memory_space<vmem>>, vector<1x128x32xbf16>
    %57 = vector.shape_cast %56 : vector<1x128x32xbf16> to vector<128x32xbf16>
    %cst_26 = arith.constant dense<0.000000e+00> : vector<60x32xf32>
    %58 = tpu.matmul %55, %57, %cst_26 {dimension_numbers = #tpu.dot_dimension_numbers<[1], [0], [0], [1], [0, 0, 1, 1], [], []>} : vector<60x128xbf16>, vector<128x32xbf16>, vector<60x32xf32> -> vector<60x32xf32>
    %c2_27 = arith.constant 2 : index
    %c0_28 = arith.constant 0 : index
    %59 = vector.load %arg4[%c2_27, %c0_28] : memref<3x32xf32, #tpu.memory_space<vmem>>, vector<1x32xf32>
    %60 = vector.broadcast %59 : vector<1x32xf32> to vector<60x32xf32>
    %61 = arith.addf %58, %60 : vector<60x32xf32>
    %cst_29 = arith.constant 0.000000e+00 : f32
    %62 = vector.broadcast %cst_29 : f32 to vector<60x32xf32>
    %63 = arith.cmpf ogt, %61, %62 : vector<60x32xf32>
    %cst_30 = arith.constant 0.00999999977 : f32
    %64 = vector.broadcast %cst_30 : f32 to vector<60x32xf32>
    %65 = arith.mulf %64, %61 : vector<60x32xf32>
    %66 = arith.select %63, %61, %65 : vector<60x32xi1>, vector<60x32xf32>
    %67 = vector.extract_strided_slice %66 {offsets = [0, 0], sizes = [59, 32], strides = [1, 1]} : vector<60x32xf32> to vector<59x32xf32>
    %68 = vector.extract_strided_slice %66 {offsets = [1, 0], sizes = [59, 32], strides = [1, 1]} : vector<60x32xf32> to vector<59x32xf32>
    %69 = arith.maximumf %67, %68 : vector<59x32xf32>
    %70 = tpu.iota {dimensions = array<i32: 0>} : vector<30x59xi32>
    %71 = tpu.iota {dimensions = array<i32: 1>} : vector<30x59xi32>
    %c2_i32 = arith.constant 2 : i32
    %72 = vector.broadcast %c2_i32 : i32 to vector<30x59xi32>
    %73 = arith.muli %72, %70 : vector<30x59xi32>
    %74 = arith.cmpi eq, %71, %73 : vector<30x59xi32>
    %cst_31 = arith.constant 1.000000e+00 : f32
    %cst_32 = arith.constant 0.000000e+00 : f32
    %75 = vector.broadcast %cst_31 : f32 to vector<30x59xf32>
    %76 = vector.broadcast %cst_32 : f32 to vector<30x59xf32>
    %77 = arith.select %74, %75, %76 : vector<30x59xi1>, vector<30x59xf32>
    %cst_33 = arith.constant dense<0.000000e+00> : vector<30x32xf32>
    %78 = tpu.matmul %77, %69, %cst_33 {dimension_numbers = #tpu.dot_dimension_numbers<[1], [0], [0], [1], [0, 0, 1, 1], [], []>} : vector<30x59xf32>, vector<59x32xf32>, vector<30x32xf32> -> vector<30x32xf32>
    %c0_34 = arith.constant 0 : index
    %c0_35 = arith.constant 0 : index
    %79 = vector.load %arg2[%c0_34, %c0_35] : memref<1x32xf32, #tpu.memory_space<vmem>>, vector<1x32xf32>
    %80 = tpu.concatenate %79, %78 in 0 : vector<1x32xf32>, vector<30x32xf32> -> vector<31x32xf32>
    %c0_36 = arith.constant 0 : index
    %c0_37 = arith.constant 0 : index
    %81 = vector.load %arg7[%c0_36, %c0_37] : memref<31x32xf32, #tpu.memory_space<vmem>>, vector<31x32xf32>
    %82 = arith.addf %80, %81 : vector<31x32xf32>
    %c1_38 = arith.constant 1 : index
    %c0_39 = arith.constant 0 : index
    %c0_40 = arith.constant 0 : index
    %83 = vector.load %arg1[%c1_38, %c0_39, %c0_40] : memref<2x64x1xf32, #tpu.memory_space<vmem>>, vector<1x64x1xf32>
    %84 = vector.shape_cast %83 : vector<1x64x1xf32> to vector<64x1xf32>
    %cst_41 = arith.constant 0.000000e+00 : f32
    %85 = vector.broadcast %cst_41 : f32 to vector<62x32xf32>
    %86 = vector.extract_strided_slice %84 {offsets = [0, 0], sizes = [62, 1], strides = [1, 1]} : vector<64x1xf32> to vector<62x1xf32>
    %c0_42 = arith.constant 0 : index
    %c0_43 = arith.constant 0 : index
    %c0_44 = arith.constant 0 : index
    %87 = vector.load %arg3[%c0_42, %c0_43, %c0_44] : memref<3x1x32xf32, #tpu.memory_space<vmem>>, vector<1x1x32xf32>
    %88 = vector.shape_cast %87 : vector<1x1x32xf32> to vector<1x32xf32>
    %89 = vector.broadcast %86 : vector<62x1xf32> to vector<62x32xf32>
    %90 = vector.broadcast %88 : vector<1x32xf32> to vector<62x32xf32>
    %91 = arith.mulf %89, %90 : vector<62x32xf32>
    %92 = arith.addf %85, %91 : vector<62x32xf32>
    %93 = vector.extract_strided_slice %84 {offsets = [1, 0], sizes = [62, 1], strides = [1, 1]} : vector<64x1xf32> to vector<62x1xf32>
    %c1_45 = arith.constant 1 : index
    %c0_46 = arith.constant 0 : index
    %c0_47 = arith.constant 0 : index
    %94 = vector.load %arg3[%c1_45, %c0_46, %c0_47] : memref<3x1x32xf32, #tpu.memory_space<vmem>>, vector<1x1x32xf32>
    %95 = vector.shape_cast %94 : vector<1x1x32xf32> to vector<1x32xf32>
    %96 = vector.broadcast %93 : vector<62x1xf32> to vector<62x32xf32>
    %97 = vector.broadcast %95 : vector<1x32xf32> to vector<62x32xf32>
    %98 = arith.mulf %96, %97 : vector<62x32xf32>
    %99 = arith.addf %92, %98 : vector<62x32xf32>
    %100 = vector.extract_strided_slice %84 {offsets = [2, 0], sizes = [62, 1], strides = [1, 1]} : vector<64x1xf32> to vector<62x1xf32>
    %c2_48 = arith.constant 2 : index
    %c0_49 = arith.constant 0 : index
    %c0_50 = arith.constant 0 : index
    %101 = vector.load %arg3[%c2_48, %c0_49, %c0_50] : memref<3x1x32xf32, #tpu.memory_space<vmem>>, vector<1x1x32xf32>
    %102 = vector.shape_cast %101 : vector<1x1x32xf32> to vector<1x32xf32>
    %103 = vector.broadcast %100 : vector<62x1xf32> to vector<62x32xf32>
    %104 = vector.broadcast %102 : vector<1x32xf32> to vector<62x32xf32>
    %105 = arith.mulf %103, %104 : vector<62x32xf32>
    %106 = arith.addf %99, %105 : vector<62x32xf32>
    %c0_51 = arith.constant 0 : index
    %c0_52 = arith.constant 0 : index
    %107 = vector.load %arg4[%c0_51, %c0_52] : memref<3x32xf32, #tpu.memory_space<vmem>>, vector<1x32xf32>
    %108 = vector.broadcast %107 : vector<1x32xf32> to vector<62x32xf32>
    %109 = arith.addf %106, %108 : vector<62x32xf32>
    %cst_53 = arith.constant 0.000000e+00 : f32
    %110 = vector.broadcast %cst_53 : f32 to vector<62x32xf32>
    %111 = arith.cmpf ogt, %109, %110 : vector<62x32xf32>
    %cst_54 = arith.constant 0.00999999977 : f32
    %112 = vector.broadcast %cst_54 : f32 to vector<62x32xf32>
    %113 = arith.mulf %112, %109 : vector<62x32xf32>
    %114 = arith.select %111, %109, %113 : vector<62x32xi1>, vector<62x32xf32>
    %cst_55 = arith.constant 0.000000e+00 : f32
    %115 = vector.broadcast %cst_55 : f32 to vector<1x32xf32>
    %116 = tpu.concatenate %115, %114, %115 in 0 : vector<1x32xf32>, vector<62x32xf32>, vector<1x32xf32> -> vector<64x32xf32>
    %117 = vector.extract_strided_slice %116 {offsets = [0, 0], sizes = [62, 32], strides = [1, 1]} : vector<64x32xf32> to vector<62x32xf32>
    %118 = vector.extract_strided_slice %116 {offsets = [1, 0], sizes = [62, 32], strides = [1, 1]} : vector<64x32xf32> to vector<62x32xf32>
    %119 = vector.extract_strided_slice %116 {offsets = [2, 0], sizes = [62, 32], strides = [1, 1]} : vector<64x32xf32> to vector<62x32xf32>
    %cst_56 = arith.constant 0.000000e+00 : f32
    %120 = vector.broadcast %cst_56 : f32 to vector<62x32xf32>
    %121 = tpu.concatenate %117, %118, %119, %120 in 1 : vector<62x32xf32>, vector<62x32xf32>, vector<62x32xf32>, vector<62x32xf32> -> vector<62x128xf32>
    %122 = arith.truncf %121 : vector<62x128xf32> to vector<62x128xbf16>
    %c0_57 = arith.constant 0 : index
    %c0_58 = arith.constant 0 : index
    %123 = vector.load %arg5[%c0_57, %c0_58] : memref<128x32xbf16, #tpu.memory_space<vmem>>, vector<128x32xbf16>
    %cst_59 = arith.constant dense<0.000000e+00> : vector<62x32xf32>
    %124 = tpu.matmul %122, %123, %cst_59 {dimension_numbers = #tpu.dot_dimension_numbers<[1], [0], [0], [1], [0, 0, 1, 1], [], []>} : vector<62x128xbf16>, vector<128x32xbf16>, vector<62x32xf32> -> vector<62x32xf32>
    %c1_60 = arith.constant 1 : index
    %c0_61 = arith.constant 0 : index
    %125 = vector.load %arg4[%c1_60, %c0_61] : memref<3x32xf32, #tpu.memory_space<vmem>>, vector<1x32xf32>
    %126 = vector.broadcast %125 : vector<1x32xf32> to vector<62x32xf32>
    %127 = arith.addf %124, %126 : vector<62x32xf32>
    %cst_62 = arith.constant 0.000000e+00 : f32
    %128 = vector.broadcast %cst_62 : f32 to vector<62x32xf32>
    %129 = arith.cmpf ogt, %127, %128 : vector<62x32xf32>
    %cst_63 = arith.constant 0.00999999977 : f32
    %130 = vector.broadcast %cst_63 : f32 to vector<62x32xf32>
    %131 = arith.mulf %130, %127 : vector<62x32xf32>
    %132 = arith.select %129, %127, %131 : vector<62x32xi1>, vector<62x32xf32>
    %133 = vector.extract_strided_slice %132 {offsets = [0, 0], sizes = [60, 32], strides = [1, 1]} : vector<62x32xf32> to vector<60x32xf32>
    %134 = vector.extract_strided_slice %132 {offsets = [1, 0], sizes = [60, 32], strides = [1, 1]} : vector<62x32xf32> to vector<60x32xf32>
    %135 = vector.extract_strided_slice %132 {offsets = [2, 0], sizes = [60, 32], strides = [1, 1]} : vector<62x32xf32> to vector<60x32xf32>
    %cst_64 = arith.constant 0.000000e+00 : f32
    %136 = vector.broadcast %cst_64 : f32 to vector<60x32xf32>
    %137 = tpu.concatenate %133, %134, %135, %136 in 1 : vector<60x32xf32>, vector<60x32xf32>, vector<60x32xf32>, vector<60x32xf32> -> vector<60x128xf32>
    %138 = arith.truncf %137 : vector<60x128xf32> to vector<60x128xbf16>
    %c0_65 = arith.constant 0 : index
    %c0_66 = arith.constant 0 : index
    %c0_67 = arith.constant 0 : index
    %139 = vector.load %arg6[%c0_65, %c0_66, %c0_67] : memref<1x128x32xbf16, #tpu.memory_space<vmem>>, vector<1x128x32xbf16>
    %140 = vector.shape_cast %139 : vector<1x128x32xbf16> to vector<128x32xbf16>
    %cst_68 = arith.constant dense<0.000000e+00> : vector<60x32xf32>
    %141 = tpu.matmul %138, %140, %cst_68 {dimension_numbers = #tpu.dot_dimension_numbers<[1], [0], [0], [1], [0, 0, 1, 1], [], []>} : vector<60x128xbf16>, vector<128x32xbf16>, vector<60x32xf32> -> vector<60x32xf32>
    %c2_69 = arith.constant 2 : index
    %c0_70 = arith.constant 0 : index
    %142 = vector.load %arg4[%c2_69, %c0_70] : memref<3x32xf32, #tpu.memory_space<vmem>>, vector<1x32xf32>
    %143 = vector.broadcast %142 : vector<1x32xf32> to vector<60x32xf32>
    %144 = arith.addf %141, %143 : vector<60x32xf32>
    %cst_71 = arith.constant 0.000000e+00 : f32
    %145 = vector.broadcast %cst_71 : f32 to vector<60x32xf32>
    %146 = arith.cmpf ogt, %144, %145 : vector<60x32xf32>
    %cst_72 = arith.constant 0.00999999977 : f32
    %147 = vector.broadcast %cst_72 : f32 to vector<60x32xf32>
    %148 = arith.mulf %147, %144 : vector<60x32xf32>
    %149 = arith.select %146, %144, %148 : vector<60x32xi1>, vector<60x32xf32>
    %150 = vector.extract_strided_slice %149 {offsets = [0, 0], sizes = [59, 32], strides = [1, 1]} : vector<60x32xf32> to vector<59x32xf32>
    %151 = vector.extract_strided_slice %149 {offsets = [1, 0], sizes = [59, 32], strides = [1, 1]} : vector<60x32xf32> to vector<59x32xf32>
    %152 = arith.maximumf %150, %151 : vector<59x32xf32>
    %153 = tpu.iota {dimensions = array<i32: 0>} : vector<30x59xi32>
    %154 = tpu.iota {dimensions = array<i32: 1>} : vector<30x59xi32>
    %c2_i32_73 = arith.constant 2 : i32
    %155 = vector.broadcast %c2_i32_73 : i32 to vector<30x59xi32>
    %156 = arith.muli %155, %153 : vector<30x59xi32>
    %157 = arith.cmpi eq, %154, %156 : vector<30x59xi32>
    %cst_74 = arith.constant 1.000000e+00 : f32
    %cst_75 = arith.constant 0.000000e+00 : f32
    %158 = vector.broadcast %cst_74 : f32 to vector<30x59xf32>
    %159 = vector.broadcast %cst_75 : f32 to vector<30x59xf32>
    %160 = arith.select %157, %158, %159 : vector<30x59xi1>, vector<30x59xf32>
    %cst_76 = arith.constant dense<0.000000e+00> : vector<30x32xf32>
    %161 = tpu.matmul %160, %152, %cst_76 {dimension_numbers = #tpu.dot_dimension_numbers<[1], [0], [0], [1], [0, 0, 1, 1], [], []>} : vector<30x59xf32>, vector<59x32xf32>, vector<30x32xf32> -> vector<30x32xf32>
    %c0_77 = arith.constant 0 : index
    %c0_78 = arith.constant 0 : index
    %162 = vector.load %arg2[%c0_77, %c0_78] : memref<1x32xf32, #tpu.memory_space<vmem>>, vector<1x32xf32>
    %163 = tpu.concatenate %162, %161 in 0 : vector<1x32xf32>, vector<30x32xf32> -> vector<31x32xf32>
    %c0_79 = arith.constant 0 : index
    %c0_80 = arith.constant 0 : index
    %164 = vector.load %arg7[%c0_79, %c0_80] : memref<31x32xf32, #tpu.memory_space<vmem>>, vector<31x32xf32>
    %165 = arith.addf %163, %164 : vector<31x32xf32>
    %166 = tpu.concatenate %82, %165 in 0 : vector<31x32xf32>, vector<31x32xf32> -> vector<62x32xf32>
    %c0_81 = arith.constant 0 : index
    %c0_82 = arith.constant 0 : index
    %c0_83 = arith.constant 0 : index
    %167 = vector.load %arg12[%c0_81, %c0_82, %c0_83] : memref<2x8x96xf32, #tpu.memory_space<vmem>>, vector<1x8x96xf32>
    %168 = vector.shape_cast %167 : vector<1x8x96xf32> to vector<8x96xf32>
    %169 = vector.extract_strided_slice %168 {offsets = [0, 0], sizes = [1, 96], strides = [1, 1]} : vector<8x96xf32> to vector<1x96xf32>
    %170 = vector.extract_strided_slice %168 {offsets = [1, 0], sizes = [1, 32], strides = [1, 1]} : vector<8x96xf32> to vector<1x32xf32>
    %171 = vector.extract_strided_slice %168 {offsets = [2, 0], sizes = [1, 32], strides = [1, 1]} : vector<8x96xf32> to vector<1x32xf32>
    %172 = vector.extract_strided_slice %168 {offsets = [3, 0], sizes = [1, 32], strides = [1, 1]} : vector<8x96xf32> to vector<1x32xf32>
    %173 = vector.extract_strided_slice %168 {offsets = [4, 0], sizes = [1, 64], strides = [1, 1]} : vector<8x96xf32> to vector<1x64xf32>
    %174 = vector.extract_strided_slice %168 {offsets = [5, 0], sizes = [1, 32], strides = [1, 1]} : vector<8x96xf32> to vector<1x32xf32>
    %175 = vector.extract_strided_slice %168 {offsets = [6, 0], sizes = [1, 32], strides = [1, 1]} : vector<8x96xf32> to vector<1x32xf32>
    %176 = vector.extract_strided_slice %168 {offsets = [7, 0], sizes = [1, 32], strides = [1, 1]} : vector<8x96xf32> to vector<1x32xf32>
    %c0_84 = arith.constant 0 : index
    %c0_85 = arith.constant 0 : index
    %c0_86 = arith.constant 0 : index
    %177 = vector.load %arg8[%c0_84, %c0_85, %c0_86] : memref<2x32x96xbf16, #tpu.memory_space<vmem>>, vector<1x32x96xbf16>
    %178 = vector.shape_cast %177 : vector<1x32x96xbf16> to vector<32x96xbf16>
    %c0_87 = arith.constant 0 : index
    %c0_88 = arith.constant 0 : index
    %c0_89 = arith.constant 0 : index
    %179 = vector.load %arg9[%c0_87, %c0_88, %c0_89] : memref<2x32x32xbf16, #tpu.memory_space<vmem>>, vector<1x32x32xbf16>
    %180 = vector.shape_cast %179 : vector<1x32x32xbf16> to vector<32x32xbf16>
    %c0_90 = arith.constant 0 : index
    %c0_91 = arith.constant 0 : index
    %c0_92 = arith.constant 0 : index
    %181 = vector.load %arg10[%c0_90, %c0_91, %c0_92] : memref<2x32x64xbf16, #tpu.memory_space<vmem>>, vector<1x32x64xbf16>
    %182 = vector.shape_cast %181 : vector<1x32x64xbf16> to vector<32x64xbf16>
    %c0_93 = arith.constant 0 : index
    %c0_94 = arith.constant 0 : index
    %c0_95 = arith.constant 0 : index
    %183 = vector.load %arg11[%c0_93, %c0_94, %c0_95] : memref<2x64x32xbf16, #tpu.memory_space<vmem>>, vector<1x64x32xbf16>
    %184 = vector.shape_cast %183 : vector<1x64x32xbf16> to vector<64x32xbf16>
    %185 = arith.truncf %166 : vector<62x32xf32> to vector<62x32xbf16>
    %cst_96 = arith.constant dense<0.000000e+00> : vector<62x96xf32>
    %186 = tpu.matmul %185, %178, %cst_96 {dimension_numbers = #tpu.dot_dimension_numbers<[1], [0], [0], [1], [0, 0, 1, 1], [], []>} : vector<62x32xbf16>, vector<32x96xbf16>, vector<62x96xf32> -> vector<62x96xf32>
    %187 = vector.broadcast %169 : vector<1x96xf32> to vector<62x96xf32>
    %188 = arith.addf %186, %187 : vector<62x96xf32>
    %cst_97 = arith.constant 0.000000e+00 : f32
    %189 = vector.broadcast %cst_97 : f32 to vector<31x32xf32>
    %190 = vector.extract_strided_slice %188 {offsets = [0, 0], sizes = [31, 16], strides = [1, 1]} : vector<62x96xf32> to vector<31x16xf32>
    %191 = arith.truncf %190 : vector<31x16xf32> to vector<31x16xbf16>
    %192 = vector.extract_strided_slice %188 {offsets = [0, 32], sizes = [31, 16], strides = [1, 1]} : vector<62x96xf32> to vector<31x16xf32>
    %193 = arith.truncf %192 : vector<31x16xf32> to vector<31x16xbf16>
    %194 = vector.extract_strided_slice %188 {offsets = [0, 64], sizes = [31, 16], strides = [1, 1]} : vector<62x96xf32> to vector<31x16xf32>
    %195 = arith.truncf %194 : vector<31x16xf32> to vector<31x16xbf16>
    %cst_98 = arith.constant dense<0.000000e+00> : vector<31x31xf32>
    %196 = tpu.matmul %191, %193, %cst_98 {dimension_numbers = #tpu.dot_dimension_numbers<[1], [1], [0], [0], [0, 0, 1, 0], [], []>} : vector<31x16xbf16>, vector<31x16xbf16>, vector<31x31xf32> -> vector<31x31xf32>
    %cst_99 = arith.constant 2.500000e-01 : f32
    %197 = vector.broadcast %cst_99 : f32 to vector<31x31xf32>
    %198 = arith.mulf %196, %197 : vector<31x31xf32>
    %cst_100 = arith.constant dense<0xFF800000> : vector<31xf32>
    %199 = vector.multi_reduction <maximumf>, %198, %cst_100 [1] : vector<31x31xf32> to vector<31xf32>
    %200 = vector.shape_cast %199 : vector<31xf32> to vector<31x1xf32>
    %201 = vector.broadcast %200 : vector<31x1xf32> to vector<31x31xf32>
    %202 = arith.subf %198, %201 : vector<31x31xf32>
    %203 = math.exp %202 : vector<31x31xf32>
    %cst_101 = arith.constant dense<0.000000e+00> : vector<31xf32>
    %204 = vector.multi_reduction <add>, %203, %cst_101 [1] : vector<31x31xf32> to vector<31xf32>
    %205 = vector.shape_cast %204 : vector<31xf32> to vector<31x1xf32>
    %206 = tpu.reciprocal %205 {approx = true} : vector<31x1xf32> -> vector<31x1xf32>
    %207 = vector.broadcast %206 : vector<31x1xf32> to vector<31x31xf32>
    %208 = arith.mulf %203, %207 : vector<31x31xf32>
    %209 = arith.truncf %208 : vector<31x31xf32> to vector<31x31xbf16>
    %cst_102 = arith.constant dense<0.000000e+00> : vector<31x16xf32>
    %210 = tpu.matmul %209, %195, %cst_102 {dimension_numbers = #tpu.dot_dimension_numbers<[1], [0], [0], [1], [0, 0, 1, 1], [], []>} : vector<31x31xbf16>, vector<31x16xbf16>, vector<31x16xf32> -> vector<31x16xf32>
    %211 = arith.truncf %210 : vector<31x16xf32> to vector<31x16xbf16>
    %212 = vector.extract_strided_slice %180 {offsets = [0, 0], sizes = [16, 32], strides = [1, 1]} : vector<32x32xbf16> to vector<16x32xbf16>
    %cst_103 = arith.constant dense<0.000000e+00> : vector<31x32xf32>
    %213 = tpu.matmul %211, %212, %cst_103 {dimension_numbers = #tpu.dot_dimension_numbers<[1], [0], [0], [1], [0, 0, 1, 1], [], []>} : vector<31x16xbf16>, vector<16x32xbf16>, vector<31x32xf32> -> vector<31x32xf32>
    %214 = arith.addf %189, %213 : vector<31x32xf32>
    %215 = vector.extract_strided_slice %188 {offsets = [0, 16], sizes = [31, 16], strides = [1, 1]} : vector<62x96xf32> to vector<31x16xf32>
    %216 = arith.truncf %215 : vector<31x16xf32> to vector<31x16xbf16>
    %217 = vector.extract_strided_slice %188 {offsets = [0, 48], sizes = [31, 16], strides = [1, 1]} : vector<62x96xf32> to vector<31x16xf32>
    %218 = arith.truncf %217 : vector<31x16xf32> to vector<31x16xbf16>
    %219 = vector.extract_strided_slice %188 {offsets = [0, 80], sizes = [31, 16], strides = [1, 1]} : vector<62x96xf32> to vector<31x16xf32>
    %220 = arith.truncf %219 : vector<31x16xf32> to vector<31x16xbf16>
    %cst_104 = arith.constant dense<0.000000e+00> : vector<31x31xf32>
    %221 = tpu.matmul %216, %218, %cst_104 {dimension_numbers = #tpu.dot_dimension_numbers<[1], [1], [0], [0], [0, 0, 1, 0], [], []>} : vector<31x16xbf16>, vector<31x16xbf16>, vector<31x31xf32> -> vector<31x31xf32>
    %cst_105 = arith.constant 2.500000e-01 : f32
    %222 = vector.broadcast %cst_105 : f32 to vector<31x31xf32>
    %223 = arith.mulf %221, %222 : vector<31x31xf32>
    %cst_106 = arith.constant dense<0xFF800000> : vector<31xf32>
    %224 = vector.multi_reduction <maximumf>, %223, %cst_106 [1] : vector<31x31xf32> to vector<31xf32>
    %225 = vector.shape_cast %224 : vector<31xf32> to vector<31x1xf32>
    %226 = vector.broadcast %225 : vector<31x1xf32> to vector<31x31xf32>
    %227 = arith.subf %223, %226 : vector<31x31xf32>
    %228 = math.exp %227 : vector<31x31xf32>
    %cst_107 = arith.constant dense<0.000000e+00> : vector<31xf32>
    %229 = vector.multi_reduction <add>, %228, %cst_107 [1] : vector<31x31xf32> to vector<31xf32>
    %230 = vector.shape_cast %229 : vector<31xf32> to vector<31x1xf32>
    %231 = tpu.reciprocal %230 {approx = true} : vector<31x1xf32> -> vector<31x1xf32>
    %232 = vector.broadcast %231 : vector<31x1xf32> to vector<31x31xf32>
    %233 = arith.mulf %228, %232 : vector<31x31xf32>
    %234 = arith.truncf %233 : vector<31x31xf32> to vector<31x31xbf16>
    %cst_108 = arith.constant dense<0.000000e+00> : vector<31x16xf32>
    %235 = tpu.matmul %234, %220, %cst_108 {dimension_numbers = #tpu.dot_dimension_numbers<[1], [0], [0], [1], [0, 0, 1, 1], [], []>} : vector<31x31xbf16>, vector<31x16xbf16>, vector<31x16xf32> -> vector<31x16xf32>
    %236 = arith.truncf %235 : vector<31x16xf32> to vector<31x16xbf16>
    %237 = vector.extract_strided_slice %180 {offsets = [16, 0], sizes = [16, 32], strides = [1, 1]} : vector<32x32xbf16> to vector<16x32xbf16>
    %cst_109 = arith.constant dense<0.000000e+00> : vector<31x32xf32>
    %238 = tpu.matmul %236, %237, %cst_109 {dimension_numbers = #tpu.dot_dimension_numbers<[1], [0], [0], [1], [0, 0, 1, 1], [], []>} : vector<31x16xbf16>, vector<16x32xbf16>, vector<31x32xf32> -> vector<31x32xf32>
    %239 = arith.addf %214, %238 : vector<31x32xf32>
    %cst_110 = arith.constant 0.000000e+00 : f32
    %240 = vector.broadcast %cst_110 : f32 to vector<31x32xf32>
    %241 = vector.extract_strided_slice %188 {offsets = [31, 0], sizes = [31, 16], strides = [1, 1]} : vector<62x96xf32> to vector<31x16xf32>
    %242 = arith.truncf %241 : vector<31x16xf32> to vector<31x16xbf16>
    %243 = vector.extract_strided_slice %188 {offsets = [31, 32], sizes = [31, 16], strides = [1, 1]} : vector<62x96xf32> to vector<31x16xf32>
    %244 = arith.truncf %243 : vector<31x16xf32> to vector<31x16xbf16>
    %245 = vector.extract_strided_slice %188 {offsets = [31, 64], sizes = [31, 16], strides = [1, 1]} : vector<62x96xf32> to vector<31x16xf32>
    %246 = arith.truncf %245 : vector<31x16xf32> to vector<31x16xbf16>
    %cst_111 = arith.constant dense<0.000000e+00> : vector<31x31xf32>
    %247 = tpu.matmul %242, %244, %cst_111 {dimension_numbers = #tpu.dot_dimension_numbers<[1], [1], [0], [0], [0, 0, 1, 0], [], []>} : vector<31x16xbf16>, vector<31x16xbf16>, vector<31x31xf32> -> vector<31x31xf32>
    %cst_112 = arith.constant 2.500000e-01 : f32
    %248 = vector.broadcast %cst_112 : f32 to vector<31x31xf32>
    %249 = arith.mulf %247, %248 : vector<31x31xf32>
    %cst_113 = arith.constant dense<0xFF800000> : vector<31xf32>
    %250 = vector.multi_reduction <maximumf>, %249, %cst_113 [1] : vector<31x31xf32> to vector<31xf32>
    %251 = vector.shape_cast %250 : vector<31xf32> to vector<31x1xf32>
    %252 = vector.broadcast %251 : vector<31x1xf32> to vector<31x31xf32>
    %253 = arith.subf %249, %252 : vector<31x31xf32>
    %254 = math.exp %253 : vector<31x31xf32>
    %cst_114 = arith.constant dense<0.000000e+00> : vector<31xf32>
    %255 = vector.multi_reduction <add>, %254, %cst_114 [1] : vector<31x31xf32> to vector<31xf32>
    %256 = vector.shape_cast %255 : vector<31xf32> to vector<31x1xf32>
    %257 = tpu.reciprocal %256 {approx = true} : vector<31x1xf32> -> vector<31x1xf32>
    %258 = vector.broadcast %257 : vector<31x1xf32> to vector<31x31xf32>
    %259 = arith.mulf %254, %258 : vector<31x31xf32>
    %260 = arith.truncf %259 : vector<31x31xf32> to vector<31x31xbf16>
    %cst_115 = arith.constant dense<0.000000e+00> : vector<31x16xf32>
    %261 = tpu.matmul %260, %246, %cst_115 {dimension_numbers = #tpu.dot_dimension_numbers<[1], [0], [0], [1], [0, 0, 1, 1], [], []>} : vector<31x31xbf16>, vector<31x16xbf16>, vector<31x16xf32> -> vector<31x16xf32>
    %262 = arith.truncf %261 : vector<31x16xf32> to vector<31x16xbf16>
    %263 = vector.extract_strided_slice %180 {offsets = [0, 0], sizes = [16, 32], strides = [1, 1]} : vector<32x32xbf16> to vector<16x32xbf16>
    %cst_116 = arith.constant dense<0.000000e+00> : vector<31x32xf32>
    %264 = tpu.matmul %262, %263, %cst_116 {dimension_numbers = #tpu.dot_dimension_numbers<[1], [0], [0], [1], [0, 0, 1, 1], [], []>} : vector<31x16xbf16>, vector<16x32xbf16>, vector<31x32xf32> -> vector<31x32xf32>
    %265 = arith.addf %240, %264 : vector<31x32xf32>
    %266 = vector.extract_strided_slice %188 {offsets = [31, 16], sizes = [31, 16], strides = [1, 1]} : vector<62x96xf32> to vector<31x16xf32>
    %267 = arith.truncf %266 : vector<31x16xf32> to vector<31x16xbf16>
    %268 = vector.extract_strided_slice %188 {offsets = [31, 48], sizes = [31, 16], strides = [1, 1]} : vector<62x96xf32> to vector<31x16xf32>
    %269 = arith.truncf %268 : vector<31x16xf32> to vector<31x16xbf16>
    %270 = vector.extract_strided_slice %188 {offsets = [31, 80], sizes = [31, 16], strides = [1, 1]} : vector<62x96xf32> to vector<31x16xf32>
    %271 = arith.truncf %270 : vector<31x16xf32> to vector<31x16xbf16>
    %cst_117 = arith.constant dense<0.000000e+00> : vector<31x31xf32>
    %272 = tpu.matmul %267, %269, %cst_117 {dimension_numbers = #tpu.dot_dimension_numbers<[1], [1], [0], [0], [0, 0, 1, 0], [], []>} : vector<31x16xbf16>, vector<31x16xbf16>, vector<31x31xf32> -> vector<31x31xf32>
    %cst_118 = arith.constant 2.500000e-01 : f32
    %273 = vector.broadcast %cst_118 : f32 to vector<31x31xf32>
    %274 = arith.mulf %272, %273 : vector<31x31xf32>
    %cst_119 = arith.constant dense<0xFF800000> : vector<31xf32>
    %275 = vector.multi_reduction <maximumf>, %274, %cst_119 [1] : vector<31x31xf32> to vector<31xf32>
    %276 = vector.shape_cast %275 : vector<31xf32> to vector<31x1xf32>
    %277 = vector.broadcast %276 : vector<31x1xf32> to vector<31x31xf32>
    %278 = arith.subf %274, %277 : vector<31x31xf32>
    %279 = math.exp %278 : vector<31x31xf32>
    %cst_120 = arith.constant dense<0.000000e+00> : vector<31xf32>
    %280 = vector.multi_reduction <add>, %279, %cst_120 [1] : vector<31x31xf32> to vector<31xf32>
    %281 = vector.shape_cast %280 : vector<31xf32> to vector<31x1xf32>
    %282 = tpu.reciprocal %281 {approx = true} : vector<31x1xf32> -> vector<31x1xf32>
    %283 = vector.broadcast %282 : vector<31x1xf32> to vector<31x31xf32>
    %284 = arith.mulf %279, %283 : vector<31x31xf32>
    %285 = arith.truncf %284 : vector<31x31xf32> to vector<31x31xbf16>
    %cst_121 = arith.constant dense<0.000000e+00> : vector<31x16xf32>
    %286 = tpu.matmul %285, %271, %cst_121 {dimension_numbers = #tpu.dot_dimension_numbers<[1], [0], [0], [1], [0, 0, 1, 1], [], []>} : vector<31x31xbf16>, vector<31x16xbf16>, vector<31x16xf32> -> vector<31x16xf32>
    %287 = arith.truncf %286 : vector<31x16xf32> to vector<31x16xbf16>
    %288 = vector.extract_strided_slice %180 {offsets = [16, 0], sizes = [16, 32], strides = [1, 1]} : vector<32x32xbf16> to vector<16x32xbf16>
    %cst_122 = arith.constant dense<0.000000e+00> : vector<31x32xf32>
    %289 = tpu.matmul %287, %288, %cst_122 {dimension_numbers = #tpu.dot_dimension_numbers<[1], [0], [0], [1], [0, 0, 1, 1], [], []>} : vector<31x16xbf16>, vector<16x32xbf16>, vector<31x32xf32> -> vector<31x32xf32>
    %290 = arith.addf %265, %289 : vector<31x32xf32>
    %291 = tpu.concatenate %239, %290 in 0 : vector<31x32xf32>, vector<31x32xf32> -> vector<62x32xf32>
    %292 = vector.broadcast %170 : vector<1x32xf32> to vector<62x32xf32>
    %293 = arith.addf %291, %292 : vector<62x32xf32>
    %294 = arith.addf %166, %293 : vector<62x32xf32>
    %cst_123 = arith.constant dense<0.000000e+00> : vector<62xf32>
    %295 = vector.multi_reduction <add>, %294, %cst_123 [1] : vector<62x32xf32> to vector<62xf32>
    %296 = vector.shape_cast %295 : vector<62xf32> to vector<62x1xf32>
    %cst_124 = arith.constant 3.200000e+01 : f32
    %297 = vector.broadcast %cst_124 : f32 to vector<62x1xf32>
    %298 = arith.divf %296, %297 : vector<62x1xf32>
    %299 = vector.broadcast %298 : vector<62x1xf32> to vector<62x32xf32>
    %300 = arith.subf %294, %299 : vector<62x32xf32>
    %301 = arith.mulf %300, %300 : vector<62x32xf32>
    %cst_125 = arith.constant dense<0.000000e+00> : vector<62xf32>
    %302 = vector.multi_reduction <add>, %301, %cst_125 [1] : vector<62x32xf32> to vector<62xf32>
    %303 = vector.shape_cast %302 : vector<62xf32> to vector<62x1xf32>
    %cst_126 = arith.constant 3.200000e+01 : f32
    %304 = vector.broadcast %cst_126 : f32 to vector<62x1xf32>
    %305 = arith.divf %303, %304 : vector<62x1xf32>
    %cst_127 = arith.constant 9.99999974E-6 : f32
    %306 = vector.broadcast %cst_127 : f32 to vector<62x1xf32>
    %307 = arith.addf %305, %306 : vector<62x1xf32>
    %308 = math.rsqrt %307 : vector<62x1xf32>
    %309 = vector.broadcast %308 : vector<62x1xf32> to vector<62x32xf32>
    %310 = arith.mulf %300, %309 : vector<62x32xf32>
    %311 = vector.broadcast %171 : vector<1x32xf32> to vector<62x32xf32>
    %312 = arith.mulf %310, %311 : vector<62x32xf32>
    %313 = vector.broadcast %172 : vector<1x32xf32> to vector<62x32xf32>
    %314 = arith.addf %312, %313 : vector<62x32xf32>
    %315 = arith.truncf %314 : vector<62x32xf32> to vector<62x32xbf16>
    %cst_128 = arith.constant dense<0.000000e+00> : vector<62x64xf32>
    %316 = tpu.matmul %315, %182, %cst_128 {dimension_numbers = #tpu.dot_dimension_numbers<[1], [0], [0], [1], [0, 0, 1, 1], [], []>} : vector<62x32xbf16>, vector<32x64xbf16>, vector<62x64xf32> -> vector<62x64xf32>
    %317 = vector.broadcast %173 : vector<1x64xf32> to vector<62x64xf32>
    %318 = arith.addf %316, %317 : vector<62x64xf32>
    %cst_129 = arith.constant 0.000000e+00 : f32
    %319 = vector.broadcast %cst_129 : f32 to vector<62x64xf32>
    %320 = arith.maximumf %318, %319 : vector<62x64xf32>
    %321 = arith.truncf %320 : vector<62x64xf32> to vector<62x64xbf16>
    %cst_130 = arith.constant dense<0.000000e+00> : vector<62x32xf32>
    %322 = tpu.matmul %321, %184, %cst_130 {dimension_numbers = #tpu.dot_dimension_numbers<[1], [0], [0], [1], [0, 0, 1, 1], [], []>} : vector<62x64xbf16>, vector<64x32xbf16>, vector<62x32xf32> -> vector<62x32xf32>
    %323 = vector.broadcast %174 : vector<1x32xf32> to vector<62x32xf32>
    %324 = arith.addf %322, %323 : vector<62x32xf32>
    %325 = arith.addf %314, %324 : vector<62x32xf32>
    %cst_131 = arith.constant dense<0.000000e+00> : vector<62xf32>
    %326 = vector.multi_reduction <add>, %325, %cst_131 [1] : vector<62x32xf32> to vector<62xf32>
    %327 = vector.shape_cast %326 : vector<62xf32> to vector<62x1xf32>
    %cst_132 = arith.constant 3.200000e+01 : f32
    %328 = vector.broadcast %cst_132 : f32 to vector<62x1xf32>
    %329 = arith.divf %327, %328 : vector<62x1xf32>
    %330 = vector.broadcast %329 : vector<62x1xf32> to vector<62x32xf32>
    %331 = arith.subf %325, %330 : vector<62x32xf32>
    %332 = arith.mulf %331, %331 : vector<62x32xf32>
    %cst_133 = arith.constant dense<0.000000e+00> : vector<62xf32>
    %333 = vector.multi_reduction <add>, %332, %cst_133 [1] : vector<62x32xf32> to vector<62xf32>
    %334 = vector.shape_cast %333 : vector<62xf32> to vector<62x1xf32>
    %cst_134 = arith.constant 3.200000e+01 : f32
    %335 = vector.broadcast %cst_134 : f32 to vector<62x1xf32>
    %336 = arith.divf %334, %335 : vector<62x1xf32>
    %cst_135 = arith.constant 9.99999974E-6 : f32
    %337 = vector.broadcast %cst_135 : f32 to vector<62x1xf32>
    %338 = arith.addf %336, %337 : vector<62x1xf32>
    %339 = math.rsqrt %338 : vector<62x1xf32>
    %340 = vector.broadcast %339 : vector<62x1xf32> to vector<62x32xf32>
    %341 = arith.mulf %331, %340 : vector<62x32xf32>
    %342 = vector.broadcast %175 : vector<1x32xf32> to vector<62x32xf32>
    %343 = arith.mulf %341, %342 : vector<62x32xf32>
    %344 = vector.broadcast %176 : vector<1x32xf32> to vector<62x32xf32>
    %345 = arith.addf %343, %344 : vector<62x32xf32>
    %c1_136 = arith.constant 1 : index
    %c0_137 = arith.constant 0 : index
    %c0_138 = arith.constant 0 : index
    %346 = vector.load %arg12[%c1_136, %c0_137, %c0_138] : memref<2x8x96xf32, #tpu.memory_space<vmem>>, vector<1x8x96xf32>
    %347 = vector.shape_cast %346 : vector<1x8x96xf32> to vector<8x96xf32>
    %348 = vector.extract_strided_slice %347 {offsets = [0, 0], sizes = [1, 96], strides = [1, 1]} : vector<8x96xf32> to vector<1x96xf32>
    %349 = vector.extract_strided_slice %347 {offsets = [1, 0], sizes = [1, 32], strides = [1, 1]} : vector<8x96xf32> to vector<1x32xf32>
    %350 = vector.extract_strided_slice %347 {offsets = [2, 0], sizes = [1, 32], strides = [1, 1]} : vector<8x96xf32> to vector<1x32xf32>
    %351 = vector.extract_strided_slice %347 {offsets = [3, 0], sizes = [1, 32], strides = [1, 1]} : vector<8x96xf32> to vector<1x32xf32>
    %352 = vector.extract_strided_slice %347 {offsets = [4, 0], sizes = [1, 64], strides = [1, 1]} : vector<8x96xf32> to vector<1x64xf32>
    %353 = vector.extract_strided_slice %347 {offsets = [5, 0], sizes = [1, 32], strides = [1, 1]} : vector<8x96xf32> to vector<1x32xf32>
    %354 = vector.extract_strided_slice %347 {offsets = [6, 0], sizes = [1, 32], strides = [1, 1]} : vector<8x96xf32> to vector<1x32xf32>
    %355 = vector.extract_strided_slice %347 {offsets = [7, 0], sizes = [1, 32], strides = [1, 1]} : vector<8x96xf32> to vector<1x32xf32>
    %c1_139 = arith.constant 1 : index
    %c0_140 = arith.constant 0 : index
    %c0_141 = arith.constant 0 : index
    %356 = vector.load %arg8[%c1_139, %c0_140, %c0_141] : memref<2x32x96xbf16, #tpu.memory_space<vmem>>, vector<1x32x96xbf16>
    %357 = vector.shape_cast %356 : vector<1x32x96xbf16> to vector<32x96xbf16>
    %c1_142 = arith.constant 1 : index
    %c0_143 = arith.constant 0 : index
    %c0_144 = arith.constant 0 : index
    %358 = vector.load %arg9[%c1_142, %c0_143, %c0_144] : memref<2x32x32xbf16, #tpu.memory_space<vmem>>, vector<1x32x32xbf16>
    %359 = vector.shape_cast %358 : vector<1x32x32xbf16> to vector<32x32xbf16>
    %c1_145 = arith.constant 1 : index
    %c0_146 = arith.constant 0 : index
    %c0_147 = arith.constant 0 : index
    %360 = vector.load %arg10[%c1_145, %c0_146, %c0_147] : memref<2x32x64xbf16, #tpu.memory_space<vmem>>, vector<1x32x64xbf16>
    %361 = vector.shape_cast %360 : vector<1x32x64xbf16> to vector<32x64xbf16>
    %c1_148 = arith.constant 1 : index
    %c0_149 = arith.constant 0 : index
    %c0_150 = arith.constant 0 : index
    %362 = vector.load %arg11[%c1_148, %c0_149, %c0_150] : memref<2x64x32xbf16, #tpu.memory_space<vmem>>, vector<1x64x32xbf16>
    %363 = vector.shape_cast %362 : vector<1x64x32xbf16> to vector<64x32xbf16>
    %364 = arith.truncf %345 : vector<62x32xf32> to vector<62x32xbf16>
    %cst_151 = arith.constant dense<0.000000e+00> : vector<62x96xf32>
    %365 = tpu.matmul %364, %357, %cst_151 {dimension_numbers = #tpu.dot_dimension_numbers<[1], [0], [0], [1], [0, 0, 1, 1], [], []>} : vector<62x32xbf16>, vector<32x96xbf16>, vector<62x96xf32> -> vector<62x96xf32>
    %366 = vector.broadcast %348 : vector<1x96xf32> to vector<62x96xf32>
    %367 = arith.addf %365, %366 : vector<62x96xf32>
    %cst_152 = arith.constant 0.000000e+00 : f32
    %368 = vector.broadcast %cst_152 : f32 to vector<31x32xf32>
    %369 = vector.extract_strided_slice %367 {offsets = [0, 0], sizes = [31, 16], strides = [1, 1]} : vector<62x96xf32> to vector<31x16xf32>
    %370 = arith.truncf %369 : vector<31x16xf32> to vector<31x16xbf16>
    %371 = vector.extract_strided_slice %367 {offsets = [0, 32], sizes = [31, 16], strides = [1, 1]} : vector<62x96xf32> to vector<31x16xf32>
    %372 = arith.truncf %371 : vector<31x16xf32> to vector<31x16xbf16>
    %373 = vector.extract_strided_slice %367 {offsets = [0, 64], sizes = [31, 16], strides = [1, 1]} : vector<62x96xf32> to vector<31x16xf32>
    %374 = arith.truncf %373 : vector<31x16xf32> to vector<31x16xbf16>
    %cst_153 = arith.constant dense<0.000000e+00> : vector<31x31xf32>
    %375 = tpu.matmul %370, %372, %cst_153 {dimension_numbers = #tpu.dot_dimension_numbers<[1], [1], [0], [0], [0, 0, 1, 0], [], []>} : vector<31x16xbf16>, vector<31x16xbf16>, vector<31x31xf32> -> vector<31x31xf32>
    %cst_154 = arith.constant 2.500000e-01 : f32
    %376 = vector.broadcast %cst_154 : f32 to vector<31x31xf32>
    %377 = arith.mulf %375, %376 : vector<31x31xf32>
    %cst_155 = arith.constant dense<0xFF800000> : vector<31xf32>
    %378 = vector.multi_reduction <maximumf>, %377, %cst_155 [1] : vector<31x31xf32> to vector<31xf32>
    %379 = vector.shape_cast %378 : vector<31xf32> to vector<31x1xf32>
    %380 = vector.broadcast %379 : vector<31x1xf32> to vector<31x31xf32>
    %381 = arith.subf %377, %380 : vector<31x31xf32>
    %382 = math.exp %381 : vector<31x31xf32>
    %cst_156 = arith.constant dense<0.000000e+00> : vector<31xf32>
    %383 = vector.multi_reduction <add>, %382, %cst_156 [1] : vector<31x31xf32> to vector<31xf32>
    %384 = vector.shape_cast %383 : vector<31xf32> to vector<31x1xf32>
    %385 = tpu.reciprocal %384 {approx = true} : vector<31x1xf32> -> vector<31x1xf32>
    %386 = vector.broadcast %385 : vector<31x1xf32> to vector<31x31xf32>
    %387 = arith.mulf %382, %386 : vector<31x31xf32>
    %388 = arith.truncf %387 : vector<31x31xf32> to vector<31x31xbf16>
    %cst_157 = arith.constant dense<0.000000e+00> : vector<31x16xf32>
    %389 = tpu.matmul %388, %374, %cst_157 {dimension_numbers = #tpu.dot_dimension_numbers<[1], [0], [0], [1], [0, 0, 1, 1], [], []>} : vector<31x31xbf16>, vector<31x16xbf16>, vector<31x16xf32> -> vector<31x16xf32>
    %390 = arith.truncf %389 : vector<31x16xf32> to vector<31x16xbf16>
    %391 = vector.extract_strided_slice %359 {offsets = [0, 0], sizes = [16, 32], strides = [1, 1]} : vector<32x32xbf16> to vector<16x32xbf16>
    %cst_158 = arith.constant dense<0.000000e+00> : vector<31x32xf32>
    %392 = tpu.matmul %390, %391, %cst_158 {dimension_numbers = #tpu.dot_dimension_numbers<[1], [0], [0], [1], [0, 0, 1, 1], [], []>} : vector<31x16xbf16>, vector<16x32xbf16>, vector<31x32xf32> -> vector<31x32xf32>
    %393 = arith.addf %368, %392 : vector<31x32xf32>
    %394 = vector.extract_strided_slice %367 {offsets = [0, 16], sizes = [31, 16], strides = [1, 1]} : vector<62x96xf32> to vector<31x16xf32>
    %395 = arith.truncf %394 : vector<31x16xf32> to vector<31x16xbf16>
    %396 = vector.extract_strided_slice %367 {offsets = [0, 48], sizes = [31, 16], strides = [1, 1]} : vector<62x96xf32> to vector<31x16xf32>
    %397 = arith.truncf %396 : vector<31x16xf32> to vector<31x16xbf16>
    %398 = vector.extract_strided_slice %367 {offsets = [0, 80], sizes = [31, 16], strides = [1, 1]} : vector<62x96xf32> to vector<31x16xf32>
    %399 = arith.truncf %398 : vector<31x16xf32> to vector<31x16xbf16>
    %cst_159 = arith.constant dense<0.000000e+00> : vector<31x31xf32>
    %400 = tpu.matmul %395, %397, %cst_159 {dimension_numbers = #tpu.dot_dimension_numbers<[1], [1], [0], [0], [0, 0, 1, 0], [], []>} : vector<31x16xbf16>, vector<31x16xbf16>, vector<31x31xf32> -> vector<31x31xf32>
    %cst_160 = arith.constant 2.500000e-01 : f32
    %401 = vector.broadcast %cst_160 : f32 to vector<31x31xf32>
    %402 = arith.mulf %400, %401 : vector<31x31xf32>
    %cst_161 = arith.constant dense<0xFF800000> : vector<31xf32>
    %403 = vector.multi_reduction <maximumf>, %402, %cst_161 [1] : vector<31x31xf32> to vector<31xf32>
    %404 = vector.shape_cast %403 : vector<31xf32> to vector<31x1xf32>
    %405 = vector.broadcast %404 : vector<31x1xf32> to vector<31x31xf32>
    %406 = arith.subf %402, %405 : vector<31x31xf32>
    %407 = math.exp %406 : vector<31x31xf32>
    %cst_162 = arith.constant dense<0.000000e+00> : vector<31xf32>
    %408 = vector.multi_reduction <add>, %407, %cst_162 [1] : vector<31x31xf32> to vector<31xf32>
    %409 = vector.shape_cast %408 : vector<31xf32> to vector<31x1xf32>
    %410 = tpu.reciprocal %409 {approx = true} : vector<31x1xf32> -> vector<31x1xf32>
    %411 = vector.broadcast %410 : vector<31x1xf32> to vector<31x31xf32>
    %412 = arith.mulf %407, %411 : vector<31x31xf32>
    %413 = arith.truncf %412 : vector<31x31xf32> to vector<31x31xbf16>
    %cst_163 = arith.constant dense<0.000000e+00> : vector<31x16xf32>
    %414 = tpu.matmul %413, %399, %cst_163 {dimension_numbers = #tpu.dot_dimension_numbers<[1], [0], [0], [1], [0, 0, 1, 1], [], []>} : vector<31x31xbf16>, vector<31x16xbf16>, vector<31x16xf32> -> vector<31x16xf32>
    %415 = arith.truncf %414 : vector<31x16xf32> to vector<31x16xbf16>
    %416 = vector.extract_strided_slice %359 {offsets = [16, 0], sizes = [16, 32], strides = [1, 1]} : vector<32x32xbf16> to vector<16x32xbf16>
    %cst_164 = arith.constant dense<0.000000e+00> : vector<31x32xf32>
    %417 = tpu.matmul %415, %416, %cst_164 {dimension_numbers = #tpu.dot_dimension_numbers<[1], [0], [0], [1], [0, 0, 1, 1], [], []>} : vector<31x16xbf16>, vector<16x32xbf16>, vector<31x32xf32> -> vector<31x32xf32>
    %418 = arith.addf %393, %417 : vector<31x32xf32>
    %cst_165 = arith.constant 0.000000e+00 : f32
    %419 = vector.broadcast %cst_165 : f32 to vector<31x32xf32>
    %420 = vector.extract_strided_slice %367 {offsets = [31, 0], sizes = [31, 16], strides = [1, 1]} : vector<62x96xf32> to vector<31x16xf32>
    %421 = arith.truncf %420 : vector<31x16xf32> to vector<31x16xbf16>
    %422 = vector.extract_strided_slice %367 {offsets = [31, 32], sizes = [31, 16], strides = [1, 1]} : vector<62x96xf32> to vector<31x16xf32>
    %423 = arith.truncf %422 : vector<31x16xf32> to vector<31x16xbf16>
    %424 = vector.extract_strided_slice %367 {offsets = [31, 64], sizes = [31, 16], strides = [1, 1]} : vector<62x96xf32> to vector<31x16xf32>
    %425 = arith.truncf %424 : vector<31x16xf32> to vector<31x16xbf16>
    %cst_166 = arith.constant dense<0.000000e+00> : vector<31x31xf32>
    %426 = tpu.matmul %421, %423, %cst_166 {dimension_numbers = #tpu.dot_dimension_numbers<[1], [1], [0], [0], [0, 0, 1, 0], [], []>} : vector<31x16xbf16>, vector<31x16xbf16>, vector<31x31xf32> -> vector<31x31xf32>
    %cst_167 = arith.constant 2.500000e-01 : f32
    %427 = vector.broadcast %cst_167 : f32 to vector<31x31xf32>
    %428 = arith.mulf %426, %427 : vector<31x31xf32>
    %cst_168 = arith.constant dense<0xFF800000> : vector<31xf32>
    %429 = vector.multi_reduction <maximumf>, %428, %cst_168 [1] : vector<31x31xf32> to vector<31xf32>
    %430 = vector.shape_cast %429 : vector<31xf32> to vector<31x1xf32>
    %431 = vector.broadcast %430 : vector<31x1xf32> to vector<31x31xf32>
    %432 = arith.subf %428, %431 : vector<31x31xf32>
    %433 = math.exp %432 : vector<31x31xf32>
    %cst_169 = arith.constant dense<0.000000e+00> : vector<31xf32>
    %434 = vector.multi_reduction <add>, %433, %cst_169 [1] : vector<31x31xf32> to vector<31xf32>
    %435 = vector.shape_cast %434 : vector<31xf32> to vector<31x1xf32>
    %436 = tpu.reciprocal %435 {approx = true} : vector<31x1xf32> -> vector<31x1xf32>
    %437 = vector.broadcast %436 : vector<31x1xf32> to vector<31x31xf32>
    %438 = arith.mulf %433, %437 : vector<31x31xf32>
    %439 = arith.truncf %438 : vector<31x31xf32> to vector<31x31xbf16>
    %cst_170 = arith.constant dense<0.000000e+00> : vector<31x16xf32>
    %440 = tpu.matmul %439, %425, %cst_170 {dimension_numbers = #tpu.dot_dimension_numbers<[1], [0], [0], [1], [0, 0, 1, 1], [], []>} : vector<31x31xbf16>, vector<31x16xbf16>, vector<31x16xf32> -> vector<31x16xf32>
    %441 = arith.truncf %440 : vector<31x16xf32> to vector<31x16xbf16>
    %442 = vector.extract_strided_slice %359 {offsets = [0, 0], sizes = [16, 32], strides = [1, 1]} : vector<32x32xbf16> to vector<16x32xbf16>
    %cst_171 = arith.constant dense<0.000000e+00> : vector<31x32xf32>
    %443 = tpu.matmul %441, %442, %cst_171 {dimension_numbers = #tpu.dot_dimension_numbers<[1], [0], [0], [1], [0, 0, 1, 1], [], []>} : vector<31x16xbf16>, vector<16x32xbf16>, vector<31x32xf32> -> vector<31x32xf32>
    %444 = arith.addf %419, %443 : vector<31x32xf32>
    %445 = vector.extract_strided_slice %367 {offsets = [31, 16], sizes = [31, 16], strides = [1, 1]} : vector<62x96xf32> to vector<31x16xf32>
    %446 = arith.truncf %445 : vector<31x16xf32> to vector<31x16xbf16>
    %447 = vector.extract_strided_slice %367 {offsets = [31, 48], sizes = [31, 16], strides = [1, 1]} : vector<62x96xf32> to vector<31x16xf32>
    %448 = arith.truncf %447 : vector<31x16xf32> to vector<31x16xbf16>
    %449 = vector.extract_strided_slice %367 {offsets = [31, 80], sizes = [31, 16], strides = [1, 1]} : vector<62x96xf32> to vector<31x16xf32>
    %450 = arith.truncf %449 : vector<31x16xf32> to vector<31x16xbf16>
    %cst_172 = arith.constant dense<0.000000e+00> : vector<31x31xf32>
    %451 = tpu.matmul %446, %448, %cst_172 {dimension_numbers = #tpu.dot_dimension_numbers<[1], [1], [0], [0], [0, 0, 1, 0], [], []>} : vector<31x16xbf16>, vector<31x16xbf16>, vector<31x31xf32> -> vector<31x31xf32>
    %cst_173 = arith.constant 2.500000e-01 : f32
    %452 = vector.broadcast %cst_173 : f32 to vector<31x31xf32>
    %453 = arith.mulf %451, %452 : vector<31x31xf32>
    %cst_174 = arith.constant dense<0xFF800000> : vector<31xf32>
    %454 = vector.multi_reduction <maximumf>, %453, %cst_174 [1] : vector<31x31xf32> to vector<31xf32>
    %455 = vector.shape_cast %454 : vector<31xf32> to vector<31x1xf32>
    %456 = vector.broadcast %455 : vector<31x1xf32> to vector<31x31xf32>
    %457 = arith.subf %453, %456 : vector<31x31xf32>
    %458 = math.exp %457 : vector<31x31xf32>
    %cst_175 = arith.constant dense<0.000000e+00> : vector<31xf32>
    %459 = vector.multi_reduction <add>, %458, %cst_175 [1] : vector<31x31xf32> to vector<31xf32>
    %460 = vector.shape_cast %459 : vector<31xf32> to vector<31x1xf32>
    %461 = tpu.reciprocal %460 {approx = true} : vector<31x1xf32> -> vector<31x1xf32>
    %462 = vector.broadcast %461 : vector<31x1xf32> to vector<31x31xf32>
    %463 = arith.mulf %458, %462 : vector<31x31xf32>
    %464 = arith.truncf %463 : vector<31x31xf32> to vector<31x31xbf16>
    %cst_176 = arith.constant dense<0.000000e+00> : vector<31x16xf32>
    %465 = tpu.matmul %464, %450, %cst_176 {dimension_numbers = #tpu.dot_dimension_numbers<[1], [0], [0], [1], [0, 0, 1, 1], [], []>} : vector<31x31xbf16>, vector<31x16xbf16>, vector<31x16xf32> -> vector<31x16xf32>
    %466 = arith.truncf %465 : vector<31x16xf32> to vector<31x16xbf16>
    %467 = vector.extract_strided_slice %359 {offsets = [16, 0], sizes = [16, 32], strides = [1, 1]} : vector<32x32xbf16> to vector<16x32xbf16>
    %cst_177 = arith.constant dense<0.000000e+00> : vector<31x32xf32>
    %468 = tpu.matmul %466, %467, %cst_177 {dimension_numbers = #tpu.dot_dimension_numbers<[1], [0], [0], [1], [0, 0, 1, 1], [], []>} : vector<31x16xbf16>, vector<16x32xbf16>, vector<31x32xf32> -> vector<31x32xf32>
    %469 = arith.addf %444, %468 : vector<31x32xf32>
    %470 = tpu.concatenate %418, %469 in 0 : vector<31x32xf32>, vector<31x32xf32> -> vector<62x32xf32>
    %471 = vector.broadcast %349 : vector<1x32xf32> to vector<62x32xf32>
    %472 = arith.addf %470, %471 : vector<62x32xf32>
    %473 = arith.addf %345, %472 : vector<62x32xf32>
    %cst_178 = arith.constant dense<0.000000e+00> : vector<62xf32>
    %474 = vector.multi_reduction <add>, %473, %cst_178 [1] : vector<62x32xf32> to vector<62xf32>
    %475 = vector.shape_cast %474 : vector<62xf32> to vector<62x1xf32>
    %cst_179 = arith.constant 3.200000e+01 : f32
    %476 = vector.broadcast %cst_179 : f32 to vector<62x1xf32>
    %477 = arith.divf %475, %476 : vector<62x1xf32>
    %478 = vector.broadcast %477 : vector<62x1xf32> to vector<62x32xf32>
    %479 = arith.subf %473, %478 : vector<62x32xf32>
    %480 = arith.mulf %479, %479 : vector<62x32xf32>
    %cst_180 = arith.constant dense<0.000000e+00> : vector<62xf32>
    %481 = vector.multi_reduction <add>, %480, %cst_180 [1] : vector<62x32xf32> to vector<62xf32>
    %482 = vector.shape_cast %481 : vector<62xf32> to vector<62x1xf32>
    %cst_181 = arith.constant 3.200000e+01 : f32
    %483 = vector.broadcast %cst_181 : f32 to vector<62x1xf32>
    %484 = arith.divf %482, %483 : vector<62x1xf32>
    %cst_182 = arith.constant 9.99999974E-6 : f32
    %485 = vector.broadcast %cst_182 : f32 to vector<62x1xf32>
    %486 = arith.addf %484, %485 : vector<62x1xf32>
    %487 = math.rsqrt %486 : vector<62x1xf32>
    %488 = vector.broadcast %487 : vector<62x1xf32> to vector<62x32xf32>
    %489 = arith.mulf %479, %488 : vector<62x32xf32>
    %490 = vector.broadcast %350 : vector<1x32xf32> to vector<62x32xf32>
    %491 = arith.mulf %489, %490 : vector<62x32xf32>
    %492 = vector.broadcast %351 : vector<1x32xf32> to vector<62x32xf32>
    %493 = arith.addf %491, %492 : vector<62x32xf32>
    %494 = arith.truncf %493 : vector<62x32xf32> to vector<62x32xbf16>
    %cst_183 = arith.constant dense<0.000000e+00> : vector<62x64xf32>
    %495 = tpu.matmul %494, %361, %cst_183 {dimension_numbers = #tpu.dot_dimension_numbers<[1], [0], [0], [1], [0, 0, 1, 1], [], []>} : vector<62x32xbf16>, vector<32x64xbf16>, vector<62x64xf32> -> vector<62x64xf32>
    %496 = vector.broadcast %352 : vector<1x64xf32> to vector<62x64xf32>
    %497 = arith.addf %495, %496 : vector<62x64xf32>
    %cst_184 = arith.constant 0.000000e+00 : f32
    %498 = vector.broadcast %cst_184 : f32 to vector<62x64xf32>
    %499 = arith.maximumf %497, %498 : vector<62x64xf32>
    %500 = arith.truncf %499 : vector<62x64xf32> to vector<62x64xbf16>
    %cst_185 = arith.constant dense<0.000000e+00> : vector<62x32xf32>
    %501 = tpu.matmul %500, %363, %cst_185 {dimension_numbers = #tpu.dot_dimension_numbers<[1], [0], [0], [1], [0, 0, 1, 1], [], []>} : vector<62x64xbf16>, vector<64x32xbf16>, vector<62x32xf32> -> vector<62x32xf32>
    %502 = vector.broadcast %353 : vector<1x32xf32> to vector<62x32xf32>
    %503 = arith.addf %501, %502 : vector<62x32xf32>
    %504 = arith.addf %493, %503 : vector<62x32xf32>
    %cst_186 = arith.constant dense<0.000000e+00> : vector<62xf32>
    %505 = vector.multi_reduction <add>, %504, %cst_186 [1] : vector<62x32xf32> to vector<62xf32>
    %506 = vector.shape_cast %505 : vector<62xf32> to vector<62x1xf32>
    %cst_187 = arith.constant 3.200000e+01 : f32
    %507 = vector.broadcast %cst_187 : f32 to vector<62x1xf32>
    %508 = arith.divf %506, %507 : vector<62x1xf32>
    %509 = vector.broadcast %508 : vector<62x1xf32> to vector<62x32xf32>
    %510 = arith.subf %504, %509 : vector<62x32xf32>
    %511 = arith.mulf %510, %510 : vector<62x32xf32>
    %cst_188 = arith.constant dense<0.000000e+00> : vector<62xf32>
    %512 = vector.multi_reduction <add>, %511, %cst_188 [1] : vector<62x32xf32> to vector<62xf32>
    %513 = vector.shape_cast %512 : vector<62xf32> to vector<62x1xf32>
    %cst_189 = arith.constant 3.200000e+01 : f32
    %514 = vector.broadcast %cst_189 : f32 to vector<62x1xf32>
    %515 = arith.divf %513, %514 : vector<62x1xf32>
    %cst_190 = arith.constant 9.99999974E-6 : f32
    %516 = vector.broadcast %cst_190 : f32 to vector<62x1xf32>
    %517 = arith.addf %515, %516 : vector<62x1xf32>
    %518 = math.rsqrt %517 : vector<62x1xf32>
    %519 = vector.broadcast %518 : vector<62x1xf32> to vector<62x32xf32>
    %520 = arith.mulf %510, %519 : vector<62x32xf32>
    %521 = vector.broadcast %354 : vector<1x32xf32> to vector<62x32xf32>
    %522 = arith.mulf %520, %521 : vector<62x32xf32>
    %523 = vector.broadcast %355 : vector<1x32xf32> to vector<62x32xf32>
    %524 = arith.addf %522, %523 : vector<62x32xf32>
    %525 = vector.extract_strided_slice %524 {offsets = [0, 0], sizes = [31, 32], strides = [1, 1]} : vector<62x32xf32> to vector<31x32xf32>
    %c0_191 = arith.constant 0 : index
    %c0_192 = arith.constant 0 : index
    %c0_193 = arith.constant 0 : index
    %526 = vector.load %arg16[%c0_191, %c0_192, %c0_193] : memref<2x31x32xf32, #tpu.memory_space<vmem>>, vector<1x31x32xf32>
    %527 = vector.shape_cast %526 : vector<1x31x32xf32> to vector<31x32xf32>
    %528 = vector.shape_cast %525 : vector<31x32xf32> to vector<1x31x32xf32>
    tpu.vector_store %arg16[%c0_191, %c0_192, %c0_193], %528 {strides = array<i32>} : memref<2x31x32xf32, #tpu.memory_space<vmem>>, vector<1x31x32xf32>,
    %529 = vector.extract_strided_slice %524 {offsets = [31, 0], sizes = [31, 32], strides = [1, 1]} : vector<62x32xf32> to vector<31x32xf32>
    %c1_194 = arith.constant 1 : index
    %c0_195 = arith.constant 0 : index
    %c0_196 = arith.constant 0 : index
    %530 = vector.load %arg16[%c1_194, %c0_195, %c0_196] : memref<2x31x32xf32, #tpu.memory_space<vmem>>, vector<1x31x32xf32>
    %531 = vector.shape_cast %530 : vector<1x31x32xf32> to vector<31x32xf32>
    %532 = vector.shape_cast %529 : vector<31x32xf32> to vector<1x31x32xf32>
    tpu.vector_store %arg16[%c1_194, %c0_195, %c0_196], %532 {strides = array<i32>} : memref<2x31x32xf32, #tpu.memory_space<vmem>>, vector<1x31x32xf32>,
    %c0_197 = arith.constant 0 : index
    %c0_198 = arith.constant 0 : index
    %533 = vector.load %arg15[%c0_197, %c0_198] : memref<6x32xf32, #tpu.memory_space<vmem>>, vector<6x32xf32>
    %534 = vector.extract_strided_slice %524 {offsets = [0, 0], sizes = [1, 32], strides = [1, 1]} : vector<62x32xf32> to vector<1x32xf32>
    %535 = vector.extract_strided_slice %524 {offsets = [31, 0], sizes = [1, 32], strides = [1, 1]} : vector<62x32xf32> to vector<1x32xf32>
    %536 = tpu.concatenate %534, %535 in 0 : vector<1x32xf32>, vector<1x32xf32> -> vector<2x32xf32>
    %537 = vector.extract_strided_slice %533 {offsets = [0, 0], sizes = [1, 32], strides = [1, 1]} : vector<6x32xf32> to vector<1x32xf32>
    %538 = vector.extract_strided_slice %533 {offsets = [1, 0], sizes = [1, 32], strides = [1, 1]} : vector<6x32xf32> to vector<1x32xf32>
    %cst_199 = arith.constant dense<0.000000e+00> : vector<2xf32>
    %539 = vector.multi_reduction <add>, %536, %cst_199 [1] : vector<2x32xf32> to vector<2xf32>
    %540 = vector.shape_cast %539 : vector<2xf32> to vector<2x1xf32>
    %cst_200 = arith.constant 3.200000e+01 : f32
    %541 = vector.broadcast %cst_200 : f32 to vector<2x1xf32>
    %542 = arith.divf %540, %541 : vector<2x1xf32>
    %543 = vector.broadcast %542 : vector<2x1xf32> to vector<2x32xf32>
    %544 = arith.subf %536, %543 : vector<2x32xf32>
    %545 = arith.mulf %544, %544 : vector<2x32xf32>
    %cst_201 = arith.constant dense<0.000000e+00> : vector<2xf32>
    %546 = vector.multi_reduction <add>, %545, %cst_201 [1] : vector<2x32xf32> to vector<2xf32>
    %547 = vector.shape_cast %546 : vector<2xf32> to vector<2x1xf32>
    %cst_202 = arith.constant 3.200000e+01 : f32
    %548 = vector.broadcast %cst_202 : f32 to vector<2x1xf32>
    %549 = arith.divf %547, %548 : vector<2x1xf32>
    %cst_203 = arith.constant 9.99999974E-6 : f32
    %550 = vector.broadcast %cst_203 : f32 to vector<2x1xf32>
    %551 = arith.addf %549, %550 : vector<2x1xf32>
    %552 = math.rsqrt %551 : vector<2x1xf32>
    %553 = vector.broadcast %552 : vector<2x1xf32> to vector<2x32xf32>
    %554 = arith.mulf %544, %553 : vector<2x32xf32>
    %555 = vector.broadcast %537 : vector<1x32xf32> to vector<2x32xf32>
    %556 = arith.mulf %554, %555 : vector<2x32xf32>
    %557 = vector.broadcast %538 : vector<1x32xf32> to vector<2x32xf32>
    %558 = arith.addf %556, %557 : vector<2x32xf32>
    %559 = arith.truncf %558 : vector<2x32xf32> to vector<2x32xbf16>
    %c0_204 = arith.constant 0 : index
    %c0_205 = arith.constant 0 : index
    %560 = vector.load %arg13[%c0_204, %c0_205] : memref<32x32xbf16, #tpu.memory_space<vmem>>, vector<32x32xbf16>
    %cst_206 = arith.constant dense<0.000000e+00> : vector<2x32xf32>
    %561 = tpu.matmul %559, %560, %cst_206 {dimension_numbers = #tpu.dot_dimension_numbers<[1], [0], [0], [1], [0, 0, 1, 1], [], []>} : vector<2x32xbf16>, vector<32x32xbf16>, vector<2x32xf32> -> vector<2x32xf32>
    %562 = vector.extract_strided_slice %533 {offsets = [2, 0], sizes = [1, 32], strides = [1, 1]} : vector<6x32xf32> to vector<1x32xf32>
    %563 = vector.broadcast %562 : vector<1x32xf32> to vector<2x32xf32>
    %564 = arith.addf %561, %563 : vector<2x32xf32>
    %565 = vector.extract_strided_slice %533 {offsets = [3, 0], sizes = [1, 32], strides = [1, 1]} : vector<6x32xf32> to vector<1x32xf32>
    %566 = vector.extract_strided_slice %533 {offsets = [4, 0], sizes = [1, 32], strides = [1, 1]} : vector<6x32xf32> to vector<1x32xf32>
    %cst_207 = arith.constant dense<0.000000e+00> : vector<2xf32>
    %567 = vector.multi_reduction <add>, %564, %cst_207 [1] : vector<2x32xf32> to vector<2xf32>
    %568 = vector.shape_cast %567 : vector<2xf32> to vector<2x1xf32>
    %cst_208 = arith.constant 3.200000e+01 : f32
    %569 = vector.broadcast %cst_208 : f32 to vector<2x1xf32>
    %570 = arith.divf %568, %569 : vector<2x1xf32>
    %571 = vector.broadcast %570 : vector<2x1xf32> to vector<2x32xf32>
    %572 = arith.subf %564, %571 : vector<2x32xf32>
    %573 = arith.mulf %572, %572 : vector<2x32xf32>
    %cst_209 = arith.constant dense<0.000000e+00> : vector<2xf32>
    %574 = vector.multi_reduction <add>, %573, %cst_209 [1] : vector<2x32xf32> to vector<2xf32>
    %575 = vector.shape_cast %574 : vector<2xf32> to vector<2x1xf32>
    %cst_210 = arith.constant 3.200000e+01 : f32
    %576 = vector.broadcast %cst_210 : f32 to vector<2x1xf32>
    %577 = arith.divf %575, %576 : vector<2x1xf32>
    %cst_211 = arith.constant 9.99999974E-6 : f32
    %578 = vector.broadcast %cst_211 : f32 to vector<2x1xf32>
    %579 = arith.addf %577, %578 : vector<2x1xf32>
    %580 = math.rsqrt %579 : vector<2x1xf32>
    %581 = vector.broadcast %580 : vector<2x1xf32> to vector<2x32xf32>
    %582 = arith.mulf %572, %581 : vector<2x32xf32>
    %583 = vector.broadcast %565 : vector<1x32xf32> to vector<2x32xf32>
    %584 = arith.mulf %582, %583 : vector<2x32xf32>
    %585 = vector.broadcast %566 : vector<1x32xf32> to vector<2x32xf32>
    %586 = arith.addf %584, %585 : vector<2x32xf32>
    %587 = arith.truncf %586 : vector<2x32xf32> to vector<2x32xbf16>
    %c0_212 = arith.constant 0 : index
    %c0_213 = arith.constant 0 : index
    %588 = vector.load %arg14[%c0_212, %c0_213] : memref<32x4xbf16, #tpu.memory_space<vmem>>, vector<32x4xbf16>
    %cst_214 = arith.constant dense<0.000000e+00> : vector<2x4xf32>
    %589 = tpu.matmul %587, %588, %cst_214 {dimension_numbers = #tpu.dot_dimension_numbers<[1], [0], [0], [1], [0, 0, 1, 1], [], []>} : vector<2x32xbf16>, vector<32x4xbf16>, vector<2x4xf32> -> vector<2x4xf32>
    %590 = vector.extract_strided_slice %533 {offsets = [5, 0], sizes = [1, 4], strides = [1, 1]} : vector<6x32xf32> to vector<1x4xf32>
    %591 = vector.broadcast %590 : vector<1x4xf32> to vector<2x4xf32>
    %592 = arith.addf %589, %591 : vector<2x4xf32>
    %593 = vector.extract_strided_slice %592 {offsets = [0, 0], sizes = [1, 4], strides = [1, 1]} : vector<2x4xf32> to vector<1x4xf32>
    %c0_215 = arith.constant 0 : index
    %c0_216 = arith.constant 0 : index
    %c0_217 = arith.constant 0 : index
    %594 = vector.load %arg17[%c0_215, %c0_216, %c0_217] : memref<2x1x4xf32, #tpu.memory_space<vmem>>, vector<1x1x4xf32>
    %595 = vector.shape_cast %594 : vector<1x1x4xf32> to vector<1x4xf32>
    %596 = vector.shape_cast %593 : vector<1x4xf32> to vector<1x1x4xf32>
    tpu.vector_store %arg17[%c0_215, %c0_216, %c0_217], %596 {strides = array<i32>} : memref<2x1x4xf32, #tpu.memory_space<vmem>>, vector<1x1x4xf32>,
    %597 = vector.extract_strided_slice %592 {offsets = [1, 0], sizes = [1, 4], strides = [1, 1]} : vector<2x4xf32> to vector<1x4xf32>
    %c1_218 = arith.constant 1 : index
    %c0_219 = arith.constant 0 : index
    %c0_220 = arith.constant 0 : index
    %598 = vector.load %arg17[%c1_218, %c0_219, %c0_220] : memref<2x1x4xf32, #tpu.memory_space<vmem>>, vector<1x1x4xf32>
    %599 = vector.shape_cast %598 : vector<1x1x4xf32> to vector<1x4xf32>
    %600 = vector.shape_cast %597 : vector<1x4xf32> to vector<1x1x4xf32>
    tpu.vector_store %arg17[%c1_218, %c0_219, %c0_220], %600 {strides = array<i32>} : memref<2x1x4xf32, #tpu.memory_space<vmem>>, vector<1x1x4xf32>,
    return
  }
  func.func @transform_0(%arg0: i32) -> (i32, i32, i32) {
    %c0_i32 = arith.constant 0 : i32
    %c0_i32_0 = arith.constant 0 : i32
    %c0_i32_1 = arith.constant 0 : i32
    return %arg0, %c0_i32, %c0_i32_0 : i32, i32, i32
  }
  func.func @transform_1(%arg0: i32) -> (i32, i32) {
    %c0_i32 = arith.constant 0 : i32
    %c0_i32_0 = arith.constant 0 : i32
    %c0_i32_1 = arith.constant 0 : i32
    return %c0_i32, %c0_i32_0 : i32, i32
  }
  func.func @transform_2(%arg0: i32) -> (i32, i32, i32) {
    %c0_i32 = arith.constant 0 : i32
    %c0_i32_0 = arith.constant 0 : i32
    %c0_i32_1 = arith.constant 0 : i32
    %c0_i32_2 = arith.constant 0 : i32
    return %c0_i32, %c0_i32_0, %c0_i32_1 : i32, i32, i32
  }
  func.func @transform_3(%arg0: i32) -> (i32, i32) {
    %c0_i32 = arith.constant 0 : i32
    %c0_i32_0 = arith.constant 0 : i32
    %c0_i32_1 = arith.constant 0 : i32
    return %c0_i32, %c0_i32_0 : i32, i32
  }
  func.func @transform_4(%arg0: i32) -> (i32, i32) {
    %c0_i32 = arith.constant 0 : i32
    %c0_i32_0 = arith.constant 0 : i32
    %c0_i32_1 = arith.constant 0 : i32
    return %c0_i32, %c0_i32_0 : i32, i32
  }
  func.func @transform_5(%arg0: i32) -> (i32, i32, i32) {
    %c0_i32 = arith.constant 0 : i32
    %c0_i32_0 = arith.constant 0 : i32
    %c0_i32_1 = arith.constant 0 : i32
    %c0_i32_2 = arith.constant 0 : i32
    return %c0_i32, %c0_i32_0, %c0_i32_1 : i32, i32, i32
  }
  func.func @transform_6(%arg0: i32) -> (i32, i32) {
    %c0_i32 = arith.constant 0 : i32
    %c0_i32_0 = arith.constant 0 : i32
    %c0_i32_1 = arith.constant 0 : i32
    return %c0_i32, %c0_i32_0 : i32, i32
  }
  func.func @transform_7(%arg0: i32) -> (i32, i32, i32) {
    %c0_i32 = arith.constant 0 : i32
    %c0_i32_0 = arith.constant 0 : i32
    %c0_i32_1 = arith.constant 0 : i32
    %c0_i32_2 = arith.constant 0 : i32
    return %c0_i32, %c0_i32_0, %c0_i32_1 : i32, i32, i32
  }
  func.func @transform_8(%arg0: i32) -> (i32, i32, i32) {
    %c0_i32 = arith.constant 0 : i32
    %c0_i32_0 = arith.constant 0 : i32
    %c0_i32_1 = arith.constant 0 : i32
    %c0_i32_2 = arith.constant 0 : i32
    return %c0_i32, %c0_i32_0, %c0_i32_1 : i32, i32, i32
  }
  func.func @transform_9(%arg0: i32) -> (i32, i32, i32) {
    %c0_i32 = arith.constant 0 : i32
    %c0_i32_0 = arith.constant 0 : i32
    %c0_i32_1 = arith.constant 0 : i32
    %c0_i32_2 = arith.constant 0 : i32
    return %c0_i32, %c0_i32_0, %c0_i32_1 : i32, i32, i32
  }
  func.func @transform_10(%arg0: i32) -> (i32, i32, i32) {
    %c0_i32 = arith.constant 0 : i32
    %c0_i32_0 = arith.constant 0 : i32
    %c0_i32_1 = arith.constant 0 : i32
    %c0_i32_2 = arith.constant 0 : i32
    return %c0_i32, %c0_i32_0, %c0_i32_1 : i32, i32, i32
  }
  func.func @transform_11(%arg0: i32) -> (i32, i32, i32) {
    %c0_i32 = arith.constant 0 : i32
    %c0_i32_0 = arith.constant 0 : i32
    %c0_i32_1 = arith.constant 0 : i32
    %c0_i32_2 = arith.constant 0 : i32
    return %c0_i32, %c0_i32_0, %c0_i32_1 : i32, i32, i32
  }
  func.func @transform_12(%arg0: i32) -> (i32, i32) {
    %c0_i32 = arith.constant 0 : i32
    %c0_i32_0 = arith.constant 0 : i32
    %c0_i32_1 = arith.constant 0 : i32
    return %c0_i32, %c0_i32_0 : i32, i32
  }
  func.func @transform_13(%arg0: i32) -> (i32, i32) {
    %c0_i32 = arith.constant 0 : i32
    %c0_i32_0 = arith.constant 0 : i32
    %c0_i32_1 = arith.constant 0 : i32
    return %c0_i32, %c0_i32_0 : i32, i32
  }
  func.func @transform_14(%arg0: i32) -> (i32, i32) {
    %c0_i32 = arith.constant 0 : i32
    %c0_i32_0 = arith.constant 0 : i32
    %c0_i32_1 = arith.constant 0 : i32
    return %c0_i32, %c0_i32_0 : i32, i32
  }
  func.func @transform_15(%arg0: i32) -> (i32, i32, i32) {
    %c0_i32 = arith.constant 0 : i32
    %c0_i32_0 = arith.constant 0 : i32
    %c0_i32_1 = arith.constant 0 : i32
    return %arg0, %c0_i32, %c0_i32_0 : i32, i32, i32
  }
  func.func @transform_16(%arg0: i32) -> (i32, i32, i32) {
    %c0_i32 = arith.constant 0 : i32
    %c0_i32_0 = arith.constant 0 : i32
    %c0_i32_1 = arith.constant 0 : i32
    return %arg0, %c0_i32, %c0_i32_0 : i32, i32, i32
  }
}

</mosaic_0001>

<bundles_post_ra>
// kernel: one_d_cnn_transformer_forward.1
= control target key start
LH: loop header
LB: loop body
LE: loop exit
PB: predicated region body
PF: predicated region fallthrough
CT: control target
= control target key end

     0   :  { %s7205_s0 = inlined_call_operand.vmem [shape: f32[2,64,1], index: 0, kind: input, shape index: {}]   ;;  %s7206_s1 = inlined_call_operand.vmem [shape: f32[1,32], index: 1, kind: input, shape index: {}]   ;;  %s7207_s2 = inlined_call_operand.vmem [shape: f32[3,1,32], index: 2, kind: input, shape index: {}]   ;;  %s7208_s3 = inlined_call_operand.vmem [shape: f32[3,32], index: 3, kind: input, shape index: {}]   ;;  %s7209_s4 = inlined_call_operand.vmem [shape: bf16[128,32], index: 4, kind: input, shape index: {}]   ;;  %s7210_s5 = inlined_call_operand.vmem [shape: bf16[1,128,32], index: 5, kind: input, shape index: {}]   ;;  %s7211_s6 = inlined_call_operand.vmem [shape: f32[31,32], index: 6, kind: input, shape index: {}]   ;;  %s7212_s7 = inlined_call_operand.vmem [shape: bf16[2,32,96], index: 7, kind: input, shape index: {}]   ;;  %s7213_s8 = inlined_call_operand.vmem [shape: bf16[2,32,32], index: 8, kind: input, shape index: {}]   ;;  %s7214_s9 = inlined_call_operand.vmem [shape: bf16[2,32,64], index: 9, kind: input, shape index: {}]   ;;  %s7215_s10 = inlined_call_operand.vmem [shape: bf16[2,64,32], index: 10, kind: input, shape index: {}]   ;;  %s7216_s11 = inlined_call_operand.vmem [shape: f32[2,8,96], index: 11, kind: input, shape index: {}]   ;;  %s7217_s12 = inlined_call_operand.vmem [shape: bf16[32,32], index: 12, kind: input, shape index: {}]   ;;  %s7218_s13 = inlined_call_operand.vmem [shape: bf16[32,4], index: 13, kind: input, shape index: {}]   ;;  %s7219_s14 = inlined_call_operand.vmem [shape: f32[6,32], index: 14, kind: input, shape index: {}]   ;;  %s7220_s15 = inlined_call_operand.vmem [shape: f32[2,31,32], index: 15, kind: output, shape index: {0}]   ;;  %s7221_s16 = inlined_call_operand.hbm [shape: f32[2,1,4], index: 16, kind: output, shape index: {1}]  }
   0x1   :  { %7227 = sst [smem:[#allocation5_spill]] %s7205_s0 }
   0x2   :  { %s7228_s23 = sld [smem:[#allocation5_spill]]  ;;  %v5071_v2 = vmov 0  }
   0x3   :  { %4673 = vset.pattern.permute.xlu1 %v5071_v2  ;;  %4672 = vset.pattern.permute.xlu0 %v5071_v2 }
   0x4   :  { %4674 = vset.pattern.permute.xlu2 %v5071_v2 }
   0x8   :  { %v56_v0 = vld [vmem:[%s7228_s23 + $0x10] sm:$0xff]  ;;  %v54_v1 = vld [vmem:[%s7228_s23] sm:$0xff] }
   0x9   :  { %75 = vperm.xlu1 %4673, %v56_v0   ;;  %65 = vperm.xlu0 %4672, %v54_v1   ;;  %v58_v3 = vld [vmem:[%s7228_s23 + $0x20] sm:$0xff] }
   0xa   :  { %85 = vperm.xlu2 %4674, %v58_v3  }
   0xb   :  { %22 = vsyncpa [#allocation3], 0  ;;  %v57_v4 = vld [vmem:[%s7228_s23 + $0x18] sm:$0xff]  ;;  %v55_v5 = vld [vmem:[%s7228_s23 + $0x8] sm:$0xff]  ;;  %vm7224_vm0 = vcmask 1046528   ;;  %vm196_vm1 = vcmask 1045504  }
   0xc   :  { %v59_v6 = vld [vmem:[%s7228_s23 + $0x28] sm:$0xff]  ;;  %v61_v7 = vld [vmem:[%s7228_s23 + $0x38] sm:$0xff]  ;;  %v60_v8 = vld [vmem:[%s7228_s23 + $0x30] sm:$0xff]  ;;  %vm7223_vm3 = vcmask 1040384   ;;  %s5072_s17 = smov 32   ;;  %s5073_s18 = smov 64  }
   0xd   :  { %v5196_v10 = vld [vmem:[%s7207_s2 + $0x1] ss:$0 sm:$0xff]  ;;  %v5202_v12 = vld [vmem:[%s7207_s2 + $0x2] ss:$0 sm:$0xff]  ;;  %v5207_v14 = vld [vmem:[%s7207_s2] ss:$0 sm:$0xff] }
   0xe   :  { %v5228_v26 = vld [vmem:[%s7208_s3] ss:$0 sm:$0xff]  ;;  %vm376_vm11 = vcmask 261120   ;;  %vm385_vm12 = vcmask 523264   ;;  %vm394_vm13 = vcmask 785408   ;;  %s5075_s19 = smov 112  }
   0xf   :  { %vm5398_vm14 = vmpackc.low %vm394_vm13, %vm394_vm13  ;;  %s5076_s20 = smov 80   ;;  %s5077_s21 = smov 96  }
  0x11   :  { %80 = vperm.xlu1 %4673, %v57_v4   ;;  %70 = vperm.xlu0 %4672, %v55_v5  }
  0x12   :  { %90 = vperm.xlu2 %4674, %v59_v6  }
  0x19   :  { %100 = vperm.xlu1 %4673, %v61_v7   ;;  %95 = vperm.xlu0 %4672, %v60_v8  }
  0x64   :  { %v86_v9 = vpop.permute.xlu2 %85 }
  0x65   :  { %v131_v11 = vmul.f32 %v5196_v10, %v86_v9  ;;  %v184_v18 = vmul.f32 %v5202_v12, %v86_v9  ;;  %v110_v19 = vmul.f32 %v5207_v14, %v86_v9 }
  0x67   :  { %v151_v15 = vrot.slane %v131_v11, 1  ;;  %v204_v23 = vrot.slane %v184_v18, 2 }
  0x6c   :  { %v91_v13 = vpop.permute.xlu2 %90 }
  0x6d   :  { %v5210_v16 = vmul.f32 %v5196_v10, %v91_v13  ;;  %v5213_v17 = vmul.f32 %v5202_v12, %v91_v13  ;;  %v5235_v35 = vmul.f32 %v5207_v14, %v91_v13 }
  0x6f   :  { %v153_v20 = vrot.slane %v5210_v16, 1  ;;  %v206_v21 = vrot.slane %v5213_v17, 2 }
  0x71   :  { %v154_v22 = vsel %vm7224_vm0, %v151_v15, %v153_v20  ;;  %v207_v25 = vsel %vm196_vm1, %v204_v23, %v206_v21 }
  0x72   :  { %v171_v24 = vadd.f32 %v154_v22, %v110_v19 }
  0x74   :  { %v224_v27 = vadd.f32 %v207_v25, %v171_v24 }
  0x76   :  { %v234_v30 = vadd.f32 %v5228_v26, %v224_v27 }
  0x78   :  { %v250_v31 = vmul.f32 0.01, %v234_v30  ;;  %vm242_vm2 = vcmp.gt.f32.partialorder %v234_v30, 0.0 }
  0x7a   :  { %v5240_v41 = vsel %vm242_vm2, %v234_v30, %v250_v31 }
  0x7b   :  { %v76_v28 = vpop.permute.xlu1 %75  ;;  %v66_v29 = vpop.permute.xlu0 %65  ;;  %v278_v13 = vrot.slane %v5240_v41, 7 }
  0x7c   :  { %v129_v32 = vmul.f32 %v5196_v10, %v76_v28  ;;  %v182_v33 = vmul.f32 %v5202_v12, %v76_v28  ;;  %v127_v34 = vmul.f32 %v5196_v10, %v66_v29  ;;  %v180_v38 = vmul.f32 %v5202_v12, %v66_v29 }
  0x7d   :  { %v108_v42 = vmul.f32 %v5207_v14, %v76_v28  ;;  %v106_v43 = vmul.f32 %v5207_v14, %v66_v29 }
  0x7e   :  { %v147_v46 = vrot.slane %v129_v32, 1  ;;  %v200_v47 = vrot.slane %v182_v33, 2  ;;  %v144_v50 = vrot.slane %v127_v34, 1  ;;  %v197_v54 = vrot.slane %v180_v38, 2 }
  0x83   :  { %v81_v36 = vpop.permute.xlu1 %80  ;;  %v71_v37 = vpop.permute.xlu0 %70 }
  0x84   :  { %v130_v39 = vmul.f32 %v5196_v10, %v81_v36  ;;  %v183_v40 = vmul.f32 %v5202_v12, %v81_v36  ;;  %v128_v44 = vmul.f32 %v5196_v10, %v71_v37  ;;  %v181_v45 = vmul.f32 %v5202_v12, %v71_v37 }
  0x85   :  { %v109_v51 = vmul.f32 %v5207_v14, %v81_v36  ;;  %v107_v57 = vmul.f32 %v5207_v14, %v71_v37 }
  0x86   :  { %v149_v48 = vrot.slane %v130_v39, 1  ;;  %v202_v49 = vrot.slane %v183_v40, 2  ;;  %v145_v52 = vrot.slane %v128_v44, 1  ;;  %v198_v53 = vrot.slane %v181_v45, 2 }
  0x88   :  { %v150_v55 = vsel %vm7224_vm0, %v147_v46, %v149_v48  ;;  %v152_v56 = vsel %vm7224_vm0, %v149_v48, %v151_v15  ;;  %v146_v60 = vsel %vm7224_vm0, %v144_v50, %v145_v52  ;;  %v148_v61 = vsel %vm7224_vm0, %v145_v52, %v147_v46 }
  0x89   :  { %v169_v58 = vadd.f32 %v150_v55, %v108_v42  ;;  %v170_v59 = vadd.f32 %v152_v56, %v109_v51  ;;  %v203_v62 = vsel %vm196_vm1, %v200_v47, %v202_v49  ;;  %v205_v63 = vsel %vm196_vm1, %v202_v49, %v204_v23 }
  0x8a   :  { %v167_v0 = vadd.f32 %v146_v60, %v106_v43  ;;  %v168_v1 = vadd.f32 %v148_v61, %v107_v57  ;;  %v199_v4 = vsel %vm196_vm1, %v197_v54, %v198_v53  ;;  %v201_v5 = vsel %vm196_vm1, %v198_v53, %v200_v47 }
  0x8b   :  { %v222_v2 = vadd.f32 %v203_v62, %v169_v58  ;;  %v223_v3 = vadd.f32 %v205_v63, %v170_v59  ;;  %v101_v6 = vpop.permute.xlu1 %100  ;;  %v96_v7 = vpop.permute.xlu0 %95 }
  0x8c   :  { %v220_v8 = vadd.f32 %v199_v4, %v167_v0  ;;  %v221_v9 = vadd.f32 %v201_v5, %v168_v1  ;;  %v134_v11 = vmul.f32 %v5196_v10, %v101_v6  ;;  %v113_v19 = vmul.f32 %v5207_v14, %v101_v6 }
  0x8d   :  { %v232_v15 = vadd.f32 %v5228_v26, %v222_v2  ;;  %v233_v18 = vadd.f32 %v5228_v26, %v223_v3  ;;  %v187_v22 = vmul.f32 %v5202_v12, %v101_v6  ;;  %v133_v27 = vmul.f32 %v5196_v10, %v96_v7 }
  0x8e   :  { %v230_v23 = vadd.f32 %v5228_v26, %v220_v8  ;;  %v231_v24 = vadd.f32 %v5228_v26, %v221_v9  ;;  %v157_v25 = vrot.slane %v134_v11, 1  ;;  %v112_v32 = vmul.f32 %v5207_v14, %v96_v7 }
  0x8f   :  { %vm240_vm4 = vcmp.gt.f32.partialorder %v232_v15, 0.0  ;;  %vm241_vm5 = vcmp.gt.f32.partialorder %v233_v18, 0.0  ;;  %v248_v28 = vmul.f32 0.01, %v232_v15  ;;  %v249_v29 = vmul.f32 0.01, %v233_v18 }
  0x90   :  { %vm239_vm6 = vcmp.gt.f32.partialorder %v231_v24, 0.0  ;;  %v247_v30 = vmul.f32 0.01, %v231_v24  ;;  %v174_v31 = vadd.f32 %v157_v25, %v113_v19  ;;  %v210_v34 = vrot.slane %v187_v22, 2 }
  0x91   :  { %v257_v33 = vsel %vm241_vm5, %v233_v18, %v249_v29  ;;  %v155_v36 = vrot.slane %v133_v27, 1  ;;  %v186_v37 = vmul.f32 %v5202_v12, %v96_v7  ;;  %v246_v38 = vmul.f32 0.01, %v230_v23 }
  0x92   :  { %v255_v39 = vsel %vm239_vm6, %v231_v24, %v247_v30  ;;  %v256_v40 = vsel %vm240_vm4, %v232_v15, %v248_v28  ;;  %v276_v42 = vrot.slane %v257_v33, 7  ;;  %v227_v43 = vadd.f32 %v210_v34, %v174_v31 }
  0x93   :  { %v156_v44 = vsel %vm7224_vm0, %v153_v20, %v155_v36  ;;  %v158_v45 = vsel %vm7224_vm0, %v155_v36, %v157_v25  ;;  %v208_v46 = vrot.slane %v186_v37, 2  ;;  %v272_v49 = vrot.slane %v255_v39, 7 }
  0x94   :  { %v172_v47 = vadd.f32 %v156_v44, %v5235_v35  ;;  %v173_v48 = vadd.f32 %v158_v45, %v112_v32  ;;  %v274_v50 = vrot.slane %v256_v40, 7  ;;  %v5279_v16 = vsel %vm7223_vm3, %v276_v42, %v278_v13 }
  0x95   :  { %v209_v51 = vsel %vm196_vm1, %v206_v21, %v208_v46  ;;  %v211_v52 = vsel %vm196_vm1, %v208_v46, %v210_v34  ;;  %vm238_vm7 = vcmp.gt.f32.partialorder %v230_v23, 0.0  ;;  %v237_v17 = vadd.f32 %v5228_v26, %v227_v43 }
  0x96   :  { %v225_v20 = vadd.f32 %v209_v51, %v172_v47  ;;  %v226_v53 = vadd.f32 %v211_v52, %v173_v48  ;;  %v5282_v54 = vsel %vm7223_vm3, %v272_v49, %v274_v50  ;;  %v5285_v35 = vsel %vm7223_vm3, %v274_v50, %v276_v42  ;;  %v4624_v52 = vld [vmem:[%s7209_s4 + $0x38] sm:$0xff] }
  0x97   :  { %v301_v21 = vrot.slane %v5282_v54, 1  ;;  %v303_v55 = vrot.slane %v5285_v35, 1  ;;  %v305_v58 = vrot.slane %v5279_v16, 1  ;;  %v254_v59 = vsel %vm238_vm7, %v230_v23, %v246_v38  ;;  %473 = vmatpush.bf16.msra.mxu0 %v4624_v52  ;;  %1220 = vmatpush.bf16.msra.mxu3 %v4624_v52 }
  0x98   :  { %v235_v56 = vadd.f32 %v5228_v26, %v225_v20  ;;  %v236_v57 = vadd.f32 %v5228_v26, %v226_v53  ;;  %v271_v61 = vrot.slane %v254_v59, 7  ;;  %v340_v62 = vrot.slane %v5282_v54, 2  ;;  %v4384_v20 = vld [vmem:[%s7228_s23 + $0x40] sm:$0xff]  ;;  %v4389_v59 = vld [vmem:[%s7228_s23 + $0x68] sm:$0xff] }
  0x99   :  { %v304_v60 = vsel %vm7224_vm0, %v301_v21, %v303_v55  ;;  %vm245_vm10 = vcmp.gt.f32.partialorder %v237_v17, 0.0  ;;  %v306_v1 = vsel %vm7224_vm0, %v303_v55, %v305_v58  ;;  %v253_v8 = vmul.f32 0.01, %v237_v17 }
  0x9a   :  { %vm243_vm8 = vcmp.gt.f32.partialorder %v235_v56, 0.0  ;;  %vm244_vm9 = vcmp.gt.f32.partialorder %v236_v57, 0.0  ;;  %v251_v63 = vmul.f32 0.01, %v235_v56  ;;  %v252_v0 = vmul.f32 0.01, %v236_v57 }
  0x9b   :  { %v5297_v2 = vsel %vm7223_vm3, %v271_v61, %v272_v49  ;;  %v5300_v3 = vsel %vm7223_vm3, 0.0, %v271_v61  ;;  %v4685_v5 = vpack.i.bf16 %v306_v1, %v304_v60  ;;  %v342_v28 = vrot.slane %v5285_v35, 2  ;;  %v4388_v60 = vld [vmem:[%s7228_s23 + $0x60] sm:$0xff]  ;;  %v4390_v61 = vld [vmem:[%s7228_s23 + $0x70] sm:$0xff]  ;;  %v4620_v1 = vld [vmem:[%s7209_s4 + $0x18] sm:$0xff] }
  0x9c   :  { %v260_v4 = vsel %vm244_vm9, %v236_v57, %v252_v0  ;;  %v337_v6 = vrot.slane %v5300_v3, 2  ;;  %v338_v7 = vrot.slane %v5297_v2, 2  ;;  %v298_v9 = vrot.slane %v5300_v3, 1  ;;  %v4386_v57 = vld [vmem:[%s7228_s23 + $0x50] sm:$0xff]  ;;  %v4621_v0 = vld [vmem:[%s7209_s4 + $0x20] sm:$0xff] }
  0x9d   :  { %v299_v11 = vrot.slane %v5297_v2, 1  ;;  %v259_v15 = vsel %vm243_vm8, %v235_v56, %v251_v63  ;;  %4686 = vrot.lane.b32.xlu1 %v4685_v5, %s5072_s17  ;;  %v282_v23 = vrot.slane %v260_v4, 7  ;;  %v344_v30 = vrot.slane %v5279_v16, 2  ;;  %v4387_v56 = vld [vmem:[%s7228_s23 + $0x58] sm:$0xff]  ;;  %v4622_v63 = vld [vmem:[%s7209_s4 + $0x28] sm:$0xff]  ;;  %v4619_v4 = vld [vmem:[%s7209_s4 + $0x10] sm:$0xff] }
  0x9e   :  { %v339_v18 = vsel %vm196_vm1, %v337_v6, %v338_v7  ;;  %v341_v19 = vsel %vm196_vm1, %v338_v7, %v340_v62  ;;  %v280_v22 = vrot.slane %v259_v15, 7  ;;  %v261_v41 = vsel %vm245_vm10, %v237_v17, %v253_v8  ;;  %v4618_v5 = vld [vmem:[%s7209_s4 + $0x8] sm:$0xff]  ;;  %v4617_v6 = vld [vmem:[%s7209_s4] sm:$0xff] }
  0x9f   :  { %v4680_v24 = vpack.i.bf16 %v341_v19, %v339_v18  ;;  %v300_v25 = vsel %vm7224_vm0, %v298_v9, %v299_v11  ;;  %v302_v27 = vsel %vm7224_vm0, %v299_v11, %v301_v21  ;;  %v284_v43 = vrot.slane %v261_v41, 7 }
  0xa0   :  { %v4675_v29 = vpack.i.bf16 %v302_v27, %v300_v25  ;;  %v5316_v31 = vsel %vm7223_vm3, %v278_v13, %v280_v22  ;;  %v5319_v32 = vsel %vm7223_vm3, %v280_v22, %v282_v23  ;;  %v343_v44 = vsel %vm196_vm1, %v340_v62, %v342_v28  ;;  %v4623_v62 = vld [vmem:[%s7209_s4 + $0x30] sm:$0xff]  ;;  %s5083_s4 = smov 1  }
  0xa1   :  { %4681 = vrot.lane.b32.xlu0 %v4680_v24, %s5073_s18  ;;  %v346_v33 = vrot.slane %v5316_v31, 2  ;;  %v348_v34 = vrot.slane %v5319_v32, 2  ;;  %v307_v36 = vrot.slane %v5316_v31, 1  ;;  %v309_v37 = vrot.slane %v5319_v32, 1  ;;  %474 = vmatpush.bf16.msra.mxu0 %v4623_v62 }
  0xa2   :  { %4676 = vrot.lane.b32.xlu2 %v4675_v29, %s5072_s17  ;;  %v345_v45 = vsel %vm196_vm1, %v342_v28, %v344_v30  ;;  %v285_v47 = vsel %vm7223_vm3, %v282_v23, %v284_v43  ;;  %1221 = vmatpush.bf16.msra.mxu3 %v4623_v62 }
  0xa3   :  { %v347_v13 = vsel %vm196_vm1, %v344_v30, %v346_v33  ;;  %v349_v38 = vsel %vm196_vm1, %v346_v33, %v348_v34  ;;  %v308_v39 = vsel %vm7224_vm0, %v305_v58, %v307_v36  ;;  %v310_v40 = vsel %vm7224_vm0, %v307_v36, %v309_v37  ;;  %v4385_v58 = vld [vmem:[%s7228_s23 + $0x48] sm:$0xff] }
  0xa4   :  { %v4700_v42 = vpack.i.bf16 %v349_v38, %v347_v13  ;;  %v4695_v46 = vpack.i.bf16 %v310_v40, %v308_v39  ;;  %v5337_v48 = vsel %vm7224_vm0, %v285_v47, 0.0  ;;  %v4690_v49 = vpack.i.bf16 %v345_v45, %v343_v44 }
  0xa5   :  { %v350_v50 = vrot.slane %v5337_v48, 2  ;;  %v311_v51 = vrot.slane %v5337_v48, 1  ;;  %475 = vmatpush.bf16.msra.mxu0 %v4622_v63 }
  0xa6   :  { %4701 = vrot.lane.b32.xlu1 %v4700_v42, %s5073_s18  ;;  %1222 = vmatpush.bf16.msra.mxu3 %v4622_v63 }
  0xa7   :  { %v351_v53 = vsel %vm196_vm1, %v348_v34, %v350_v50  ;;  %v312_v17 = vsel %vm7224_vm0, %v309_v37, %v311_v51 }
  0xa8   :  { %v4710_v21 = vpack.i.bf16 %v350_v50, %v351_v53  ;;  %v4705_v55 = vpack.i.bf16 %v311_v51, %v312_v17 }
  0xa9   :  { %4696 = vrot.lane.b32.xlu0 %v4695_v46, %s5072_s17  ;;  %476 = vmatpush.bf16.msra.mxu0 %v4621_v0 }
  0xaa   :  { %4691 = vrot.lane.b32.xlu2 %v4690_v49, %s5073_s18  ;;  %1223 = vmatpush.bf16.msra.mxu3 %v4621_v0 }
  0xad   :  { %477 = vmatpush.bf16.msra.mxu0 %v4620_v1 }
  0xae   :  { %899 = vperm.xlu1 %4673, %v4384_v20   ;;  %1224 = vmatpush.bf16.msra.mxu3 %v4620_v1 }
  0xb1   :  { %4711 = vrot.lane.b32.xlu0 %v4710_v21, %s5073_s18  ;;  %478 = vmatpush.bf16.msra.mxu0 %v4619_v4 }
  0xb2   :  { %4706 = vrot.lane.b32.xlu2 %v4705_v55, %s5072_s17  ;;  %1225 = vmatpush.bf16.msra.mxu3 %v4619_v4 }
  0xb5   :  { %479 = vmatpush.bf16.msra.mxu0 %v4618_v5 }
  0xb6   :  { %914 = vperm.xlu1 %4673, %v4387_v56   ;;  %1226 = vmatpush.bf16.msra.mxu3 %v4618_v5 }
  0xb9   :  { %909 = vperm.xlu0 %4672, %v4386_v57   ;;  %480 = vmatpush.bf16.msra.mxu0 %v4617_v6 }
  0xba   :  { %904 = vperm.xlu2 %4674, %v4385_v58   ;;  %1227 = vmatpush.bf16.msra.mxu3 %v4617_v6 }
  0xc1   :  { %924 = vperm.xlu0 %4672, %v4389_v59  }
  0xc2   :  { %919 = vperm.xlu2 %4674, %v4388_v60  }
  0xc9   :  { %929 = vperm.xlu0 %4672, %v4390_v61  }
  0xfc   :  { %v4677_v7 = vpop.permute.xlu2 %4676 }
  0xfd   :  { %v4679_v8 = vunpack.i.h.bf16 %v4677_v7  ;;  %v4678_v9 = vunpack.i.l.bf16 %v4677_v7 }
  0xff   :  { %v377_v22 = vsel %vm376_vm11, %v5300_v3, %v4678_v9  ;;  %v378_v23 = vsel %vm376_vm11, %v5297_v2, %v4679_v8 }
 0x104   :  { %v4692_v11 = vpop.permute.xlu2 %4691 }
 0x105   :  { %v4694_v37 = vunpack.i.h.bf16 %v4692_v11  ;;  %v4693_v41 = vunpack.i.l.bf16 %v4692_v11 }
 0x10c   :  { %v4707_v30 = vpop.permute.xlu2 %4706 }
 0x10d   :  { %v4709_v7 = vunpack.i.h.bf16 %v4707_v30  ;;  %v4708_v8 = vunpack.i.l.bf16 %v4707_v30 }
 0x10f   :  { %v4687_v29 = vpop.permute.xlu1 %4686 }
 0x110   :  { %v4689_v34 = vunpack.i.h.bf16 %v4687_v29  ;;  %v4688_v3 = vunpack.i.l.bf16 %v4687_v29  ;;  %v384_v29 = vsel %vm376_vm11, %v5337_v48, %v4709_v7 }
 0x112   :  { %v379_v2 = vsel %vm376_vm11, %v5282_v54, %v4688_v3  ;;  %v380_v36 = vsel %vm376_vm11, %v5285_v35, %v4689_v34 }
 0x113   :  { %v4682_v15 = vpop.permute.xlu0 %4681  ;;  %v388_v38 = vsel %vm385_vm12, %v379_v2, %v4693_v41  ;;  %v389_v39 = vsel %vm385_vm12, %v380_v36, %v4694_v37 }
 0x114   :  { %v4684_v18 = vunpack.i.h.bf16 %v4682_v15  ;;  %v4683_v19 = vunpack.i.l.bf16 %v4682_v15  ;;  %v5410_v40 = vpop.permute.xlu2 %904  ;;  %v4327_v42 = vpack.c.bf16 %v389_v39, %v388_v38 }
 0x116   :  { %v386_v24 = vsel %vm385_vm12, %v377_v22, %v4683_v19  ;;  %v387_v25 = vsel %vm385_vm12, %v378_v23, %v4684_v18 }
 0x117   :  { %v4324_v28 = vpack.c.bf16 %v387_v25, %v386_v24 }
 0x118   :  { %v4702_v44 = vpop.permute.xlu1 %4701 }
 0x119   :  { %4325 = vmatmul.msk.bf16.vlgmr.msra.gmra.mxu0 %vm5398_vm14, %v4324_v28  ;;  %v4704_v35 = vunpack.i.h.bf16 %v4702_v44  ;;  %v4703_v47 = vunpack.i.l.bf16 %v4702_v44  ;;  %v383_v28 = vsel %vm376_vm11, %v5319_v32, %v4708_v8 }
 0x11b   :  { %v4697_v33 = vpop.permute.xlu0 %4696 }
 0x11c   :  { %v4699_v54 = vunpack.i.h.bf16 %v4697_v33  ;;  %v4698_v45 = vunpack.i.l.bf16 %v4697_v33  ;;  %v920_v46 = vpop.permute.xlu2 %919 }
 0x11d   :  { %v5421_v51 = vmul.f32 %v5196_v10, %v920_v46  ;;  %v5424_v20 = vmul.f32 %v5202_v12, %v920_v46 }
 0x11e   :  { %v381_v49 = vsel %vm376_vm11, %v5279_v16, %v4698_v45  ;;  %v382_v50 = vsel %vm376_vm11, %v5316_v31, %v4699_v54  ;;  %v941_v31 = vmul.f32 %v5207_v14, %v920_v46  ;;  %v954_v54 = vmul.f32 %v5196_v10, %v5410_v40 }
 0x11f   :  { %v390_v17 = vsel %vm385_vm12, %v381_v49, %v4703_v47  ;;  %v391_v21 = vsel %vm385_vm12, %v382_v50, %v4704_v35  ;;  %v976_v16 = vrot.slane %v5421_v51, 1  ;;  %v1023_v58 = vrot.slane %v5424_v20, 2  ;;  %v5497_v35 = vld [vmem:[%s7208_s3 + $0x1] ss:$0 sm:$0xff] }
 0x120   :  { %v4330_v57 = vpack.c.bf16 %v391_v21, %v390_v17  ;;  %v970_v50 = vrot.slane %v954_v54, 1 }
 0x123   :  { %v4712_v13 = vpop.permute.xlu0 %4711 }
 0x124   :  { %v4714_v15 = vunpack.i.h.bf16 %v4712_v13  ;;  %v4713_v18 = vunpack.i.l.bf16 %v4712_v13  ;;  %v900_v13 = vpop.permute.xlu1 %899 }
 0x125   :  { %v953_v45 = vmul.f32 %v5196_v10, %v900_v13 }
 0x126   :  { %v392_v30 = vsel %vm385_vm12, %v383_v28, %v4713_v18  ;;  %v393_v33 = vsel %vm385_vm12, %v384_v29, %v4714_v15 }
 0x127   :  { %v4333_v2 = vpack.c.bf16 %v393_v33, %v392_v30  ;;  %v969_v17 = vrot.slane %v953_v45, 1 }
 0x129   :  { %4328 = vmatmul.msk.bf16.gmra.mxu0 %vm5398_vm14, %v4327_v42 }
 0x12b   :  { %v5414_v43 = vpop.permute.xlu0 %909 }
 0x12c   :  { %v5483_v39 = vpop.permute.xlu1 %914  ;;  %v955_v42 = vmul.f32 %v5196_v10, %v5414_v43 }
 0x12d   :  { %v5489_v44 = vmul.f32 %v5196_v10, %v5483_v39  ;;  %v5505_v21 = vmul.f32 %v5202_v12, %v5483_v39 }
 0x12e   :  { %v972_v46 = vrot.slane %v955_v42, 1 }
 0x12f   :  { %v974_v47 = vrot.slane %v5489_v44, 1  ;;  %v1021_v7 = vrot.slane %v5505_v21, 2 }
 0x133   :  { %v925_v52 = vpop.permute.xlu0 %924 }
 0x134   :  { %v958_v53 = vmul.f32 %v5196_v10, %v925_v52  ;;  %v1005_v55 = vmul.f32 %v5202_v12, %v925_v52  ;;  %v942_v9 = vmul.f32 %v5207_v14, %v925_v52  ;;  %v1002_v52 = vmul.f32 %v5202_v12, %v5414_v43 }
 0x136   :  { %v978_v56 = vrot.slane %v958_v53, 1  ;;  %v1025_v60 = vrot.slane %v1005_v55, 2  ;;  %v973_v55 = vsel %vm7224_vm0, %v970_v50, %v972_v46 }
 0x138   :  { %v979_v59 = vsel %vm7224_vm0, %v976_v16, %v978_v56  ;;  %v1026_v62 = vsel %vm196_vm1, %v1023_v58, %v1025_v60 }
 0x139   :  { %v996_v61 = vadd.f32 %v979_v59, %v941_v31  ;;  %4331 = vmatmul.msk.bf16.gmra.mxu0 %vm5398_vm14, %v4330_v57  ;;  %v938_v31 = vmul.f32 %v5207_v14, %v5410_v40  ;;  %v1000_v57 = vmul.f32 %v5202_v12, %v900_v13  ;;  %v975_v59 = vsel %vm7224_vm0, %v972_v46, %v974_v47 }
 0x13b   :  { %v1043_v63 = vadd.f32 %v1026_v62, %v996_v61  ;;  %v5441_v0 = vpop.permute.xlu0 %929  ;;  %v1019_v61 = vrot.slane %v1002_v52, 2  ;;  %v993_v8 = vadd.f32 %v973_v55, %v938_v31  ;;  %v1016_v15 = vrot.slane %v1000_v57, 2 }
 0x13c   :  { %v5445_v1 = vmul.f32 %v5196_v10, %v5441_v0  ;;  %v5449_v4 = vmul.f32 %v5202_v12, %v5441_v0  ;;  %v1001_v10 = vmul.f32 %v5202_v12, %v5410_v40  ;;  %v937_v40 = vmul.f32 %v5207_v14, %v900_v13 }
 0x13d   :  { %v1051_v11 = vadd.f32 %v5228_v26, %v1043_v63  ;;  %v971_v63 = vsel %vm7224_vm0, %v969_v17, %v970_v50 }
 0x13e   :  { %v980_v5 = vrot.slane %v5445_v1, 1  ;;  %v1027_v6 = vrot.slane %v5449_v4, 2 }
 0x13f   :  { %v1067_v24 = vmul.f32 0.01, %v1051_v11  ;;  %vm1059_vm15 = vcmp.gt.f32.partialorder %v1051_v11, 0.0 }
 0x140   :  { %v981_v19 = vsel %vm7224_vm0, %v978_v56, %v980_v5  ;;  %v1028_v23 = vsel %vm196_vm1, %v1025_v60, %v1027_v6  ;;  %v939_v60 = vmul.f32 %v5207_v14, %v5414_v43 }
 0x141   :  { %v997_v22 = vadd.f32 %v981_v19, %v942_v9  ;;  %v5468_v36 = vsel %vm1059_vm15, %v1051_v11, %v1067_v24  ;;  %v1017_v9 = vrot.slane %v1001_v10, 2  ;;  %v992_v19 = vadd.f32 %v971_v63, %v937_v40 }
 0x142   :  { %v1094_v32 = vrot.slane %v5468_v36, 7  ;;  %v994_v11 = vadd.f32 %v975_v59, %v939_v60  ;;  %v1022_v24 = vsel %vm196_vm1, %v1019_v61, %v1021_v7 }
 0x143   :  { %v1044_v25 = vadd.f32 %v1028_v23, %v997_v22  ;;  %v1020_v22 = vsel %vm196_vm1, %v1017_v9, %v1019_v61  ;;  %v1018_v33 = vsel %vm196_vm1, %v1016_v15, %v1017_v9  ;;  %v4391_v9 = vld [vmem:[%s7228_s23 + $0x78] sm:$0xff] }
 0x144   :  { %v1041_v28 = vadd.f32 %v1022_v24, %v994_v11 }
 0x145   :  { %v1052_v34 = vadd.f32 %v5228_v26, %v1044_v25  ;;  %v1040_v25 = vadd.f32 %v1020_v22, %v993_v8 }
 0x147   :  { %vm1060_vm2 = vcmp.gt.f32.partialorder %v1052_v34, 0.0  ;;  %v1068_v3 = vmul.f32 0.01, %v1052_v34  ;;  %v1048_v46 = vadd.f32 %v5228_v26, %v1040_v25 }
 0x149   :  { %4334 = vmatmul.msk.bf16.gmra.mxu0 %vm5398_vm14, %v4333_v2  ;;  %v5472_v37 = vsel %vm1060_vm2, %v1052_v34, %v1068_v3  ;;  %v1039_v2 = vadd.f32 %v1018_v33, %v992_v19  ;;  %v1064_v59 = vmul.f32 0.01, %v1048_v46  ;;  %vm1056_vm7 = vcmp.gt.f32.partialorder %v1048_v46, 0.0 }
 0x14a   :  { %v1096_v48 = vrot.slane %v5472_v37, 7 }
 0x14b   :  { %v1047_v57 = vadd.f32 %v5228_v26, %v1039_v2  ;;  %v1072_v40 = vsel %vm1056_vm7, %v1048_v46, %v1064_v59 }
 0x14c   :  { %v5481_v41 = vsel %vm7223_vm3, %v1094_v32, %v1096_v48  ;;  %v1088_v19 = vrot.slane %v1072_v40, 7 }
 0x14d   :  { %vm1055_vm10 = vcmp.gt.f32.partialorder %v1047_v57, 0.0 }
 0x196   :  { %v482_v38 = vpop.f32.mrf.mxu0 }
 0x197   :  { %v483_v56 = vadd.f32 %v5497_v35, %v482_v38 }
 0x199   :  { %v510_v12 = vmul.f32 0.01, %v483_v56  ;;  %vm502_vm5 = vcmp.gt.f32.partialorder %v483_v56, 0.0 }
 0x19b   :  { %v5529_v29 = vsel %vm502_vm5, %v483_v56, %v510_v12 }
 0x19c   :  { %v534_v38 = vrot.slane %v5529_v29, 1  ;;  %v573_v42 = vrot.slane %v5529_v29, 2 }
 0x19e   :  { %v484_v49 = vpop.f32.mrf.mxu0 }
 0x19f   :  { %v485_v53 = vadd.f32 %v5497_v35, %v484_v49  ;;  %v1049_v49 = vadd.f32 %v5228_v26, %v1041_v28 }
 0x1a1   :  { %v511_v62 = vmul.f32 0.01, %v485_v53  ;;  %vm503_vm4 = vcmp.gt.f32.partialorder %v485_v53, 0.0  ;;  %v1065_v60 = vmul.f32 0.01, %v1049_v49  ;;  %vm1057_vm8 = vcmp.gt.f32.partialorder %v1049_v49, 0.0 }
 0x1a3   :  { %v5523_v43 = vsel %vm503_vm4, %v485_v53, %v511_v62  ;;  %v1063_v62 = vmul.f32 0.01, %v1047_v57  ;;  %v5550_v63 = vsel %vm1057_vm8, %v1049_v49, %v1065_v60 }
 0x1a4   :  { %v535_v34 = vrot.slane %v5523_v43, 1  ;;  %v574_v3 = vrot.slane %v5523_v43, 2  ;;  %v1090_v22 = vrot.slane %v5550_v63, 7 }
 0x1a5   :  { %v1071_v15 = vsel %vm1055_vm10, %v1047_v57, %v1063_v62 }
 0x1a6   :  { %v487_v18 = vpop.f32.mrf.mxu0  ;;  %v575_v52 = vsel %vm196_vm1, %v573_v42, %v574_v3  ;;  %v536_v17 = vsel %vm7224_vm0, %v534_v38, %v535_v34  ;;  %v1087_v28 = vrot.slane %v1071_v15, 7  ;;  %v5578_v38 = vsel %vm7223_vm3, %v1088_v19, %v1090_v22 }
 0x1a7   :  { %v488_v23 = vadd.f32 %v5497_v35, %v487_v18 }
 0x1a8   :  { %v5573_v2 = vsel %vm7223_vm3, %v1087_v28, %v1088_v19 }
 0x1a9   :  { %vm504_vm6 = vcmp.gt.f32.partialorder %v488_v23, 0.0  ;;  %v512_v30 = vmul.f32 0.01, %v488_v23 }
 0x1ab   :  { %v5534_v13 = vsel %vm504_vm6, %v488_v23, %v512_v30 }
 0x1ac   :  { %v537_v54 = vrot.slane %v5534_v13, 1  ;;  %v576_v45 = vrot.slane %v5534_v13, 2 }
 0x1ae   :  { %v489_v50 = vpop.f32.mrf.mxu0  ;;  %v577_v53 = vsel %vm196_vm1, %v574_v3, %v576_v45  ;;  %v538_v10 = vsel %vm7224_vm0, %v535_v34, %v537_v54  ;;  %v940_v34 = vmul.f32 %v5207_v14, %v5483_v39  ;;  %v977_v3 = vsel %vm7224_vm0, %v974_v47, %v976_v16 }
 0x1af   :  { %v490_v55 = vadd.f32 %v5497_v35, %v489_v50  ;;  %v4720_v56 = vpack.i.bf16 %v577_v53, %v575_v52  ;;  %v4715_v31 = vpack.i.bf16 %v538_v10, %v536_v17  ;;  %v5586_v47 = vsel %vm7223_vm3, 0.0, %v1087_v28 }
 0x1b0   :  { %v995_v50 = vadd.f32 %v977_v3, %v940_v34  ;;  %v1115_v52 = vrot.slane %v5573_v2, 1  ;;  %v1117_v53 = vrot.slane %v5578_v38, 1  ;;  %v1024_v17 = vsel %vm196_vm1, %v1021_v7, %v1023_v58 }
 0x1b1   :  { %4721 = vrot.lane.b32.xlu2 %v4720_v56, %s5073_s18  ;;  %4716 = vrot.lane.b32.xlu1 %v4715_v31, %s5072_s17  ;;  %v513_v61 = vmul.f32 0.01, %v490_v55  ;;  %vm505_vm9 = vcmp.gt.f32.partialorder %v490_v55, 0.0 }
 0x1b2   :  { %v1118_v31 = vsel %vm7224_vm0, %v1115_v52, %v1117_v53 }
 0x1b3   :  { %v5555_v11 = vsel %vm505_vm9, %v490_v55, %v513_v61  ;;  %v1042_v55 = vadd.f32 %v1024_v17, %v995_v50 }
 0x1b4   :  { %v539_v23 = vrot.slane %v5555_v11, 1  ;;  %v578_v24 = vrot.slane %v5555_v11, 2 }
 0x1b5   :  { %v1050_v21 = vadd.f32 %v5228_v26, %v1042_v55 }
 0x1b6   :  { %v492_v8 = vpop.f32.mrf.mxu0  ;;  %v579_v46 = vsel %vm196_vm1, %v576_v45, %v578_v24  ;;  %v540_v14 = vsel %vm7224_vm0, %v537_v54, %v539_v23  ;;  %v1114_v54 = vrot.slane %v5586_v47, 1  ;;  %v5596_v45 = vld [vmem:[%s7210_s5 + $0x38] sm:$0xff] }
 0x1b7   :  { %v493_v12 = vadd.f32 %v5497_v35, %v492_v8  ;;  %706 = vmatpush.bf16.msra.mxu1 %v5596_v45  ;;  %v1066_v8 = vmul.f32 0.01, %v1050_v21  ;;  %vm1058_vm4 = vcmp.gt.f32.partialorder %v1050_v21, 0.0 }
 0x1b8   :  { %v1116_v56 = vsel %vm7224_vm0, %v1114_v54, %v1115_v52 }
 0x1b9   :  { %vm506_vm13 = vcmp.gt.f32.partialorder %v493_v12, 0.0  ;;  %v514_v18 = vmul.f32 0.01, %v493_v12  ;;  %934 = vperm.xlu1 %4673, %v4391_v9   ;;  %v4745_v60 = vpack.i.bf16 %v1118_v31, %v1116_v56  ;;  %v1074_v34 = vsel %vm1058_vm4, %v1050_v21, %v1066_v8  ;;  %v5693_v8 = vld [vmem:[%s7210_s5 + $0x10] sm:$0xff] }
 0x1bb   :  { %v5561_v25 = vsel %vm506_vm13, %v493_v12, %v514_v18 }
 0x1bc   :  { %v541_v30 = vrot.slane %v5561_v25, 1  ;;  %v580_v33 = vrot.slane %v5561_v25, 2 }
 0x1be   :  { %v494_v42 = vpop.f32.mrf.mxu0  ;;  %v581_v49 = vsel %vm196_vm1, %v578_v24, %v580_v33  ;;  %v542_v51 = vsel %vm7224_vm0, %v539_v23, %v541_v30 }
 0x1bf   :  { %v495_v39 = vadd.f32 %v5497_v35, %v494_v42  ;;  %v4730_v16 = vpack.i.bf16 %v581_v49, %v579_v46  ;;  %v4725_v44 = vpack.i.bf16 %v542_v51, %v540_v14  ;;  %v1154_v42 = vrot.slane %v5573_v2, 2 }
 0x1c0   :  { %v1092_v49 = vrot.slane %v1074_v34, 7 }
 0x1c1   :  { %4731 = vrot.lane.b32.xlu0 %v4730_v16, %s5073_s18  ;;  %4726 = vrot.lane.b32.xlu2 %v4725_v44, %s5072_s17  ;;  %v515_v10 = vmul.f32 0.01, %v495_v39  ;;  %vm507_vm15 = vcmp.gt.f32.partialorder %v495_v39, 0.0 }
 0x1c2   :  { %v5638_v44 = vsel %vm7223_vm3, %v1092_v49, %v1094_v32 }
 0x1c3   :  { %v5608_v59 = vsel %vm507_vm15, %v495_v39, %v515_v10  ;;  %v5645_v10 = vsel %vm7223_vm3, %v1090_v22, %v1092_v49  ;;  %v1160_v56 = vrot.slane %v5638_v44, 2  ;;  %v1121_v36 = vrot.slane %v5638_v44, 1 }
 0x1c4   :  { %v543_v7 = vrot.slane %v5608_v59, 1  ;;  %v582_v61 = vrot.slane %v5608_v59, 2  ;;  %v1158_v32 = vrot.slane %v5645_v10, 2  ;;  %v1119_v31 = vrot.slane %v5645_v10, 1 }
 0x1c6   :  { %v497_v57 = vpop.f32.mrf.mxu0  ;;  %v583_v15 = vsel %vm196_vm1, %v580_v33, %v582_v61  ;;  %v544_v18 = vsel %vm7224_vm0, %v541_v30, %v543_v7  ;;  %v1156_v33 = vrot.slane %v5578_v38, 2  ;;  %v1153_v30 = vrot.slane %v5586_v47, 2 }
 0x1c7   :  { %v498_v20 = vadd.f32 %v5497_v35, %v497_v57  ;;  %v1161_v63 = vsel %vm196_vm1, %v1158_v32, %v1160_v56  ;;  %v1122_v22 = vsel %vm7224_vm0, %v1119_v31, %v1121_v36 }
 0x1c8   :  { %v1155_v39 = vsel %vm196_vm1, %v1153_v30, %v1154_v42  ;;  %v1157_v16 = vsel %vm196_vm1, %v1154_v42, %v1156_v33  ;;  %v1159_v57 = vsel %vm196_vm1, %v1156_v33, %v1158_v32  ;;  %v5039_v30 = vld [vmem:[%s7207_s2 + $0x1] ss:$0 sm:$0xff] }
 0x1c9   :  { %vm508_vm2 = vcmp.gt.f32.partialorder %v498_v20, 0.0  ;;  %v516_v58 = vmul.f32 0.01, %v498_v20  ;;  %4746 = vrot.lane.b32.xlu0 %v4745_v60, %s5072_s17  ;;  %v4750_v55 = vpack.i.bf16 %v1157_v16, %v1155_v39  ;;  %v1120_v60 = vsel %vm7224_vm0, %v1117_v53, %v1119_v31  ;;  %v5681_v53 = vld [vmem:[%s7210_s5 + $0x20] sm:$0xff] }
 0x1ca   :  { %v4765_v21 = vpack.i.bf16 %v1122_v22, %v1120_v60 }
 0x1cb   :  { %v5615_v62 = vsel %vm508_vm2, %v498_v20, %v516_v58  ;;  %v4770_v20 = vpack.i.bf16 %v1161_v63, %v1159_v57  ;;  %v5669_v58 = vld [vmem:[%s7210_s5 + $0x30] sm:$0xff] }
 0x1cc   :  { %v545_v9 = vrot.slane %v5615_v62, 1  ;;  %v584_v40 = vrot.slane %v5615_v62, 2  ;;  %707 = vmatpush.bf16.msra.mxu1 %v5669_v58 }
 0x1ce   :  { %v499_v12 = vpop.f32.mrf.mxu0  ;;  %v585_v26 = vsel %vm196_vm1, %v582_v61, %v584_v40  ;;  %v546_v19 = vsel %vm7224_vm0, %v543_v7, %v545_v9  ;;  %v5675_v7 = vld [vmem:[%s7210_s5 + $0x28] sm:$0xff]  ;;  %v5687_v61 = vld [vmem:[%s7210_s5 + $0x18] sm:$0xff] }
 0x1cf   :  { %v500_v23 = vadd.f32 %v5497_v35, %v499_v12  ;;  %v4740_v24 = vpack.i.bf16 %v585_v26, %v583_v15  ;;  %v4735_v28 = vpack.i.bf16 %v546_v19, %v544_v18 }
 0x1d0   :  { %708 = vmatpush.bf16.msra.mxu1 %v5675_v7 }
 0x1d1   :  { %vm509_vm5 = vcmp.gt.f32.partialorder %v500_v23, 0.0  ;;  %v517_v3 = vmul.f32 0.01, %v500_v23  ;;  %4741 = vrot.lane.b32.xlu2 %v4740_v24, %s5073_s18  ;;  %4736 = vrot.lane.b32.xlu1 %v4735_v28, %s5072_s17 }
 0x1d3   :  { %v5628_v46 = vsel %vm509_vm5, %v500_v23, %v517_v3 }
 0x1d4   :  { %v586_v14 = vrot.slane %v5628_v46, 2  ;;  %v547_v51 = vrot.slane %v5628_v46, 1  ;;  %709 = vmatpush.bf16.msra.mxu1 %v5681_v53 }
 0x1d6   :  { %v587_v50 = vsel %vm196_vm1, %v584_v40, %v586_v14  ;;  %v548_v52 = vsel %vm7224_vm0, %v545_v9, %v547_v51  ;;  %v5699_v9 = vld [vmem:[%s7210_s5 + $0x8] sm:$0xff]  ;;  %v5705_v40 = vld [vmem:[%s7210_s5] sm:$0xff] }
 0x1d7   :  { %v4760_v54 = vpack.i.bf16 %v586_v14, %v587_v50  ;;  %v4755_v17 = vpack.i.bf16 %v547_v51, %v548_v52  ;;  %v5041_v51 = vld [vmem:[%s7207_s2] ss:$0 sm:$0xff] }
 0x1d8   :  { %710 = vmatpush.bf16.msra.mxu1 %v5687_v61  ;;  %v943_v50 = vmul.f32 %v5041_v51, %v5441_v0  ;;  %v5042_v0 = vld [vmem:[%s7208_s3] ss:$0 sm:$0xff] }
 0x1d9   :  { %4761 = vrot.lane.b32.xlu0 %v4760_v54, %s5073_s18  ;;  %4756 = vrot.lane.b32.xlu2 %v4755_v17, %s5072_s17 }
 0x1da   :  { %4751 = vrot.lane.b32.xlu1 %v4750_v55, %s5073_s18 }
 0x1dc   :  { %711 = vmatpush.bf16.msra.mxu1 %v5693_v8 }
 0x1e0   :  { %712 = vmatpush.bf16.msra.mxu1 %v5699_v9 }
 0x1e1   :  { %4771 = vrot.lane.b32.xlu2 %v4770_v20, %s5073_s18 }
 0x1e2   :  { %4766 = vrot.lane.b32.xlu1 %v4765_v21, %s5072_s17 }
 0x1e4   :  { %713 = vmatpush.bf16.msra.mxu1 %v5705_v40 }
 0x20b   :  { %v4722_v12 = vpop.permute.xlu2 %4721 }
 0x20c   :  { %v4724_v19 = vunpack.i.h.bf16 %v4722_v12  ;;  %v4723_v23 = vunpack.i.l.bf16 %v4722_v12 }
 0x223   :  { %v4717_v15 = vpop.permute.xlu1 %4716 }
 0x224   :  { %v4719_v26 = vunpack.i.h.bf16 %v4717_v15  ;;  %v4718_v18 = vunpack.i.l.bf16 %v4717_v15 }
 0x226   :  { %v612_v24 = vsel %vm376_vm11, %v5529_v29, %v4718_v18  ;;  %v613_v28 = vsel %vm376_vm11, %v5523_v43, %v4719_v26  ;;  %v5040_v29 = vld [vmem:[%s7207_s2 + $0x2] ss:$0 sm:$0xff]  ;;  %v4727_v43 = vpop.permute.xlu2 %4726  ;;  %s5081_s2 = smov [#allocation2]  }
 0x227   :  { %v620_v34 = vsel %vm385_vm12, %v612_v24, %v4723_v23  ;;  %v621_v3 = vsel %vm385_vm12, %v613_v28, %v4724_v19  ;;  %v4729_v55 = vunpack.i.h.bf16 %v4727_v43  ;;  %v4728_v32 = vunpack.i.l.bf16 %v4727_v43  ;;  %s4273_s22 = sshll.u32 %s5081_s2, 4  ;;  %s4274_s22 = int_to_ptr.vmem [resolvable:$true] %s4273_s22 }
 0x228   :  { %v4368_v42 = vpack.c.bf16 %v621_v3, %v620_v34 }
 0x229   :  { %v615_v15 = vsel %vm376_vm11, %v5555_v11, %v4729_v55  ;;  %v1123_v11 = vrot.slane %v5481_v41, 1 }
 0x22a   :  { %4369 = vmatmul.msk.bf16.vlgmr.msra.gmra.mxu1 %vm5398_vm14, %v4368_v42 }
 0x22b   :  { %v935_v33 = vpop.permute.xlu1 %934 }
 0x22c   :  { %v960_v49 = vmul.f32 %v5039_v30, %v935_v33  ;;  %v1007_v14 = vmul.f32 %v5040_v29, %v935_v33  ;;  %v944_v39 = vmul.f32 %v5041_v51, %v935_v33 }
 0x22e   :  { %v982_v16 = vrot.slane %v960_v49, 1  ;;  %v1029_v52 = vrot.slane %v1007_v14, 2 }
 0x230   :  { %v983_v54 = vsel %vm7224_vm0, %v980_v5, %v982_v16  ;;  %v999_v17 = vadd.f32 %v982_v16, %v944_v39  ;;  %v1030_v63 = vsel %vm196_vm1, %v1027_v6, %v1029_v52  ;;  %v614_v5 = vsel %vm376_vm11, %v5534_v13, %v4728_v32 }
 0x231   :  { %v998_v31 = vadd.f32 %v983_v54, %v943_v50  ;;  %v1162_v13 = vrot.slane %v5481_v41, 2  ;;  %v4742_v50 = vpop.permute.xlu2 %4741 }
 0x232   :  { %v1046_v22 = vadd.f32 %v1029_v52, %v999_v17  ;;  %v4743_v32 = vunpack.i.l.bf16 %v4742_v50 }
 0x233   :  { %v1045_v57 = vadd.f32 %v1030_v63, %v998_v31  ;;  %v4732_v20 = vpop.permute.xlu0 %4731  ;;  %v1163_v14 = vsel %vm196_vm1, %v1160_v56, %v1162_v13 }
 0x234   :  { %v1054_v60 = vadd.f32 %v5042_v0, %v1046_v22  ;;  %v4734_v21 = vunpack.i.h.bf16 %v4732_v20  ;;  %v4733_v1 = vunpack.i.l.bf16 %v4732_v20 }
 0x235   :  { %v1053_v12 = vadd.f32 %v5042_v0, %v1045_v57 }
 0x236   :  { %vm1062_vm6 = vcmp.gt.f32.partialorder %v1054_v60, 0.0  ;;  %v1070_v4 = vmul.f32 0.01, %v1054_v60  ;;  %v622_v6 = vsel %vm385_vm12, %v614_v5, %v4733_v1  ;;  %v623_v26 = vsel %vm385_vm12, %v615_v15, %v4734_v21 }
 0x237   :  { %vm1061_vm7 = vcmp.gt.f32.partialorder %v1053_v12, 0.0  ;;  %v1069_v18 = vmul.f32 0.01, %v1053_v12  ;;  %v4371_v19 = vpack.c.bf16 %v623_v26, %v622_v6 }
 0x238   :  { %v1078_v23 = vsel %vm1062_vm6, %v1054_v60, %v1070_v4 }
 0x239   :  { %v1077_v24 = vsel %vm1061_vm7, %v1053_v12, %v1069_v18  ;;  %v1100_v28 = vrot.slane %v1078_v23, 7  ;;  %v4757_v15 = vpop.permute.xlu2 %4756 }
 0x23a   :  { %4372 = vmatmul.msk.bf16.gmra.mxu1 %vm5398_vm14, %v4371_v19  ;;  %v1098_v34 = vrot.slane %v1077_v24, 7  ;;  %v4759_v23 = vunpack.i.h.bf16 %v4757_v15  ;;  %v4758_v24 = vunpack.i.l.bf16 %v4757_v15 }
 0x23b   :  { %v4747_v31 = vpop.permute.xlu0 %4746 }
 0x23c   :  { %v5748_v3 = vsel %vm7223_vm3, %v1096_v48, %v1098_v34  ;;  %v1101_v42 = vsel %vm7223_vm3, %v1098_v34, %v1100_v28  ;;  %v1124_v48 = vsel %vm7224_vm0, %v1121_v36, %v1123_v11  ;;  %v4744_v36 = vunpack.i.h.bf16 %v4742_v50 }
 0x23d   :  { %v1164_v33 = vrot.slane %v5748_v3, 2  ;;  %v1125_v30 = vrot.slane %v5748_v3, 1  ;;  %v5754_v49 = vsel %vm7224_vm0, %v1101_v42, 0.0  ;;  %v4749_v1 = vunpack.i.h.bf16 %v4747_v31 }
 0x23e   :  { %v1127_v29 = vrot.slane %v5754_v49, 1  ;;  %v1166_v54 = vrot.slane %v5754_v49, 2  ;;  %v4748_v12 = vunpack.i.l.bf16 %v4747_v31  ;;  %v618_v42 = vsel %vm376_vm11, %v5615_v62, %v4758_v24 }
 0x23f   :  { %v1165_v37 = vsel %vm196_vm1, %v1162_v13, %v1164_v33  ;;  %v1126_v43 = vsel %vm7224_vm0, %v1123_v11, %v1125_v30  ;;  %v1193_v26 = vsel %vm376_vm11, %v5573_v2, %v4749_v1 }
 0x240   :  { %v4780_v51 = vpack.i.bf16 %v1165_v37, %v1163_v14  ;;  %v4775_v39 = vpack.i.bf16 %v1126_v43, %v1124_v48  ;;  %v1128_v16 = vsel %vm7224_vm0, %v1125_v30, %v1127_v29  ;;  %v1167_v63 = vsel %vm196_vm1, %v1164_v33, %v1166_v54 }
 0x241   :  { %v4785_v52 = vpack.i.bf16 %v1127_v29, %v1128_v16  ;;  %v4790_v21 = vpack.i.bf16 %v1166_v54, %v1167_v63  ;;  %v4772_v14 = vpop.permute.xlu2 %4771 }
 0x242   :  { %4781 = vrot.lane.b32.xlu1 %v4780_v51, %s5073_s18  ;;  %4776 = vrot.lane.b32.xlu0 %v4775_v39, %s5072_s17  ;;  %v4774_v43 = vunpack.i.h.bf16 %v4772_v14  ;;  %v4773_v51 = vunpack.i.l.bf16 %v4772_v14 }
 0x243   :  { %v4737_v56 = vpop.permute.xlu1 %4736  ;;  %4786 = vrot.lane.b32.xlu2 %v4785_v52, %s5072_s17 }
 0x244   :  { %v4739_v17 = vunpack.i.h.bf16 %v4737_v56  ;;  %v4738_v55 = vunpack.i.l.bf16 %v4737_v56 }
 0x246   :  { %v616_v22 = vsel %vm376_vm11, %v5561_v25, %v4738_v55  ;;  %v617_v57 = vsel %vm376_vm11, %v5608_v59, %v4739_v17  ;;  %v1192_v59 = vsel %vm376_vm11, %v5586_v47, %v4748_v12  ;;  %v619_v47 = vsel %vm376_vm11, %v5628_v46, %v4759_v23 }
 0x247   :  { %v624_v20 = vsel %vm385_vm12, %v616_v22, %v4743_v32  ;;  %v625_v0 = vsel %vm385_vm12, %v617_v57, %v4744_v36 }
 0x248   :  { %v4374_v60 = vpack.c.bf16 %v625_v0, %v624_v20 }
 0x24a   :  { %4375 = vmatmul.msk.bf16.gmra.mxu1 %vm5398_vm14, %v4374_v60  ;;  %4791 = vrot.lane.b32.xlu0 %v4790_v21, %s5073_s18 }
 0x24b   :  { %v4762_v6 = vpop.permute.xlu0 %4761 }
 0x24c   :  { %v4752_v5 = vpop.permute.xlu1 %4751  ;;  %v4764_v34 = vunpack.i.h.bf16 %v4762_v6  ;;  %v4763_v13 = vunpack.i.l.bf16 %v4762_v6 }
 0x24d   :  { %v4754_v4 = vunpack.i.h.bf16 %v4752_v5  ;;  %v4753_v25 = vunpack.i.l.bf16 %v4752_v5 }
 0x24e   :  { %v626_v2 = vsel %vm385_vm12, %v618_v42, %v4763_v13  ;;  %v627_v33 = vsel %vm385_vm12, %v619_v47, %v4764_v34 }
 0x24f   :  { %v1200_v18 = vsel %vm385_vm12, %v1192_v59, %v4753_v25  ;;  %v1201_v19 = vsel %vm385_vm12, %v1193_v26, %v4754_v4  ;;  %v4377_v37 = vpack.c.bf16 %v627_v33, %v626_v2 }
 0x250   :  { %v4393_v28 = vpack.c.bf16 %v1201_v19, %v1200_v18  ;;  %v5823_v18 = vld [vmem:[%s7208_s3 + $0x2] ss:$0 sm:$0xff]  ;;  %s4275_s3 = sshll.u32 %s7221_s16, 4  ;;  %s5082_s16 = smov 16   ;;  %s4276_s3 = int_to_ptr.hbm [resolvable:$true] %s4275_s3 }
 0x252   :  { %4394 = vmatmul.msk.bf16.vlgmr.msra.gmra.mxu3 %vm5398_vm14, %v4393_v28 }
 0x254   :  { %v4767_v11 = vpop.permute.xlu1 %4766 }
 0x255   :  { %v4769_v30 = vunpack.i.h.bf16 %v4767_v11  ;;  %v4768_v29 = vunpack.i.l.bf16 %v4767_v11 }
 0x257   :  { %v1194_v48 = vsel %vm376_vm11, %v5578_v38, %v4768_v29  ;;  %v1195_v62 = vsel %vm376_vm11, %v5645_v10, %v4769_v30 }
 0x258   :  { %v1202_v46 = vsel %vm385_vm12, %v1194_v48, %v4773_v51  ;;  %v1203_v39 = vsel %vm385_vm12, %v1195_v62, %v4774_v43 }
 0x259   :  { %v4396_v16 = vpack.c.bf16 %v1203_v39, %v1202_v46 }
 0x25a   :  { %4378 = vmatmul.msk.bf16.gmra.mxu1 %vm5398_vm14, %v4377_v37 }
 0x262   :  { %4397 = vmatmul.msk.bf16.gmra.mxu3 %vm5398_vm14, %v4396_v16 }
 0x29d   :  { %v4787_v20 = vpop.permute.xlu2 %4786 }
 0x29e   :  { %v4789_v21 = vunpack.i.h.bf16 %v4787_v20  ;;  %v4788_v1 = vunpack.i.l.bf16 %v4787_v20 }
 0x2a7   :  { %v715_v50 = vpop.f32.mrf.mxu1 }
 0x2a8   :  { %v5828_v23 = vadd.f32 %v5823_v18, %v715_v50 }
 0x2aa   :  { %v743_v30 = vmul.f32 0.01, %v5828_v23  ;;  %vm735_vm13 = vcmp.gt.f32.partialorder %v5828_v23, 0.0 }
 0x2af   :  { %v717_v52 = vpop.f32.mrf.mxu1 }
 0x2b0   :  { %v718_v24 = vadd.f32 %v5823_v18, %v717_v52 }
 0x2b2   :  { %v744_v29 = vmul.f32 0.01, %v718_v24  ;;  %vm736_vm5 = vcmp.gt.f32.partialorder %v718_v24, 0.0 }
 0x2b4   :  { %v4777_v54 = vpop.permute.xlu0 %4776  ;;  %v4782_v56 = vpop.permute.xlu1 %4781 }
 0x2b5   :  { %v4779_v17 = vunpack.i.h.bf16 %v4777_v54  ;;  %v4778_v55 = vunpack.i.l.bf16 %v4777_v54  ;;  %v4784_v38 = vunpack.i.h.bf16 %v4782_v56  ;;  %v4783_v36 = vunpack.i.l.bf16 %v4782_v56 }
 0x2b7   :  { %v720_v32 = vpop.f32.mrf.mxu1  ;;  %v1196_v10 = vsel %vm376_vm11, %v5638_v44, %v4778_v55  ;;  %v1197_v31 = vsel %vm376_vm11, %v5481_v41, %v4779_v17  ;;  %v1198_v44 = vsel %vm376_vm11, %v5748_v3, %v4788_v1  ;;  %v1199_v41 = vsel %vm376_vm11, %v5754_v49, %v4789_v21 }
 0x2b8   :  { %v1204_v63 = vsel %vm385_vm12, %v1196_v10, %v4783_v36  ;;  %v1205_v22 = vsel %vm385_vm12, %v1197_v31, %v4784_v38  ;;  %v721_v48 = vadd.f32 %v5823_v18, %v720_v32 }
 0x2b9   :  { %v4399_v57 = vpack.c.bf16 %v1205_v22, %v1204_v63 }
 0x2ba   :  { %v745_v56 = vmul.f32 0.01, %v721_v48  ;;  %vm737_vm7 = vcmp.gt.f32.partialorder %v721_v48, 0.0 }
 0x2bb   :  { %4400 = vmatmul.msk.bf16.gmra.mxu3 %vm5398_vm14, %v4399_v57 }
 0x2bc   :  { %v4792_v60 = vpop.permute.xlu0 %4791 }
 0x2bd   :  { %v4794_v12 = vunpack.i.h.bf16 %v4792_v60  ;;  %v4793_v5 = vunpack.i.l.bf16 %v4792_v60 }
 0x2bf   :  { %v722_v0 = vpop.f32.mrf.mxu1  ;;  %v1206_v4 = vsel %vm385_vm12, %v1198_v44, %v4793_v5  ;;  %v1207_v25 = vsel %vm385_vm12, %v1199_v41, %v4794_v12  ;;  %v753_v5 = vsel %vm737_vm7, %v721_v48, %v745_v56 }
 0x2c0   :  { %v4402_v6 = vpack.c.bf16 %v1207_v25, %v1206_v4  ;;  %v723_v34 = vadd.f32 %v5823_v18, %v722_v0  ;;  %v752_v4 = vsel %vm736_vm5, %v718_v24, %v744_v29 }
 0x2c2   :  { %v746_v62 = vmul.f32 0.01, %v723_v34  ;;  %vm738_vm4 = vcmp.gt.f32.partialorder %v723_v34, 0.0 }
 0x2c4   :  { %v754_v10 = vsel %vm738_vm4, %v723_v34, %v746_v62 }
 0x2c7   :  { %v725_v15 = vpop.f32.mrf.mxu1 }
 0x2c8   :  { %v726_v28 = vadd.f32 %v5823_v18, %v725_v15  ;;  %v772_v15 = vrot.slane %v754_v10, 1 }
 0x2ca   :  { %v747_v14 = vmul.f32 0.01, %v726_v28  ;;  %vm739_vm10 = vcmp.gt.f32.partialorder %v726_v28, 0.0 }
 0x2cb   :  { %4403 = vmatmul.msk.bf16.gmra.mxu3 %vm5398_vm14, %v4402_v6 }
 0x2cc   :  { %v755_v54 = vsel %vm739_vm10, %v726_v28, %v747_v14  ;;  %v751_v28 = vsel %vm735_vm13, %v5828_v23, %v743_v30  ;;  %vm817_vm13 = vcmask 482304  }
 0x2cd   :  { %v774_v57 = vrot.slane %v755_v54, 1  ;;  %v767_v29 = vrot.slane %v751_v28, 1 }
 0x2cf   :  { %v727_v59 = vpop.f32.mrf.mxu1 }
 0x2d0   :  { %v728_v49 = vadd.f32 %v5823_v18, %v727_v59 }
 0x2d2   :  { %v748_v42 = vmul.f32 0.01, %v728_v49  ;;  %vm740_vm9 = vcmp.gt.f32.partialorder %v728_v49, 0.0 }
 0x2d4   :  { %v756_v39 = vsel %vm740_vm9, %v728_v49, %v748_v42  ;;  %v770_v49 = vrot.slane %v753_v5, 1 }
 0x2d5   :  { %v1229_v26 = vpop.f32.mrf.mxu3  ;;  %v776_v38 = vrot.slane %v756_v39, 1 }
 0x2d6   :  { %v1230_v2 = vadd.f32 %v5497_v35, %v1229_v26 }
 0x2d7   :  { %v730_v3 = vpop.f32.mrf.mxu1  ;;  %v777_v12 = vsel %vm7224_vm0, %v774_v57, %v776_v38 }
 0x2d8   :  { %v731_v19 = vadd.f32 %v5823_v18, %v730_v3  ;;  %v1257_v16 = vmul.f32 0.01, %v1230_v2  ;;  %vm1249_vm6 = vcmp.gt.f32.partialorder %v1230_v2, 0.0  ;;  %v794_v3 = vmax.f32 %v755_v54, %v777_v12 }
 0x2da   :  { %v749_v13 = vmul.f32 0.01, %v731_v19  ;;  %vm741_vm8 = vcmp.gt.f32.partialorder %v731_v19, 0.0  ;;  %v5842_v31 = vsel %vm1249_vm6, %v1230_v2, %v1257_v16  ;;  %v773_v2 = vsel %vm7224_vm0, %v770_v49, %v772_v15 }
 0x2db   :  { %v1281_v44 = vrot.slane %v5842_v31, 1  ;;  %v1320_v25 = vrot.slane %v5842_v31, 2  ;;  %v792_v14 = vmax.f32 %v753_v5, %v773_v2 }
 0x2dc   :  { %v757_v43 = vsel %vm741_vm8, %v731_v19, %v749_v13  ;;  %vm830_vm8 = vcmask 1042432   ;;  %v775_v19 = vsel %vm7224_vm0, %v772_v15, %v774_v57 }
 0x2dd   :  { %v1231_v11 = vpop.f32.mrf.mxu3  ;;  %v778_v52 = vrot.slane %v757_v43, 1  ;;  %v793_v23 = vmax.f32 %v754_v10, %v775_v19 }
 0x2de   :  { %v1232_v47 = vadd.f32 %v5497_v35, %v1231_v11 }
 0x2df   :  { %v732_v33 = vpop.f32.mrf.mxu1  ;;  %v779_v60 = vsel %vm7224_vm0, %v776_v38, %v778_v52 }
 0x2e0   :  { %v733_v37 = vadd.f32 %v5823_v18, %v732_v33  ;;  %v1258_v51 = vmul.f32 0.01, %v1232_v47  ;;  %vm1250_vm2 = vcmp.gt.f32.partialorder %v1232_v47, 0.0  ;;  %v795_v26 = vmax.f32 %v756_v39, %v779_v60 }
 0x2e1   :  { %v768_v33 = vrot.slane %v752_v4, 1 }
 0x2e2   :  { %v750_v46 = vmul.f32 0.01, %v733_v37  ;;  %vm742_vm15 = vcmp.gt.f32.partialorder %v733_v37, 0.0  ;;  %v5839_v36 = vsel %vm1250_vm2, %v1232_v47, %v1258_v51 }
 0x2e3   :  { %v1282_v21 = vrot.slane %v5839_v36, 1  ;;  %v1321_v1 = vrot.slane %v5839_v36, 2  ;;  %v771_v30 = vsel %vm7224_vm0, %v768_v33, %v770_v49 }
 0x2e4   :  { %v758_v50 = vsel %vm742_vm15, %v733_v37, %v750_v46  ;;  %v769_v37 = vsel %vm7224_vm0, %v767_v29, %v768_v33  ;;  %v791_v48 = vmax.f32 %v752_v4, %v771_v30 }
 0x2e5   :  { %v1234_v17 = vpop.f32.mrf.mxu3  ;;  %v780_v55 = vrot.slane %v758_v50, 1  ;;  %v1322_v34 = vsel %vm196_vm1, %v1320_v25, %v1321_v1  ;;  %v1283_v13 = vsel %vm7224_vm0, %v1281_v44, %v1282_v21  ;;  %v790_v62 = vmax.f32 %v751_v28, %v769_v37 }
 0x2e6   :  { %v1235_v32 = vadd.f32 %v5497_v35, %v1234_v17 }
 0x2e7   :  { %v797_v63 = vmax.f32 %v758_v50, %v780_v55  ;;  %v781_v22 = vsel %vm7224_vm0, %v778_v52, %v780_v55 }
 0x2e8   :  { %vm1251_vm9 = vcmp.gt.f32.partialorder %v1235_v32, 0.0  ;;  %v1259_v20 = vmul.f32 0.01, %v1235_v32  ;;  %v796_v0 = vmax.f32 %v757_v43, %v781_v22  ;;  %v798_v43 = vlaneseq }
 0x2e9   :  { %4379 = vmatpush.msk.msra.mxu2 %vm830_vm8, %v797_v63 }
 0x2ea   :  { %v5852_v41 = vsel %vm1251_vm9, %v1235_v32, %v1259_v20  ;;  %v799_v51 = vshrl.u32 %v798_v43, 7  ;;  %v804_v46 = vand.u32 127, %v798_v43 }
 0x2eb   :  { %v1284_v6 = vrot.slane %v5852_v41, 1  ;;  %v1323_v59 = vrot.slane %v5852_v41, 2  ;;  %843 = vmatpush.msra.mxu2 %v796_v0 }
 0x2ec   :  { %v805_v39 = vmul.u32 2, %v799_v51  ;;  %v802_v52 = vadd.s32 24, %v799_v51 }
 0x2ed   :  { %844 = vmatpush.msra.mxu2 %v795_v26  ;;  %v1324_v24 = vsel %vm196_vm1, %v1321_v1, %v1323_v59  ;;  %v1285_v11 = vsel %vm7224_vm0, %v1282_v21, %v1284_v6 }
 0x2ee   :  { %v4800_v42 = vpack.i.bf16 %v1324_v24, %v1322_v34  ;;  %v4795_v47 = vpack.i.bf16 %v1285_v11, %v1283_v13  ;;  %vm809_vm10 = vcmp.eq.s32.totalorder %v804_v46, %v805_v39  ;;  %v808_v56 = vmul.u32 2, %v802_v52 }
 0x2ef   :  { %845 = vmatpush.msra.mxu2 %v794_v3 }
 0x2f0   :  { %4801 = vrot.lane.b32.xlu2 %v4800_v42, %s5073_s18  ;;  %4796 = vrot.lane.b32.xlu1 %v4795_v47, %s5072_s17  ;;  %vm812_vm5 = vcmp.eq.s32.totalorder %v804_v46, %v808_v56 }
 0x2f1   :  { %846 = vmatpush.msra.mxu2 %v793_v23 }
 0x2f3   :  { %847 = vmatpush.msra.mxu2 %v792_v14 }
 0x2f5   :  { %848 = vmatpush.msra.mxu2 %v791_v48 }
 0x2f7   :  { %849 = vmatpush.msra.mxu2 %v790_v62 }
 0x2f9   :  { %1387 = vmatpush.bf16.msrb.mxu2 %v5596_v45  ;;  %v5074_v45 = vmov 0.0  }
 0x2fa   :  { %v5883_v16 = vsel %vm809_vm10, 1.0, %v5074_v45  ;;  %v5901_v22 = vsel %vm812_vm5, 1.0, %v5074_v45 }
 0x2fb   :  { %4380 = vmatmul.msk.f32.vlgmr.msra.gmra.mxu2 %vm817_vm13, %v5883_v16 }
 0x2fd   :  { %1388 = vmatpush.bf16.msrb.mxu2 %v5669_v58  ;;  %v800_v58 = vadd.s32 8, %v799_v51 }
 0x301   :  { %1389 = vmatpush.bf16.msrb.mxu2 %v5675_v7  ;;  %v806_v7 = vmul.u32 2, %v800_v58 }
 0x303   :  { %vm810_vm15 = vcmp.eq.s32.totalorder %v804_v46, %v806_v7 }
 0x305   :  { %1390 = vmatpush.bf16.msrb.mxu2 %v5681_v53  ;;  %v1236_v53 = vpop.f32.mrf.mxu3 }
 0x309   :  { %1391 = vmatpush.bf16.msrb.mxu2 %v5687_v61  ;;  %v5887_v61 = vsel %vm810_vm15, 1.0, %v5074_v45 }
 0x30a   :  { %4381 = vmatmul.msk.f32.gmra.mxu2 %vm817_vm13, %v5887_v61 }
 0x30d   :  { %1392 = vmatpush.bf16.msrb.mxu2 %v5693_v8  ;;  %v1237_v8 = vadd.f32 %v5497_v35, %v1236_v53 }
 0x30f   :  { %v1260_v50 = vmul.f32 0.01, %v1237_v8  ;;  %vm1252_vm4 = vcmp.gt.f32.partialorder %v1237_v8, 0.0 }
 0x311   :  { %1393 = vmatpush.bf16.msrb.mxu2 %v5699_v9  ;;  %v801_v9 = vadd.s32 16, %v799_v51  ;;  %v5896_v55 = vsel %vm1252_vm4, %v1237_v8, %v1260_v50 }
 0x312   :  { %v1286_v10 = vrot.slane %v5896_v55, 1  ;;  %v1325_v63 = vrot.slane %v5896_v55, 2 }
 0x314   :  { %v1287_v21 = vsel %vm7224_vm0, %v1284_v6, %v1286_v10  ;;  %v1326_v12 = vsel %vm196_vm1, %v1323_v59, %v1325_v63 }
 0x315   :  { %1394 = vmatpush.bf16.msrb.mxu2 %v5705_v40  ;;  %v807_v40 = vmul.u32 2, %v801_v9 }
 0x317   :  { %vm811_vm2 = vcmp.eq.s32.totalorder %v804_v46, %v807_v40 }
 0x318   :  { %v5892_v54 = vsel %vm811_vm2, 1.0, %v5074_v45 }
 0x319   :  { %4382 = vmatmul.msk.f32.gmra.mxu2 %vm817_vm13, %v5892_v54 }
 0x321   :  { %4383 = vmatmul.msk.f32.gmra.mxu2 %vm817_vm13, %v5901_v22 }
 0x33e   :  { %v1239_v17 = vpop.f32.mrf.mxu3 }
 0x33f   :  { %v1240_v38 = vadd.f32 %v5497_v35, %v1239_v17 }
 0x341   :  { %vm1253_vm6 = vcmp.gt.f32.partialorder %v1240_v38, 0.0  ;;  %v1261_v32 = vmul.f32 0.01, %v1240_v38 }
 0x343   :  { %v5903_v57 = vsel %vm1253_vm6, %v1240_v38, %v1261_v32 }
 0x344   :  { %v1288_v20 = vrot.slane %v5903_v57, 1  ;;  %v1327_v0 = vrot.slane %v5903_v57, 2 }
 0x346   :  { %v1241_v60 = vpop.f32.mrf.mxu3  ;;  %v1289_v1 = vsel %vm7224_vm0, %v1286_v10, %v1288_v20  ;;  %v1328_v5 = vsel %vm196_vm1, %v1325_v63, %v1327_v0 }
 0x347   :  { %v1242_v44 = vadd.f32 %v5497_v35, %v1241_v60  ;;  %v4805_v15 = vpack.i.bf16 %v1289_v1, %v1287_v21  ;;  %v4810_v4 = vpack.i.bf16 %v1328_v5, %v1326_v12 }
 0x349   :  { %4806 = vrot.lane.b32.xlu0 %v4805_v15, %s5072_s17  ;;  %4811 = vrot.lane.b32.xlu1 %v4810_v4, %s5073_s18  ;;  %v1262_v25 = vmul.f32 0.01, %v1242_v44  ;;  %vm1254_vm7 = vcmp.gt.f32.partialorder %v1242_v44, 0.0 }
 0x34a   :  { %v4802_v46 = vpop.permute.xlu2 %4801 }
 0x34b   :  { %v5920_v6 = vsel %vm1254_vm7, %v1242_v44, %v1262_v25  ;;  %v4804_v7 = vunpack.i.h.bf16 %v4802_v46  ;;  %v4803_v53 = vunpack.i.l.bf16 %v4802_v46 }
 0x34c   :  { %v1290_v59 = vrot.slane %v5920_v6, 1  ;;  %v1329_v49 = vrot.slane %v5920_v6, 2 }
 0x34e   :  { %v1244_v26 = vpop.f32.mrf.mxu3  ;;  %v1330_v11 = vsel %vm196_vm1, %v1327_v0, %v1329_v49  ;;  %v1291_v47 = vsel %vm7224_vm0, %v1288_v20, %v1290_v59 }
 0x34f   :  { %v1245_v3 = vadd.f32 %v5497_v35, %v1244_v26 }
 0x351   :  { %vm1255_vm9 = vcmp.gt.f32.partialorder %v1245_v3, 0.0  ;;  %v1263_v19 = vmul.f32 0.01, %v1245_v3 }
 0x353   :  { %v5925_v28 = vsel %vm1255_vm9, %v1245_v3, %v1263_v19  ;;  %vm7226_vm9 = vcmask 251904  }
 0x354   :  { %v1292_v34 = vrot.slane %v5925_v28, 1  ;;  %v1331_v24 = vrot.slane %v5925_v28, 2 }
 0x356   :  { %v1246_v13 = vpop.f32.mrf.mxu3  ;;  %v1332_v42 = vsel %vm196_vm1, %v1329_v49, %v1331_v24  ;;  %v1293_v2 = vsel %vm7224_vm0, %v1290_v59, %v1292_v34 }
 0x357   :  { %v1247_v33 = vadd.f32 %v5497_v35, %v1246_v13  ;;  %v4820_v23 = vpack.i.bf16 %v1332_v42, %v1330_v11  ;;  %v4815_v30 = vpack.i.bf16 %v1293_v2, %v1291_v47  ;;  %v5977_v11 = vld [vmem:[%s7206_s1] sm:$0x1]  ;;  %v5992_v2 = vld [vmem:[%s7211_s6 + $0x8] sm:$0xff] }
 0x359   :  { %vm1256_vm10 = vcmp.gt.f32.partialorder %v1247_v33, 0.0  ;;  %v1264_v29 = vmul.f32 0.01, %v1247_v33  ;;  %4821 = vrot.lane.b32.xlu0 %v4820_v23, %s5073_s18  ;;  %4816 = vrot.lane.b32.xlu2 %v4815_v30, %s5072_s17  ;;  %v4634_v30 = vld [vmem:[%s7212_s7 + $0x8] sm:$0xff] }
 0x35a   :  { %1604 = vmatpush.bf16.msrb.mxu1 %v4634_v30 }
 0x35b   :  { %v5936_v14 = vsel %vm1256_vm10, %v1247_v33, %v1264_v29  ;;  %vm1730_vm10 = vcmask 1047552  }
 0x35c   :  { %v1333_v37 = vrot.slane %v5936_v14, 2  ;;  %v1294_v48 = vrot.slane %v5936_v14, 1 }
 0x35e   :  { %v1334_v62 = vsel %vm196_vm1, %v1331_v24, %v1333_v37  ;;  %v1295_v43 = vsel %vm7224_vm0, %v1292_v34, %v1294_v48 }
 0x35f   :  { %v4830_v51 = vpack.i.bf16 %v1333_v37, %v1334_v62  ;;  %v4825_v35 = vpack.i.bf16 %v1294_v48, %v1295_v43  ;;  %v4633_v62 = vld [vmem:[%s7212_s7] sm:$0xff] }
 0x360   :  { %1605 = vmatpush.bf16.msrb.mxu1 %v4633_v62 }
 0x361   :  { %4831 = vrot.lane.b32.xlu2 %v4830_v51, %s5073_s18  ;;  %4826 = vrot.lane.b32.xlu1 %v4825_v35, %s5072_s17 }
 0x362   :  { %v4797_v39 = vpop.permute.xlu1 %4796 }
 0x363   :  { %v4799_v45 = vunpack.i.h.bf16 %v4797_v39  ;;  %v4798_v58 = vunpack.i.l.bf16 %v4797_v39 }
 0x365   :  { %v1360_v8 = vsel %vm376_vm11, %v5839_v36, %v4799_v45  ;;  %v1359_v9 = vsel %vm376_vm11, %v5842_v31, %v4798_v58 }
 0x366   :  { %v1367_v40 = vsel %vm385_vm12, %v1359_v9, %v4803_v53  ;;  %v1368_v50 = vsel %vm385_vm12, %v1360_v8, %v4804_v7 }
 0x367   :  { %v4405_v52 = vpack.c.bf16 %v1368_v50, %v1367_v40 }
 0x369   :  { %4406 = vmatmul.msk.bf16.vlgmr.msrb.gmra.mxu2 %vm5398_vm14, %v4405_v52 }
 0x37e   :  { %v851_v56 = vpop.f32.mrf.mxu2 }
 0x37f   :  { %v868_v13 = vrot.slane %v851_v56, 7  ;;  %v6022_v56 = vld [vmem:[%s7216_s11] sm:$0xff] }
 0x38d   :  { %v854_v17 = vpop.f32.mrf.mxu2 }
 0x38e   :  { %v869_v5 = vrot.slane %v854_v17, 7 }
 0x390   :  { %v870_v47 = vsel %vm7223_vm3, %v868_v13, %v869_v5 }
 0x391   :  { %v6001_v37 = vadd.f32 %v5992_v2, %v870_v47 }
 0x39c   :  { %v5958_v12 = vpop.f32.mrf.mxu2 }
 0x39d   :  { %v871_v44 = vrot.slane %v5958_v12, 7 }
 0x3b3   :  { %v4817_v15 = vpop.permute.xlu2 %4816 }
 0x3b4   :  { %v4818_v4 = vunpack.i.l.bf16 %v4817_v15 }
 0x3b6   :  { %v1363_v19 = vsel %vm376_vm11, %v5903_v57, %v4818_v4  ;;  %v879_v57 = vsel %vm7223_vm3, %v5977_v11, %v868_v13 }
 0x3bb   :  { %v4807_v38 = vpop.permute.xlu0 %4806  ;;  %v4812_v63 = vpop.permute.xlu1 %4811 }
 0x3bc   :  { %v4809_v32 = vunpack.i.h.bf16 %v4807_v38  ;;  %v4808_v10 = vunpack.i.l.bf16 %v4807_v38  ;;  %v4814_v20 = vunpack.i.h.bf16 %v4812_v63  ;;  %v4813_v0 = vunpack.i.l.bf16 %v4812_v63  ;;  %v4832_v48 = vpop.permute.xlu2 %4831 }
 0x3bd   :  { %v4834_v35 = vunpack.i.h.bf16 %v4832_v48  ;;  %v4833_v46 = vunpack.i.l.bf16 %v4832_v48 }
 0x3be   :  { %v1361_v36 = vsel %vm376_vm11, %v5852_v41, %v4808_v10  ;;  %v1362_v31 = vsel %vm376_vm11, %v5896_v55, %v4809_v32  ;;  %v5966_v41 = vsel %vm7223_vm3, %v869_v5, %v871_v44  ;;  %v4819_v55 = vunpack.i.h.bf16 %v4817_v15 }
 0x3bf   :  { %v1369_v60 = vsel %vm385_vm12, %v1361_v36, %v4813_v0  ;;  %v1370_v21 = vsel %vm385_vm12, %v1362_v31, %v4814_v20  ;;  %v6027_v32 = vperm.slane %v6022_v56, 0 }
 0x3c0   :  { %v4408_v1 = vpack.c.bf16 %v1370_v21, %v1369_v60  ;;  %v1364_v59 = vsel %vm376_vm11, %v5920_v6, %v4819_v55  ;;  %v5986_v6 = vld [vmem:[%s7211_s6] sm:$0xff] }
 0x3c1   :  { %v5998_v29 = vadd.f32 %v5986_v6, %v879_v57 }
 0x3c2   :  { %4409 = vmatmul.msk.bf16.gmra.mxu2 %vm5398_vm14, %v4408_v1 }
 0x3c3   :  { %v1569_v39 = vpack.c.bf16 %v6001_v37, %v5998_v29 }
 0x3c5   :  { %4429 = vmatmul.msk.bf16.vlgmr.msrb.gmra.mxu1 %vm376_vm11, %v1569_v39 }
 0x3cb   :  { %v4822_v25 = vpop.permute.xlu0 %4821 }
 0x3cc   :  { %v4824_v26 = vunpack.i.h.bf16 %v4822_v25  ;;  %v4823_v3 = vunpack.i.l.bf16 %v4822_v25 }
 0x3ce   :  { %v1371_v49 = vsel %vm385_vm12, %v1363_v19, %v4823_v3  ;;  %v1372_v34 = vsel %vm385_vm12, %v1364_v59, %v4824_v26 }
 0x3cf   :  { %v4411_v24 = vpack.c.bf16 %v1372_v34, %v1371_v49 }
 0x3d2   :  { %4412 = vmatmul.msk.bf16.gmra.mxu2 %vm5398_vm14, %v4411_v24 }
 0x3d3   :  { %v4827_v42 = vpop.permute.xlu1 %4826 }
 0x3d4   :  { %v4829_v33 = vunpack.i.h.bf16 %v4827_v42  ;;  %v4828_v23 = vunpack.i.l.bf16 %v4827_v42 }
 0x3d6   :  { %v1365_v43 = vsel %vm376_vm11, %v5925_v28, %v4828_v23  ;;  %v1366_v51 = vsel %vm376_vm11, %v5936_v14, %v4829_v33  ;;  %v6017_v28 = vpop.f32.mrf.mxu2 }
 0x3d7   :  { %v1373_v45 = vsel %vm385_vm12, %v1365_v43, %v4833_v46  ;;  %v1374_v58 = vsel %vm385_vm12, %v1366_v51, %v4834_v35 }
 0x3d8   :  { %v4414_v7 = vpack.c.bf16 %v1374_v58, %v1373_v45 }
 0x3e2   :  { %4415 = vmatmul.msk.bf16.gmra.mxu2 %vm5398_vm14, %v4414_v7 }
 0x3ec   :  { %v1396_v53 = vpop.f32.mrf.mxu2 }
 0x3ed   :  { %v1397_v34 = vadd.f32 %v5823_v18, %v1396_v53 }
 0x3ef   :  { %v1424_v43 = vmul.f32 0.01, %v1397_v34  ;;  %vm1416_vm7 = vcmp.gt.f32.partialorder %v1397_v34, 0.0 }
 0x3f4   :  { %v1398_v14 = vpop.f32.mrf.mxu2 }
 0x3f5   :  { %v1399_v25 = vadd.f32 %v5823_v18, %v1398_v14  ;;  %v1432_v14 = vsel %vm1416_vm7, %v1397_v34, %v1424_v43 }
 0x3f7   :  { %v1425_v47 = vmul.f32 0.01, %v1399_v25  ;;  %vm1417_vm6 = vcmp.gt.f32.partialorder %v1399_v25, 0.0 }
 0x3f9   :  { %v1433_v45 = vsel %vm1417_vm6, %v1399_v25, %v1425_v47 }
 0x442   :  { %v1607_v17 = vpop.f32.mrf.mxu1 }
 0x443   :  { %v1608_v31 = vadd.f32 %v1607_v17, %v6027_v32 }
 0x445   :  { %v1401_v8 = vpop.f32.mrf.mxu2 }
 0x446   :  { %v1402_v1 = vadd.f32 %v5823_v18, %v1401_v8 }
 0x448   :  { %v1426_v24 = vmul.f32 0.01, %v1402_v1  ;;  %vm1418_vm5 = vcmp.gt.f32.partialorder %v1402_v1, 0.0 }
 0x44a   :  { %v1609_v21 = vpop.f32.mrf.mxu1  ;;  %v1434_v51 = vsel %vm1418_vm5, %v1402_v1, %v1426_v24 }
 0x44b   :  { %v1610_v55 = vadd.f32 %v1609_v21, %v6027_v32  ;;  %v1451_v7 = vrot.slane %v1434_v51, 1 }
 0x44d   :  { %v1403_v9 = vpop.f32.mrf.mxu2  ;;  %v6036_v19 = vpack.c.bf16 %v1610_v55, %v1608_v31 }
 0x44e   :  { %v1404_v20 = vadd.f32 %v5823_v18, %v1403_v9  ;;  %v1449_v9 = vrot.slane %v1433_v45, 1 }
 0x44f   :  { %1757 = vrot.lane.b32.xlu2 %v6036_v19, %s5075_s19  ;;  %1761 = vrot.lane.b32.xlu1 %v6036_v19, %s5076_s20 }
 0x450   :  { %v1427_v26 = vmul.f32 0.01, %v1404_v20  ;;  %vm1419_vm4 = vcmp.gt.f32.partialorder %v1404_v20, 0.0 }
 0x452   :  { %v1435_v30 = vsel %vm1419_vm4, %v1404_v20, %v1427_v26 }
 0x453   :  { %v1453_v46 = vrot.slane %v1435_v30, 1 }
 0x455   :  { %v1406_v40 = vpop.f32.mrf.mxu2  ;;  %v1454_v8 = vsel %vm7224_vm0, %v1451_v7, %v1453_v46 }
 0x456   :  { %v1407_v10 = vadd.f32 %v5823_v18, %v1406_v40  ;;  %v1473_v17 = vmax.f32 %v1434_v51, %v1454_v8 }
 0x457   :  { %1631 = vrot.lane.b32.xlu2 %v6036_v19, %s5077_s21 }
 0x458   :  { %v1428_v5 = vmul.f32 0.01, %v1407_v10  ;;  %vm1420_vm2 = vcmp.gt.f32.partialorder %v1407_v10, 0.0 }
 0x45a   :  { %v1436_v42 = vsel %vm1420_vm2, %v1407_v10, %v1428_v5 }
 0x45b   :  { %v1455_v62 = vrot.slane %v1436_v42, 1 }
 0x45d   :  { %v1408_v50 = vpop.f32.mrf.mxu2  ;;  %v1456_v58 = vsel %vm7224_vm0, %v1453_v46, %v1455_v62 }
 0x45e   :  { %v1409_v27 = vadd.f32 %v5823_v18, %v1408_v50  ;;  %v1474_v40 = vmax.f32 %v1435_v30, %v1456_v58  ;;  %v1452_v50 = vsel %vm7224_vm0, %v1449_v9, %v1451_v7 }
 0x460   :  { %v1429_v0 = vmul.f32 0.01, %v1409_v27  ;;  %vm1421_vm14 = vcmp.gt.f32.partialorder %v1409_v27, 0.0 }
 0x462   :  { %v1437_v3 = vsel %vm1421_vm14, %v1409_v27, %v1429_v0  ;;  %v1472_v27 = vmax.f32 %v1433_v45, %v1452_v50 }
 0x463   :  { %v1457_v57 = vrot.slane %v1437_v3, 1 }
 0x465   :  { %v1411_v52 = vpop.f32.mrf.mxu2  ;;  %v1458_v35 = vsel %vm7224_vm0, %v1455_v62, %v1457_v57 }
 0x466   :  { %v1412_v38 = vadd.f32 %v5823_v18, %v1411_v52  ;;  %v1475_v53 = vmax.f32 %v1436_v42, %v1458_v35  ;;  %v1448_v52 = vrot.slane %v1432_v14, 1 }
 0x468   :  { %v1430_v63 = vmul.f32 0.01, %v1412_v38  ;;  %vm1422_vm1 = vcmp.gt.f32.partialorder %v1412_v38, 0.0 }
 0x46a   :  { %v1438_v15 = vsel %vm1422_vm1, %v1412_v38, %v1430_v63  ;;  %v1450_v38 = vsel %vm7224_vm0, %v1448_v52, %v1449_v9  ;;  %v873_v63 = vrot.slane %v6017_v28, 7  ;;  %vm7225_vm1 = vsmask.f32 4352 }
 0x46b   :  { %v1459_v49 = vrot.slane %v1438_v15, 1  ;;  %v1471_v10 = vmax.f32 %v1432_v14, %v1450_v38 }
 0x46d   :  { %v1413_v36 = vpop.f32.mrf.mxu2 }
 0x46e   :  { %v1414_v60 = vadd.f32 %v5823_v18, %v1413_v36  ;;  %v1460_v18 = vsel %vm7224_vm0, %v1457_v57, %v1459_v49  ;;  %v874_v36 = vsel %vm7223_vm3, %v871_v44, %v873_v63 }
 0x46f   :  { %v1476_v39 = vmax.f32 %v1437_v3, %v1460_v18 }
 0x470   :  { %vm1423_vm15 = vcmp.gt.f32.partialorder %v1414_v60, 0.0  ;;  %v1431_v4 = vmul.f32 0.01, %v1414_v60 }
 0x472   :  { %v1439_v59 = vsel %vm1423_vm15, %v1414_v60, %v1431_v4 }
 0x473   :  { %v1461_v13 = vrot.slane %v1439_v59, 1 }
 0x475   :  { %v1478_v33 = vmax.f32 %v1439_v59, %v1461_v13  ;;  %v1462_v23 = vsel %vm7224_vm0, %v1459_v49, %v1461_v13 }
 0x476   :  { %v1477_v48 = vmax.f32 %v1438_v15, %v1462_v23 }
 0x477   :  { %4416 = vmatpush.msk.msrb.mxu0 %vm830_vm8, %v1478_v33  ;;  %vm1635_vm8 = vcmask 130048  }
 0x479   :  { %1491 = vmatpush.msrb.mxu0 %v1477_v48 }
 0x47b   :  { %1492 = vmatpush.msrb.mxu0 %v1476_v39 }
 0x47d   :  { %1493 = vmatpush.msrb.mxu0 %v1475_v53 }
 0x47f   :  { %1494 = vmatpush.msrb.mxu0 %v1474_v40 }
 0x481   :  { %1495 = vmatpush.msrb.mxu0 %v1473_v17 }
 0x483   :  { %1496 = vmatpush.msrb.mxu0 %v1472_v27 }
 0x485   :  { %1497 = vmatpush.msrb.mxu0 %v1471_v10 }
 0x486   :  { %4417 = vmatmul.msk.f32.vlgmr.msrb.gmra.mxu0 %vm817_vm13, %v5883_v16  ;;  %v883_v16 = vld [vmem:[%s7211_s6 + $0x18] sm:$0x7f] }
 0x487   :  { %v887_v28 = vadd.f32 %v883_v16, %v874_v36 }
 0x48e   :  { %4418 = vmatmul.msk.f32.gmra.mxu0 %vm817_vm13, %v5887_v61 }
 0x496   :  { %4419 = vmatmul.msk.f32.gmra.mxu0 %vm817_vm13, %v5892_v54 }
 0x49e   :  { %4420 = vmatmul.msk.f32.gmra.mxu0 %vm817_vm13, %v5901_v22  ;;  %v882_v22 = vld [vmem:[%s7211_s6 + $0x10] sm:$0xff]  ;;  %vm1671_vm13 = vcmask 252928   ;;  %s5078_s6 = smov 48  }
 0x49f   :  { %v6075_v60 = vadd.f32 %v882_v22, %v5966_v41 }
 0x4a9   :  { %v1758_v62 = vpop.permute.xlu2 %1757 }
 0x4b1   :  { %v1632_v39 = vpop.permute.xlu2 %1631 }
 0x4b2   :  { %v1643_v45 = vsel %vm1635_vm8, %v1632_v39, 0 }
 0x4c1   :  { %v1762_v18 = vpop.permute.xlu1 %1761 }
 0x4c2   :  { %v1772_v58 = vsel %vm1635_vm8, %v1762_v18, 0 }
 0x503   :  { %v1499_v20 = vpop.f32.mrf.mxu0 }
 0x504   :  { %v1515_v0 = vrot.slane %v1499_v20, 7 }
 0x506   :  { %v1526_v61 = vsel %vm7223_vm3, %v5977_v11, %v1515_v0 }
 0x507   :  { %v1527_v54 = vadd.f32 %v1526_v61, %v5986_v6 }
 0x509   :  { %v1535_v31 = vrot.slane %v1527_v54, 1 }
 0x50b   :  { %v1502_v12 = vpop.f32.mrf.mxu0  ;;  %v6078_v44 = vsel %vm7224_vm0, %v887_v28, %v1535_v31 }
 0x50c   :  { %v1516_v21 = vrot.slane %v1502_v12, 7  ;;  %v1570_v1 = vpack.c.bf16 %v6078_v44, %v6075_v60 }
 0x50e   :  { %4430 = vmatmul.msk.bf16.gmra.mxu1 %vm376_vm11, %v1570_v1  ;;  %v1517_v11 = vsel %vm7223_vm3, %v1515_v0, %v1516_v21 }
 0x50f   :  { %v1528_v6 = vadd.f32 %v1517_v11, %v5992_v2 }
 0x511   :  { %v1536_v41 = vrot.slane %v1528_v6, 1 }
 0x513   :  { %v1505_v5 = vpop.f32.mrf.mxu0  ;;  %v6087_v26 = vsel %vm7224_vm0, %v1535_v31, %v1536_v41 }
 0x514   :  { %v1518_v15 = vrot.slane %v1505_v5, 7 }
 0x516   :  { %v1519_v55 = vsel %vm7223_vm3, %v1516_v21, %v1518_v15 }
 0x517   :  { %v1529_v4 = vadd.f32 %v1519_v55, %v882_v22 }
 0x519   :  { %v1538_v25 = vrot.slane %v1529_v4, 1 }
 0x51b   :  { %v6090_v3 = vsel %vm7224_vm0, %v1536_v41, %v1538_v25  ;;  %v1508_v59 = vpop.f32.mrf.mxu0 }
 0x51c   :  { %v1571_v49 = vpack.c.bf16 %v6090_v3, %v6087_v26  ;;  %v1520_v34 = vrot.slane %v1508_v59, 7 }
 0x51e   :  { %4431 = vmatmul.msk.bf16.gmra.mxu1 %vm376_vm11, %v1571_v49  ;;  %v1521_v2 = vsel %vm7223_vm3, %v1518_v15, %v1520_v34  ;;  %v5079_v34 = vmov 65535  }
 0x51f   :  { %v1530_v24 = vadd.f32 %v1521_v2, %v883_v16  ;;  %v1731_v2 = vsel %vm7224_vm0, 4294967295, %v5079_v34 }
 0x521   :  { %v6096_v13 = vrot.slane %v1530_v24, 1 }
 0x523   :  { %v6100_v42 = vsel %vm7224_vm0, %v1538_v25, %v6096_v13 }
 0x524   :  { %v1572_v57 = vpack.c.bf16 %v6096_v13, %v6100_v42 }
 0x52e   :  { %4432 = vmatmul.msk.bf16.gmra.mxu1 %vm376_vm11, %v1572_v57  ;;  %v6151_v57 = vsel %vm1730_vm10, %v1731_v2, 0 }
 0x58b   :  { %v1612_v47 = vpop.f32.mrf.mxu1 }
 0x58c   :  { %v1613_v23 = vadd.f32 %v1612_v47, %v6027_v32 }
 0x593   :  { %v1614_v33 = vpop.f32.mrf.mxu1 }
 0x594   :  { %v6107_v30 = vadd.f32 %v1614_v33, %v6027_v32 }
 0x596   :  { %v6110_v48 = vpack.c.bf16 %v6107_v30, %v1613_v23 }
 0x598   :  { %1633 = vrot.lane.b32.xlu1 %v6110_v48, %s5077_s21  ;;  %1763 = vrot.lane.b32.xlu0 %v6110_v48, %s5076_s20 }
 0x59b   :  { %v1617_v39 = vpop.f32.mrf.mxu1 }
 0x5a0   :  { %1759 = vrot.lane.b32.xlu0 %v6110_v48, %s5075_s19 }
 0x60a   :  { %v1634_v43 = vpop.permute.xlu1 %1633  ;;  %v1764_v51 = vpop.permute.xlu0 %1763 }
 0x60b   :  { %v1775_v35 = vsel %vm1635_vm8, %v1764_v51, 0  ;;  %v1646_v46 = vsel %vm1635_vm8, %v1634_v43, 0 }
 0x60c   :  { %1654 = vmatpush.bf16.xpose.msrb.mxu3 %v1646_v46  ;;  %1783 = vmatpush.bf16.xpose.msra.mxu0 %v1775_v35 }
 0x612   :  { %v1760_v7 = vpop.permute.xlu0 %1759 }
 0x614   :  { %1655 = vmatpush.bf16.xpose.msrb.mxu3 %v1643_v45  ;;  %1784 = vmatpush.bf16.xpose.msra.mxu0 %v1772_v58  ;;  %v1619_v45 = vpop.f32.mrf.mxu1 }
 0x61b   :  { %4433 = vmatmul.msk.bf16.vlgmr.msrb.gmra.mxu3 %vm1635_vm8, %v6036_v19  ;;  %4437 = vmatmul.msk.bf16.vlgmr.msra.gmra.mxu0 %vm1635_vm8, %v1758_v62 }
 0x62b   :  { %4434 = vmatmul.msk.bf16.gmra.mxu3 %vm1635_vm8, %v6110_v48  ;;  %4438 = vmatmul.msk.bf16.gmra.mxu0 %vm1635_vm8, %v1760_v7 }
 0x698   :  { %v1786_v53 = vpop.f32.mrf.mxu0 }
 0x699   :  { %v1796_v14 = vmul.f32 0.25, %v1786_v53  ;;  %v1622_v53 = vpop.f32.mrf.mxu1 }
 0x69b   :  { %v1800_v8 = vsel %vm1671_vm13, %v1796_v14, -inf }
 0x69c   :  { %1801 = vmax.xlane.f32.xlu0 %v1800_v8  ;;  %v1618_v8 = vadd.f32 %v1617_v39, %v6027_v32 }
 0x69e   :  { %v1657_v20 = vpop.f32.mrf.mxu3 }
 0x69f   :  { %v1667_v62 = vmul.f32 0.25, %v1657_v20 }
 0x6a0   :  { %v1788_v9 = vpop.f32.mrf.mxu0 }
 0x6a1   :  { %v1797_v40 = vmul.f32 0.25, %v1788_v9  ;;  %v1672_v43 = vsel %vm1671_vm13, %v1667_v62, -inf  ;;  %v1620_v9 = vadd.f32 %v1619_v45, %v6027_v32 }
 0x6a3   :  { %v1803_v50 = vsel %vm1671_vm13, %v1797_v40, -inf }
 0x6a4   :  { %1804 = vmax.xlane.f32.xlu1 %v1803_v50  ;;  %v1943_v50 = vpack.c.bf16 %v1618_v8, %v6107_v30 }
 0x6a6   :  { %v1659_v0 = vpop.f32.mrf.mxu3 }
 0x6a7   :  { %v6165_v58 = vmul.f32 0.25, %v1659_v0 }
 0x6a8   :  { %v1791_v52 = vpop.f32.mrf.mxu0 }
 0x6a9   :  { %v1798_v17 = vmul.f32 0.25, %v1791_v52  ;;  %v1675_v7 = vsel %vm1671_vm13, %v6165_v58, -inf }
 0x6ab   :  { %v1806_v38 = vsel %vm1671_vm13, %v1798_v17, -inf }
 0x6ac   :  { %1807 = vmax.xlane.f32.xlu2 %v1806_v38 }
 0x6ae   :  { %v1662_v36 = vpop.f32.mrf.mxu3 }
 0x6af   :  { %v6134_v16 = vmul.f32 0.25, %v1662_v36 }
 0x6b0   :  { %v1793_v27 = vpop.f32.mrf.mxu0 }
 0x6b1   :  { %v1799_v10 = vmul.f32 0.25, %v1793_v27  ;;  %v1678_v61 = vsel %vm1671_vm13, %v6134_v16, -inf }
 0x6b3   :  { %v1809_v63 = vsel %vm7226_vm9, %v1799_v10, -inf }
 0x6b4   :  { %1810 = vmax.xlane.f32.xlu2 %v1809_v63  ;;  %v1951_v63 = vshll.u32 %v1943_v50, 16 }
 0x6b6   :  { %v1664_v51 = vpop.f32.mrf.mxu3 }
 0x6b7   :  { %v6161_v35 = vmul.f32 0.25, %v1664_v51 }
 0x6b9   :  { %v1682_v46 = vsel %vm7226_vm9, %v6161_v35, -inf }
 0x6cc   :  { %1848 = vrot.lane.b32.xlu2 %v6110_v48, %s5078_s6 }
 0x6f5   :  { %1679 = vmax.xlane.f32.xlu2 %v1678_v61 }
 0x70f   :  { %v1802_v54 = vpop.xlane.xlu0 %1801 }
 0x710   :  { %v1812_v22 = vsub.f32 %v1796_v14, %v1802_v54  ;;  %v1623_v14 = vadd.f32 %v1622_v53, %v6027_v32  ;;  %v1953_v54 = vrot.slane %v1951_v63, 4 }
 0x712   :  { %v1816_v28 = vmul.f32 1.442695, %v1812_v22 }
 0x714   :  { %4841 = vpow2.f32 %v1816_v28 }
 0x717   :  { %v1805_v31 = vpop.xlane.xlu1 %1804 }
 0x718   :  { %v1813_v12 = vsub.f32 %v1797_v40, %v1805_v31  ;;  %v1944_v40 = vpack.c.bf16 %v1623_v14, %v1620_v9 }
 0x71a   :  { %v6138_v21 = vpop.eup %4841  ;;  %v1818_v1 = vmul.f32 1.442695, %v1813_v12  ;;  %v1959_v38 = vshll.u32 %v1944_v40, 16 }
 0x71b   :  { %v1824_v11 = vsel %vm1671_vm13, %v6138_v21, 0.0 }
 0x71c   :  { %4843 = vpow2.f32 %v1818_v1  ;;  %1825 = vadd.xlane.f32.xlu0 %v1824_v11  ;;  %v1961_v36 = vrot.slane %v1959_v38, 4 }
 0x71f   :  { %v1808_v6 = vpop.xlane.xlu2 %1807 }
 0x720   :  { %v1814_v5 = vsub.f32 %v1798_v17, %v1808_v6  ;;  %v1956_v17 = vshrl.u32 %v1944_v40, 16 }
 0x722   :  { %v6142_v15 = vpop.eup %4843  ;;  %v1820_v55 = vmul.f32 1.442695, %v1814_v5  ;;  %v1958_v0 = vrot.slane %v1956_v17, 3 }
 0x723   :  { %v1827_v41 = vsel %vm1671_vm13, %v6142_v15, 0.0 }
 0x724   :  { %4845 = vpow2.f32 %v1820_v55  ;;  %1828 = vadd.xlane.f32.xlu1 %v1827_v41  ;;  %v1962_v22 = vor.u32 %v1961_v36, %v1958_v0 }
 0x727   :  { %v1811_v4 = vpop.xlane.xlu2 %1810 }
 0x728   :  { %v1815_v25 = vsub.f32 %v1799_v10, %v1811_v4  ;;  %v1948_v10 = vshrl.u32 %v1943_v50, 16 }
 0x72a   :  { %v6146_v59 = vpop.eup %4845  ;;  %v1822_v49 = vmul.f32 1.442695, %v1815_v25  ;;  %v1950_v61 = vrot.slane %v1948_v10, 3 }
 0x72b   :  { %v1830_v24 = vsel %vm1671_vm13, %v6146_v59, 0.0 }
 0x72c   :  { %4847 = vpow2.f32 %v1822_v49  ;;  %1831 = vadd.xlane.f32.xlu1 %v1830_v24  ;;  %v1954_v30 = vor.u32 %v1953_v54, %v1950_v61  ;;  %v4636_v54 = vld [vmem:[%s7213_s8 + $0x8] sm:$0xff] }
 0x72f   :  { %v1849_v47 = vpop.permute.xlu2 %1848 }
 0x730   :  { %v1858_v33 = vand.u32 %v1849_v47, %v6151_v57  ;;  %1846 = vrot.lane.b32.xlu0 %v6036_v19, %s5078_s6 }
 0x732   :  { %v6156_v23 = vpop.eup %4847  ;;  %1866 = vmatpush.bf16.msra.mxu3 %v1858_v33 }
 0x733   :  { %v1833_v18 = vsel %vm7226_vm9, %v6156_v23, 0.0 }
 0x734   :  { %1834 = vadd.xlane.f32.xlu1 %v1833_v18 }
 0x73c   :  { %1673 = vmax.xlane.f32.xlu1 %v1672_v43 }
 0x744   :  { %1683 = vmax.xlane.f32.xlu1 %v1682_v46 }
 0x75a   :  { %1676 = vmax.xlane.f32.xlu0 %v1675_v7 }
 0x768   :  { %v1680_v52 = vpop.xlane.xlu2 %1679 }
 0x769   :  { %v1687_v27 = vsub.f32 %v6134_v16, %v1680_v52  ;;  %v6181_v16 = vsel %vm7225_vm1, %v1954_v30, %v1962_v22 }
 0x76b   :  { %v1693_v20 = vmul.f32 1.442695, %v1687_v27 }
 0x76d   :  { %4849 = vpow2.f32 %v1693_v20 }
 0x76e   :  { %1719 = vrot.lane.b32.xlu0 %v6036_v19, %s5073_s18 }
 0x773   :  { %v6176_v28 = vpop.eup %4849 }
 0x774   :  { %v1703_v31 = vsel %vm1671_vm13, %v6176_v28, 0.0 }
 0x775   :  { %1704 = vadd.xlane.f32.xlu2 %v1703_v31 }
 0x776   :  { %2097 = vrot.lane.b32.xlu0 %v6181_v16, %s5076_s20 }
 0x78f   :  { %v1826_v12 = vpop.xlane.xlu0 %1825 }
 0x797   :  { %v1829_v1 = vpop.xlane.xlu1 %1828 }
 0x798   :  { %4851 = vrcp.f32 %v1829_v1 }
 0x799   :  { %4853 = vrcp.f32 %v1826_v12 }
 0x79e   :  { %v4852_v19 = vpop.eup %4851 }
 0x79f   :  { %v4854_v11 = vpop.eup %4853  ;;  %v1832_v6 = vpop.xlane.xlu1 %1831  ;;  %v1841_v5 = vmul.f32 %v4852_v19, %v6142_v15 }
 0x7a0   :  { %v1840_v55 = vmul.f32 %v4854_v11, %v6138_v21 }
 0x7a2   :  { %v1847_v41 = vpop.permute.xlu0 %1846  ;;  %v1844_v4 = vpack.c.bf16 %v1841_v5, %v1840_v55 }
 0x7a3   :  { %1867 = vmatpush.bf16.msra.mxu3 %v1847_v41 }
 0x7a6   :  { %4439 = vmatmul.msk.bf16.vlgmr.msra.gmra.mxu3 %vm1671_vm13, %v1844_v4 }
 0x7a7   :  { %v1835_v25 = vpop.xlane.xlu1 %1834 }
 0x7a8   :  { %4855 = vrcp.f32 %v1835_v25 }
 0x7a9   :  { %4857 = vrcp.f32 %v1832_v6 }
 0x7ae   :  { %v4856_v49 = vpop.eup %4855 }
 0x7af   :  { %v4858_v34 = vpop.eup %4857  ;;  %v1674_v2 = vpop.xlane.xlu1 %1673  ;;  %v1843_v47 = vmul.f32 %v4856_v49, %v6156_v23 }
 0x7b0   :  { %v1685_v24 = vsub.f32 %v1667_v62, %v1674_v2  ;;  %v1842_v18 = vmul.f32 %v4858_v34, %v6146_v59 }
 0x7b2   :  { %v1689_v33 = vmul.f32 1.442695, %v1685_v24  ;;  %v1845_v15 = vpack.c.bf16 %v1843_v47, %v1842_v18 }
 0x7b4   :  { %4859 = vpow2.f32 %v1689_v33 }
 0x7b6   :  { %4440 = vmatmul.msk.bf16.gmra.mxu3 %vm1671_vm13, %v1845_v15 }
 0x7b7   :  { %v1684_v21 = vpop.xlane.xlu1 %1683 }
 0x7b8   :  { %v1688_v43 = vsub.f32 %v6161_v35, %v1684_v21  ;;  %v1624_v35 = vpop.f32.mrf.mxu1 }
 0x7b9   :  { %v1625_v8 = vadd.f32 %v1624_v35, %v6027_v32 }
 0x7ba   :  { %v4860_v51 = vpop.eup %4859  ;;  %v1695_v46 = vmul.f32 1.442695, %v1688_v43  ;;  %v6231_v43 = vld [vmem:[%s7213_s8] sm:$0xff] }
 0x7bb   :  { %v1697_v39 = vsel %vm1671_vm13, %v4860_v51, 0.0  ;;  %v1945_v9 = vpack.c.bf16 %v1625_v8, %v1625_v8  ;;  %1931 = vmatpush.bf16.msrb.mxu0 %v6231_v43 }
 0x7bc   :  { %4861 = vpow2.f32 %v1695_v46  ;;  %1698 = vadd.xlane.f32.xlu1 %v1697_v39 }
 0x7bd   :  { %v1965_v40 = vshrl.u32 %v1945_v9, 16  ;;  %v1968_v50 = vshll.u32 %v1945_v9, 16 }
 0x7bf   :  { %v1967_v52 = vrot.slane %v1965_v40, 3  ;;  %v1970_v17 = vrot.slane %v1968_v50, 4 }
 0x7c2   :  { %v4862_v45 = vpop.eup %4861 }
 0x7c3   :  { %v1706_v62 = vsel %vm7226_vm9, %v4862_v45, 0.0 }
 0x7c4   :  { %1707 = vadd.xlane.f32.xlu2 %v1706_v62 }
 0x7cd   :  { %v1677_v23 = vpop.xlane.xlu0 %1676 }
 0x7ce   :  { %v1686_v59 = vsub.f32 %v6165_v58, %v1677_v23  ;;  %v1971_v58 = vor.u32 %v1970_v17, %v1967_v52 }
 0x7d0   :  { %v1691_v7 = vmul.f32 1.442695, %v1686_v59  ;;  %v6202_v38 = vsel %vm7225_vm1, %v1962_v22, %v1971_v58 }
 0x7d2   :  { %4863 = vpow2.f32 %v1691_v7 }
 0x7d8   :  { %v4864_v53 = vpop.eup %4863 }
 0x7d9   :  { %v1700_v14 = vsel %vm1671_vm13, %v4864_v53, 0.0 }
 0x7da   :  { %1701 = vadd.xlane.f32.xlu1 %v1700_v14 }
 0x7dc   :  { %1973 = vrot.lane.b32.xlu2 %v6181_v16, %s5077_s21 }
 0x7e0   :  { %v1720_v22 = vpop.permute.xlu0 %1719 }
 0x7e8   :  { %v1705_v10 = vpop.xlane.xlu2 %1704  ;;  %v2098_v33 = vpop.permute.xlu0 %2097 }
 0x7e9   :  { %v2108_v18 = vsel %vm1635_vm8, %v2098_v33, 0 }
 0x7f3   :  { %1721 = vrot.lane.b32.xlu1 %v6110_v48, %s5073_s18 }
 0x7fb   :  { %1975 = vrot.lane.b32.xlu1 %v6202_v38, %s5077_s21 }
 0x803   :  { %2099 = vrot.lane.b32.xlu1 %v6202_v38, %s5076_s20 }
 0x80b   :  { %2093 = vrot.lane.b32.xlu1 %v6181_v16, %s5075_s19 }
 0x829   :  { %v1869_v4 = vpop.f32.mrf.mxu3 }
 0x82f   :  { %v1699_v32 = vpop.xlane.xlu1 %1698 }
 0x831   :  { %v1871_v49 = vpop.f32.mrf.mxu3 }
 0x832   :  { %v1879_v2 = vpack.c.bf16 %v1871_v49, %v1869_v4 }
 0x837   :  { %v1708_v36 = vpop.xlane.xlu2 %1707 }
 0x839   :  { %v1874_v47 = vpop.f32.mrf.mxu3 }
 0x83f   :  { %v1974_v19 = vpop.permute.xlu2 %1973 }
 0x840   :  { %v1984_v6 = vsel %vm1635_vm8, %v1974_v19, 0 }
 0x84d   :  { %v1702_v27 = vpop.xlane.xlu1 %1701 }
 0x84e   :  { %4865 = vrcp.f32 %v1702_v27 }
 0x84f   :  { %4867 = vrcp.f32 %v1699_v32 }
 0x850   :  { %4869 = vrcp.f32 %v1708_v36 }
 0x851   :  { %4871 = vrcp.f32 %v1705_v10 }
 0x854   :  { %v4866_v48 = vpop.eup %4865 }
 0x855   :  { %v4868_v0 = vpop.eup %4867  ;;  %v1714_v61 = vmul.f32 %v4866_v48, %v4864_v53 }
 0x856   :  { %v1713_v30 = vmul.f32 %v4868_v0, %v4860_v51  ;;  %v4870_v11 = vpop.eup %4869 }
 0x857   :  { %v4872_v5 = vpop.eup %4871  ;;  %v1716_v55 = vmul.f32 %v4870_v11, %v4862_v45 }
 0x858   :  { %v1717_v31 = vpack.c.bf16 %v1714_v61, %v1713_v30  ;;  %v1715_v41 = vmul.f32 %v4872_v5, %v6176_v28  ;;  %v1876_v28 = vpop.f32.mrf.mxu3 }
 0x859   :  { %v1880_v15 = vpack.c.bf16 %v1876_v28, %v1874_v47 }
 0x85a   :  { %v1718_v25 = vpack.c.bf16 %v1716_v55, %v1715_v41 }
 0x865   :  { %v1722_v63 = vpop.permute.xlu1 %1721 }
 0x866   :  { %v1734_v20 = vand.u32 %v6151_v57, %v1722_v63 }
 0x868   :  { %1742 = vmatpush.bf16.msra.mxu2 %v1734_v20 }
 0x86c   :  { %1743 = vmatpush.bf16.msra.mxu2 %v1720_v22 }
 0x86d   :  { %v1976_v12 = vpop.permute.xlu1 %1975 }
 0x86e   :  { %v1987_v1 = vsel %vm1635_vm8, %v1976_v12, 0 }
 0x86f   :  { %4435 = vmatmul.msk.bf16.vlgmr.msra.gmra.mxu2 %vm1671_vm13, %v1717_v31  ;;  %1995 = vmatpush.bf16.xpose.msra.mxu1 %v1987_v1 }
 0x870   :  { %1900 = vmatpush.bf16.msrb.mxu2 %v4636_v54 }
 0x874   :  { %4657 = vmatpush.bf16.xpose.msra.mxu2 %v1987_v1 }
 0x875   :  { %v2100_v34 = vpop.permute.xlu1 %2099 }
 0x876   :  { %v2111_v24 = vsel %vm1635_vm8, %v2100_v34, 0 }
 0x877   :  { %1996 = vmatpush.bf16.xpose.msra.mxu1 %v1984_v6 }
 0x87c   :  { %4658 = vmatpush.bf16.xpose.msra.mxu2 %v1984_v6 }
 0x87d   :  { %v2094_v21 = vpop.permute.xlu1 %2093 }
 0x87e   :  { %4453 = vmatmul.msk.bf16.vlgmr.msra.gmra.mxu1 %vm1635_vm8, %v6181_v16 }
 0x87f   :  { %2230 = vmatpush.bf16.msrb.mxu1 %v4636_v54  ;;  %4436 = vmatmul.msk.bf16.gmra.mxu2 %vm1671_vm13, %v1718_v25 }
 0x88f   :  { %4445 = vmatmul.msk.bf16.vlgmr.msrb.gmra.mxu2 %vm1635_vm8, %v1879_v2 }
 0x890   :  { %2119 = vmatpush.bf16.xpose.msrb.mxu2 %v2111_v24 }
 0x898   :  { %2120 = vmatpush.bf16.xpose.msrb.mxu2 %v2108_v18 }
 0x89f   :  { %4446 = vmatmul.msk.bf16.gmra.mxu2 %vm1635_vm8, %v1880_v15 }
 0x8af   :  { %4454 = vmatmul.msk.bf16.vlgmr.msra.gmra.mxu2 %vm1635_vm8, %v6202_v38 }
 0x8bf   :  { %4457 = vmatmul.msk.bf16.vlgmr.msrb.gmra.mxu2 %vm1635_vm8, %v2094_v21 }
 0x8f2   :  { %v1745_v51 = vpop.f32.mrf.mxu2 }
 0x8fa   :  { %v1747_v46 = vpop.f32.mrf.mxu2 }
 0x8fb   :  { %v1755_v39 = vpack.c.bf16 %v1747_v46, %v1745_v51  ;;  %v1998_v45 = vpop.f32.mrf.mxu1 }
 0x8fc   :  { %v2008_v62 = vmul.f32 0.25, %v1998_v45 }
 0x8fd   :  { %4451 = vmatmul.msk.bf16.vlgmr.msrb.gmra.mxu0 %vm1635_vm8, %v1755_v39 }
 0x8fe   :  { %v2012_v23 = vsel %vm1671_vm13, %v2008_v62, -inf }
 0x8ff   :  { %2013 = vmax.xlane.f32.xlu0 %v2012_v23 }
 0x902   :  { %v1750_v59 = vpop.f32.mrf.mxu2 }
 0x903   :  { %v2000_v7 = vpop.f32.mrf.mxu1 }
 0x904   :  { %v2009_v53 = vmul.f32 0.25, %v2000_v7 }
 0x906   :  { %v2015_v14 = vsel %vm1671_vm13, %v2009_v53, -inf }
 0x907   :  { %2016 = vmax.xlane.f32.xlu1 %v2015_v14 }
 0x90a   :  { %v1752_v35 = vpop.f32.mrf.mxu2 }
 0x90b   :  { %v1756_v8 = vpack.c.bf16 %v1752_v35, %v1750_v59 }
 0x90d   :  { %4452 = vmatmul.msk.bf16.gmra.mxu0 %vm1635_vm8, %v1756_v8 }
 0x912   :  { %v6238_v9 = vpop.f32.mrf.mxu2 }
 0x91a   :  { %v6240_v40 = vpop.f32.mrf.mxu2 }
 0x922   :  { %v6242_v50 = vpop.f32.mrf.mxu2 }
 0x92a   :  { %v6244_v52 = vpop.f32.mrf.mxu2 }
 0x932   :  { %v2003_v17 = vpop.f32.mrf.mxu2 }
 0x933   :  { %v2010_v4 = vmul.f32 0.25, %v2003_v17 }
 0x935   :  { %v2018_v49 = vsel %vm1671_vm13, %v2010_v4, -inf }
 0x93a   :  { %v2005_v58 = vpop.f32.mrf.mxu2 }
 0x93b   :  { %v2011_v1 = vmul.f32 0.25, %v2005_v58 }
 0x93d   :  { %v2021_v11 = vsel %vm7226_vm9, %v2011_v1, -inf }
 0x942   :  { %v2122_v32 = vpop.f32.mrf.mxu2 }
 0x943   :  { %v2132_v27 = vmul.f32 0.25, %v2122_v32 }
 0x945   :  { %v2136_v10 = vsel %vm1671_vm13, %v2132_v27, -inf }
 0x946   :  { %2137 = vmax.xlane.f32.xlu2 %v2136_v10 }
 0x94a   :  { %v2124_v12 = vpop.f32.mrf.mxu2 }
 0x94b   :  { %v2133_v19 = vmul.f32 0.25, %v2124_v12 }
 0x94d   :  { %v2139_v6 = vsel %vm1671_vm13, %v2133_v19, -inf }
 0x95e   :  { %2060 = vrot.lane.b32.xlu2 %v6202_v38, %s5073_s18 }
 0x966   :  { %2182 = vrot.lane.b32.xlu2 %v6181_v16, %s5078_s6 }
 0x972   :  { %v2014_v63 = vpop.xlane.xlu0 %2013 }
 0x973   :  { %v2024_v48 = vsub.f32 %v2008_v62, %v2014_v63 }
 0x975   :  { %v2028_v20 = vmul.f32 1.442695, %v2024_v48 }
 0x977   :  { %4873 = vpow2.f32 %v2028_v20 }
 0x97a   :  { %v2017_v0 = vpop.xlane.xlu1 %2016  ;;  %v1933_v33 = vpop.f32.mrf.mxu0 }
 0x97b   :  { %v2025_v36 = vsub.f32 %v2009_v53, %v2017_v0  ;;  %v1934_v7 = vadd.f32 %v1933_v33, %v6238_v9  ;;  %v6269_v53 = vperm.slane %v6022_v56, 1 }
 0x97d   :  { %v4874_v61 = vpop.eup %4873  ;;  %v2030_v54 = vmul.f32 1.442695, %v2025_v36 }
 0x97e   :  { %v2036_v22 = vsel %vm1671_vm13, %v4874_v61, 0.0 }
 0x97f   :  { %4875 = vpow2.f32 %v2030_v54  ;;  %2037 = vadd.xlane.f32.xlu1 %v2036_v22 }
 0x982   :  { %v1935_v39 = vpop.f32.mrf.mxu0 }
 0x985   :  { %v4876_v30 = vpop.eup %4875 }
 0x986   :  { %v2039_v31 = vsel %vm1671_vm13, %v4876_v30, 0.0 }
 0x987   :  { %2040 = vadd.xlane.f32.xlu0 %v2039_v31 }
 0x98a   :  { %v1938_v9 = vpop.f32.mrf.mxu0 }
 0x98b   :  { %v1939_v63 = vadd.f32 %v1938_v9, %v6242_v50 }
 0x98f   :  { %2022 = vmax.xlane.f32.xlu2 %v2021_v11  ;;  %2140 = vmax.xlane.f32.xlu0 %v2139_v6 }
 0x998   :  { %2058 = vrot.lane.b32.xlu1 %v6181_v16, %s5073_s18 }
 0x9a7   :  { %2095 = vrot.lane.b32.xlu2 %v6202_v38, %s5075_s19 }
 0x9b9   :  { %v2138_v5 = vpop.xlane.xlu2 %2137 }
 0x9ba   :  { %v2148_v55 = vsub.f32 %v2132_v27, %v2138_v5  ;;  %v2285_v27 = vadd.f32 %v6269_v53, %v1934_v7 }
 0x9bc   :  { %v2152_v41 = vmul.f32 1.442695, %v2148_v55  ;;  %v2293_v48 = vadd.f32 %v2285_v27, %v5998_v29  ;;  %v1936_v29 = vadd.f32 %v1935_v39, %v6240_v40 }
 0x9be   :  { %4877 = vpow2.f32 %v2152_v41  ;;  %v2301_v20 = vsel %vm376_vm11, %v2293_v48, 0.0 }
 0x9c1   :  { %v2061_v25 = vpop.permute.xlu2 %2060 }
 0x9c2   :  { %v2070_v34 = vand.u32 %v2061_v25, %v6151_v57  ;;  %2019 = vmax.xlane.f32.xlu1 %v2018_v49 }
 0x9c4   :  { %v6261_v2 = vpop.eup %4877  ;;  %2078 = vmatpush.bf16.msrb.mxu3 %v2070_v34 }
 0x9c5   :  { %v2160_v16 = vsel %vm1671_vm13, %v6261_v2, 0.0 }
 0x9c6   :  { %2161 = vadd.xlane.f32.xlu0 %v2160_v16 }
 0x9c9   :  { %v6265_v24 = vpop.permute.xlu2 %2182 }
 0x9f2   :  { %v2038_v18 = vpop.xlane.xlu1 %2037 }
 0x9fa   :  { %v2041_v47 = vpop.xlane.xlu0 %2040 }
 0x9fb   :  { %4879 = vrcp.f32 %v2041_v47 }
 0x9fc   :  { %4881 = vrcp.f32 %v2038_v18 }
 0xa01   :  { %v4880_v46 = vpop.eup %4879 }
 0xa02   :  { %v2023_v28 = vpop.xlane.xlu2 %2022  ;;  %v2141_v15 = vpop.xlane.xlu0 %2140  ;;  %v2053_v59 = vmul.f32 %v4880_v46, %v4876_v30  ;;  %v2286_v30 = vadd.f32 %v6269_v53, %v1936_v29  ;;  %v4638_v29 = vld [vmem:[%s7214_s9 + $0x8] sm:$0xff] }
 0xa03   :  { %v2027_v21 = vsub.f32 %v2011_v1, %v2023_v28  ;;  %v2149_v51 = vsub.f32 %v2133_v19, %v2141_v15  ;;  %v4882_v23 = vpop.eup %4881  ;;  %v5080_v1 = vmov 32.0   ;;  %2538 = vmatpush.bf16.msra.mxu2 %v4638_v29 }
 0xa04   :  { %v2052_v14 = vmul.f32 %v4882_v23, %v4874_v61 }
 0xa05   :  { %v2034_v45 = vmul.f32 1.442695, %v2027_v21  ;;  %v2154_v62 = vmul.f32 1.442695, %v2149_v51 }
 0xa06   :  { %v2056_v17 = vpack.c.bf16 %v2053_v59, %v2052_v14 }
 0xa07   :  { %4883 = vpow2.f32 %v2034_v45 }
 0xa08   :  { %4885 = vpow2.f32 %v2154_v62 }
 0xa0a   :  { %v2096_v35 = vpop.permute.xlu2 %2095  ;;  %v2059_v8 = vpop.permute.xlu1 %2058 }
 0xa0b   :  { %2079 = vmatpush.bf16.msrb.mxu3 %v2059_v8  ;;  %4458 = vmatmul.msk.bf16.gmra.mxu2 %vm1635_vm8, %v2096_v35 }
 0xa0d   :  { %v6273_v58 = vpop.eup %4883 }
 0xa0e   :  { %v4886_v32 = vpop.eup %4885  ;;  %4455 = vmatmul.msk.bf16.vlgmr.msrb.gmra.mxu3 %vm1671_vm13, %v2056_v17  ;;  %v2045_v56 = vsel %vm7226_vm9, %v6273_v58, 0.0 }
 0xa0f   :  { %2255 = vmatpush.bf16.msra.mxu3 %v6231_v43  ;;  %2046 = vadd.xlane.f32.xlu1 %v2045_v56  ;;  %v2163_v10 = vsel %vm1671_vm13, %v4886_v32, 0.0  ;;  %v2287_v43 = vadd.f32 %v6269_v53, %v1939_v63 }
 0xa10   :  { %2164 = vadd.xlane.f32.xlu0 %v2163_v10  ;;  %v1940_v10 = vpop.f32.mrf.mxu0 }
 0xa11   :  { %v6285_v0 = vadd.f32 %v2287_v43, %v6075_v60  ;;  %v2294_v60 = vadd.f32 %v2286_v30, %v6001_v37  ;;  %v4637_v30 = vld [vmem:[%s7214_s9] sm:$0xff] }
 0xa12   :  { %2539 = vmatpush.bf16.msra.mxu2 %v4637_v30 }
 0xa13   :  { %v2307_v36 = vsel %vm376_vm11, %v6285_v0, 0.0  ;;  %v2304_v12 = vsel %vm376_vm11, %v2294_v60, 0.0 }
 0xa17   :  { %2302 = vadd.xlane.f32.xlu1 %v2301_v20 }
 0xa1f   :  { %2308 = vadd.xlane.f32.xlu1 %v2307_v36 }
 0xa24   :  { %2184 = vrot.lane.b32.xlu0 %v6202_v38, %s5078_s6 }
 0xa35   :  { %v2020_v61 = vpop.xlane.xlu1 %2019 }
 0xa36   :  { %v2026_v54 = vsub.f32 %v2010_v4, %v2020_v61 }
 0xa38   :  { %v2032_v50 = vmul.f32 1.442695, %v2026_v54 }
 0xa39   :  { %v2162_v40 = vpop.xlane.xlu0 %2161 }
 0xa3a   :  { %4887 = vpow2.f32 %v2032_v50 }
 0xa3b   :  { %4889 = vrcp.f32 %v5080_v1 }
 0xa40   :  { %v4888_v22 = vpop.eup %4887 }
 0xa41   :  { %v2042_v31 = vsel %vm1671_vm13, %v4888_v22, 0.0  ;;  %v4890_v38 = vpop.eup %4889 }
 0xa42   :  { %v2327_v19 = vmul.f32 32.0, %v4890_v38  ;;  %vm2331_vm14 = vweird.f32 %v4890_v38 }
 0xa44   :  { %v2328_v11 = vsub.f32 1.0, %v2327_v19 }
 0xa46   :  { %v2329_v6 = vmul.f32 %v4890_v38, %v2328_v11 }
 0xa48   :  { %v2330_v55 = vadd.f32 %v4890_v38, %v2329_v6 }
 0xa4a   :  { %v6296_v41 = vsel %vm2331_vm14, %v4890_v38, %v2330_v55 }
 0xa4e   :  { %2043 = vadd.xlane.f32.xlu0 %v2042_v31 }
 0xa56   :  { %2305 = vadd.xlane.f32.xlu0 %v2304_v12 }
 0xa82   :  { %v2047_v5 = vpop.xlane.xlu1 %2046 }
 0xa83   :  { %v2165_v37 = vpop.xlane.xlu0 %2164 }
 0xa84   :  { %4891 = vrcp.f32 %v2165_v37 }
 0xa85   :  { %4893 = vrcp.f32 %v2162_v40 }
 0xa86   :  { %4895 = vrcp.f32 %v2047_v5 }
 0xa8a   :  { %v2303_v4 = vpop.xlane.xlu1 %2302  ;;  %v4892_v15 = vpop.eup %4891 }
 0xa8b   :  { %v2333_v25 = vmul.f32 %v6296_v41, %v2303_v4  ;;  %v4894_v51 = vpop.eup %4893  ;;  %v2177_v46 = vmul.f32 %v4892_v15, %v4886_v32 }
 0xa8c   :  { %v2176_v39 = vmul.f32 %v4894_v51, %v6261_v2  ;;  %v4896_v23 = vpop.eup %4895 }
 0xa8d   :  { %v6299_v49 = vsub.f32 %v2293_v48, %v2333_v25  ;;  %v2055_v35 = vmul.f32 %v4896_v23, %v6273_v58 }
 0xa8e   :  { %v2127_v34 = vpop.f32.mrf.mxu2  ;;  %v2180_v45 = vpack.c.bf16 %v2177_v46, %v2176_v39 }
 0xa8f   :  { %v6301_v16 = vmul.f32 0.25, %v2127_v34  ;;  %v2349_v47 = vmul.f32 %v6299_v49, %v6299_v49  ;;  %v6329_v34 = vld [vmem:[%s7216_s11] sm:$0xff] }
 0xa90   :  { %v6336_v51 = vperm.slane %v6329_v34, 3 }
 0xa91   :  { %v2142_v33 = vsel %vm1671_vm13, %v6301_v16, -inf  ;;  %v2357_v18 = vsel %vm376_vm11, %v2349_v47, 0.0  ;;  %v2081_v2 = vpop.f32.mrf.mxu3  ;;  %v6332_v47 = vperm.slane %v6329_v34, 2 }
 0xa92   :  { %2143 = vmax.xlane.f32.xlu1 %v2142_v33  ;;  %2358 = vadd.xlane.f32.xlu2 %v2357_v18  ;;  %v2309_v61 = vpop.xlane.xlu1 %2308 }
 0xa96   :  { %v2185_v28 = vpop.permute.xlu0 %2184 }
 0xa97   :  { %v2194_v21 = vand.u32 %v2185_v28, %v6151_v57 }
 0xa99   :  { %2202 = vmatpush.bf16.msra.mxu0 %v2194_v21  ;;  %v2083_v56 = vpop.f32.mrf.mxu3 }
 0xa9a   :  { %v2091_v9 = vpack.c.bf16 %v2083_v56, %v2081_v2  ;;  %v2335_v56 = vmul.f32 %v6296_v41, %v2309_v61 }
 0xa9d   :  { %2203 = vmatpush.bf16.msra.mxu0 %v6265_v24 }
 0xaa0   :  { %4459 = vmatmul.msk.bf16.vlgmr.msra.gmra.mxu0 %vm1671_vm13, %v2180_v45 }
 0xac1   :  { %v2044_v62 = vpop.xlane.xlu0 %2043 }
 0xac2   :  { %4897 = vrcp.f32 %v2044_v62 }
 0xac8   :  { %v4898_v59 = vpop.eup %4897 }
 0xac9   :  { %v2306_v7 = vpop.xlane.xlu0 %2305  ;;  %v2054_v14 = vmul.f32 %v4898_v59, %v4888_v22 }
 0xaca   :  { %v2334_v8 = vmul.f32 %v6296_v41, %v2306_v7 }
 0xacb   :  { %v2057_v17 = vpack.c.bf16 %v2055_v35, %v2054_v14  ;;  %v1941_v35 = vadd.f32 %v1940_v10, %v6244_v52  ;;  %v2343_v52 = vsub.f32 %v6285_v0, %v2335_v56 }
 0xacc   :  { %v2342_v32 = vsub.f32 %v2294_v60, %v2334_v8 }
 0xacd   :  { %4456 = vmatmul.msk.bf16.gmra.mxu3 %vm1671_vm13, %v2057_v17 }
 0xace   :  { %v2350_v24 = vmul.f32 %v2342_v32, %v2342_v32 }
 0xad0   :  { %v2360_v27 = vsel %vm376_vm11, %v2350_v24, 0.0 }
 0xad1   :  { %2361 = vadd.xlane.f32.xlu1 %v2360_v27  ;;  %v2129_v27 = vpop.f32.mrf.mxu2 }
 0xadd   :  { %4463 = vmatmul.msk.bf16.vlgmr.msra.gmra.mxu3 %vm1635_vm8, %v2091_v9  ;;  %v2135_v9 = vmul.f32 0.25, %v2129_v27 }
 0xadf   :  { %v2145_v10 = vsel %vm7226_vm9, %v2135_v9, -inf }
 0xb05   :  { %v2359_v58 = vpop.xlane.xlu2 %2358  ;;  %v2144_v54 = vpop.xlane.xlu1 %2143 }
 0xb06   :  { %v2381_v20 = vmul.f32 %v2359_v58, %v6296_v41 }
 0xb08   :  { %v2389_v36 = vadd.f32 1e-05, %v2381_v20 }
 0xb0a   :  { %4899 = vrsqrt.f32 %v2389_v36  ;;  %vm2403_vm2 = vweird.f32 %v2389_v36 }
 0xb10   :  { %v4900_v50 = vpop.eup %4899 }
 0xb11   :  { %v2398_v22 = vmul.f32 %v4900_v50, %v2389_v36  ;;  %vm2404_vm15 = vweird.f32 %v4900_v50 }
 0xb12   :  { %vm2405_vm4 = vmor %vm2403_vm2, %vm2404_vm15 }
 0xb13   :  { %v2399_v31 = vmul.f32 %v4900_v50, %v2398_v22 }
 0xb15   :  { %v2400_v38 = vmul.f32 0.5, %v2399_v31 }
 0xb17   :  { %v2401_v19 = vsub.f32 1.5, %v2400_v38 }
 0xb19   :  { %v2402_v6 = vmul.f32 %v4900_v50, %v2401_v19  ;;  %v4642_v19 = vld [vmem:[%s7215_s10 + $0x18] sm:$0xff] }
 0xb1a   :  { %2614 = vmatpush.bf16.msrb.mxu0 %v4642_v19 }
 0xb1b   :  { %v2406_v4 = vsel %vm2405_vm4, %v4900_v50, %v2402_v6 }
 0xb1c   :  { %v2477_v33 = vmul.f32 %v2406_v4, %v6299_v49 }
 0xb1d   :  { %v2205_v63 = vpop.f32.mrf.mxu0 }
 0xb1e   :  { %v2486_v46 = vmul.f32 %v6332_v47, %v2477_v33 }
 0xb20   :  { %v6342_v62 = vadd.f32 %v6336_v51, %v2486_v46 }
 0xb25   :  { %v2207_v48 = vpop.f32.mrf.mxu0 }
 0xb26   :  { %v2215_v43 = vpack.c.bf16 %v2207_v48, %v2205_v63  ;;  %v2150_v63 = vsub.f32 %v6301_v16, %v2144_v54 }
 0xb28   :  { %4461 = vmatmul.msk.bf16.vlgmr.msrb.gmra.mxu1 %vm1635_vm8, %v2215_v43  ;;  %v2156_v48 = vmul.f32 1.442695, %v2150_v63  ;;  %v2351_v43 = vmul.f32 %v2343_v52, %v2343_v52 }
 0xb2a   :  { %v2363_v58 = vsel %vm376_vm11, %v2351_v43, 0.0 }
 0xb44   :  { %v2362_v60 = vpop.xlane.xlu1 %2361 }
 0xb45   :  { %v2382_v12 = vmul.f32 %v2362_v60, %v6296_v41 }
 0xb47   :  { %v2390_v1 = vadd.f32 1e-05, %v2382_v12 }
 0xb49   :  { %4901 = vrsqrt.f32 %v2390_v1  ;;  %vm2413_vm6 = vweird.f32 %v2390_v1 }
 0xb4a   :  { %4903 = vpow2.f32 %v2156_v48 }
 0xb4f   :  { %v4902_v11 = vpop.eup %4901 }
 0xb50   :  { %v2408_v5 = vmul.f32 %v4902_v11, %v2390_v1  ;;  %v2086_v55 = vpop.f32.mrf.mxu3  ;;  %vm2414_vm5 = vweird.f32 %v4902_v11 }
 0xb51   :  { %vm2415_vm7 = vmor %vm2413_vm6, %vm2414_vm5  ;;  %vm2322_vm6 = vcmask 259072  }
 0xb52   :  { %v2409_v40 = vmul.f32 %v4902_v11, %v2408_v5  ;;  %v4640_v5 = vld [vmem:[%s7215_s10 + $0x8] sm:$0xff] }
 0xb54   :  { %v2410_v25 = vmul.f32 0.5, %v2409_v40 }
 0xb56   :  { %v2411_v37 = vsub.f32 1.5, %v2410_v25 }
 0xb58   :  { %v2412_v18 = vmul.f32 %v4902_v11, %v2411_v37  ;;  %v2088_v28 = vpop.f32.mrf.mxu3  ;;  %v4639_v37 = vld [vmem:[%s7215_s10] sm:$0xff] }
 0xb59   :  { %v2092_v15 = vpack.c.bf16 %v2088_v28, %v2086_v55 }
 0xb5a   :  { %v2416_v21 = vsel %vm2415_vm7, %v4902_v11, %v2412_v18  ;;  %v4641_v11 = vld [vmem:[%s7215_s10 + $0x10] sm:$0xff] }
 0xb5b   :  { %v2478_v39 = vmul.f32 %v2416_v21, %v2342_v32  ;;  %4464 = vmatmul.msk.bf16.gmra.mxu3 %vm1635_vm8, %v2092_v15  ;;  %2615 = vmatpush.bf16.msrb.mxu0 %v4641_v11 }
 0xb5d   :  { %v2487_v45 = vmul.f32 %v6332_v47, %v2478_v39 }
 0xb5f   :  { %v6345_v49 = vadd.f32 %v6336_v51, %v2487_v45  ;;  %2616 = vmatpush.bf16.msrb.mxu0 %v4640_v5 }
 0xb60   :  { %v2257_v59 = vpop.f32.mrf.mxu3 }
 0xb61   :  { %v2503_v23 = vpack.c.bf16 %v6345_v49, %v6342_v62 }
 0xb63   :  { %4473 = vmatmul.msk.bf16.vlgmr.msra.gmra.mxu2 %vm376_vm11, %v2503_v23  ;;  %2617 = vmatpush.bf16.msrb.mxu0 %v4639_v37 }
 0xba5   :  { %v2232_v7 = vpop.f32.mrf.mxu1 }
 0xba6   :  { %v6350_v14 = vadd.f32 %v2257_v59, %v2232_v7 }
 0xba8   :  { %v2271_v8 = vrot.slane %v6350_v14, 1 }
 0xbaa   :  { %v2283_v17 = vsel %vm7224_vm0, %v1941_v35, %v2271_v8 }
 0xbab   :  { %v2288_v32 = vadd.f32 %v6269_v53, %v2283_v17 }
 0xbad   :  { %v2296_v2 = vadd.f32 %v2288_v32, %v6078_v44  ;;  %v4904_v44 = vpop.eup %4903 }
 0xbae   :  { %v2166_v20 = vsel %vm1671_vm13, %v4904_v44, 0.0 }
 0xbaf   :  { %v2310_v24 = vsel %vm376_vm11, %v2296_v2, 0.0 }
 0xbb0   :  { %2311 = vadd.xlane.f32.xlu0 %v2310_v24 }
 0xbb8   :  { %2146 = vmax.xlane.f32.xlu0 %v2145_v10 }
 0xbc0   :  { %2364 = vadd.xlane.f32.xlu0 %v2363_v58 }
 0xbc8   :  { %2167 = vadd.xlane.f32.xlu0 %v2166_v20 }
 0xbe6   :  { %v2541_v35 = vpop.f32.mrf.mxu2 }
 0xbee   :  { %v2543_v20 = vpop.f32.mrf.mxu2 }
 0xc23   :  { %v2312_v36 = vpop.xlane.xlu0 %2311 }
 0xc24   :  { %v2336_v61 = vmul.f32 %v6296_v41, %v2312_v36  ;;  %v6393_v36 = vperm.slane %v6329_v34, 4 }
 0xc26   :  { %v2344_v50 = vsub.f32 %v2296_v2, %v2336_v61  ;;  %v2544_v61 = vadd.f32 %v2543_v20, %v6393_v36 }
 0xc28   :  { %v2352_v16 = vmul.f32 %v2344_v50, %v2344_v50 }
 0xc2a   :  { %v2366_v0 = vsel %vm376_vm11, %v2352_v16, 0.0  ;;  %v2562_v16 = vmax.f32 %v2544_v61, 0.0 }
 0xc2b   :  { %2367 = vadd.xlane.f32.xlu1 %v2366_v0  ;;  %v2147_v54 = vpop.xlane.xlu0 %2146 }
 0xc2c   :  { %v2151_v29 = vsub.f32 %v2135_v9, %v2147_v54 }
 0xc2e   :  { %v2158_v22 = vmul.f32 1.442695, %v2151_v29 }
 0xc30   :  { %4905 = vpow2.f32 %v2158_v22  ;;  %v2234_v22 = vpop.f32.mrf.mxu1 }
 0xc33   :  { %v2365_v60 = vpop.xlane.xlu0 %2364 }
 0xc34   :  { %v2383_v12 = vmul.f32 %v2365_v60, %v6296_v41 }
 0xc36   :  { %v4906_v30 = vpop.eup %4905  ;;  %v2391_v1 = vadd.f32 1e-05, %v2383_v12 }
 0xc37   :  { %v2169_v31 = vsel %vm7226_vm9, %v4906_v30, 0.0 }
 0xc38   :  { %2170 = vadd.xlane.f32.xlu1 %v2169_v31  ;;  %4907 = vrsqrt.f32 %v2391_v1  ;;  %vm2423_vm14 = vweird.f32 %v2391_v1  ;;  %v2259_v31 = vpop.f32.mrf.mxu3 }
 0xc39   :  { %v2260_v12 = vadd.f32 %v2259_v31, %v2234_v22 }
 0xc3b   :  { %v2168_v28 = vpop.xlane.xlu0 %2167  ;;  %v2272_v19 = vrot.slane %v2260_v12, 1 }
 0xc3d   :  { %v2273_v5 = vsel %vm7224_vm0, %v2271_v8, %v2272_v19 }
 0xc3e   :  { %v4908_v38 = vpop.eup %4907 }
 0xc3f   :  { %v2418_v6 = vmul.f32 %v4908_v38, %v2391_v1  ;;  %vm2424_vm10 = vweird.f32 %v4908_v38 }
 0xc40   :  { %vm2425_vm15 = vmor %vm2423_vm14, %vm2424_vm10 }
 0xc41   :  { %v2419_v55 = vmul.f32 %v4908_v38, %v2418_v6 }
 0xc43   :  { %v2420_v33 = vmul.f32 0.5, %v2419_v55 }
 0xc45   :  { %v2421_v18 = vsub.f32 1.5, %v2420_v33  ;;  %v2289_v33 = vadd.f32 %v6269_v53, %v2273_v5 }
 0xc47   :  { %v2422_v21 = vmul.f32 %v4908_v38, %v2421_v18  ;;  %v2297_v8 = vadd.f32 %v2289_v33, %v6087_v26 }
 0xc49   :  { %v2426_v23 = vsel %vm2425_vm15, %v4908_v38, %v2422_v21  ;;  %v6403_v38 = vperm.slane %v6329_v34, 5 }
 0xc4a   :  { %v2479_v32 = vmul.f32 %v2426_v23, %v2343_v52 }
 0xc4c   :  { %v2488_v48 = vmul.f32 %v6332_v47, %v2479_v32 }
 0xc4e   :  { %v6387_v58 = vadd.f32 %v6336_v51, %v2488_v48 }
 0xc9e   :  { %v2368_v40 = vpop.xlane.xlu1 %2367 }
 0xc9f   :  { %v2384_v4 = vmul.f32 %v2368_v40, %v6296_v41 }
 0xca1   :  { %v2392_v25 = vadd.f32 1e-05, %v2384_v4 }
 0xca3   :  { %4909 = vrsqrt.f32 %v2392_v25  ;;  %vm2433_vm4 = vweird.f32 %v2392_v25 }
 0xca4   :  { %4911 = vrcp.f32 %v2168_v28 }
 0xca9   :  { %v4910_v15 = vpop.eup %4909 }
 0xcaa   :  { %v2428_v46 = vmul.f32 %v4910_v15, %v2392_v25  ;;  %v4912_v7 = vpop.eup %4911  ;;  %vm2434_vm2 = vweird.f32 %v4910_v15 }
 0xcab   :  { %v2171_v39 = vpop.xlane.xlu1 %2170  ;;  %vm2435_vm5 = vmor %vm2433_vm4, %vm2434_vm2  ;;  %v2178_v27 = vmul.f32 %v4912_v7, %v4904_v44 }
 0xcac   :  { %v2429_v45 = vmul.f32 %v4910_v15, %v2428_v46  ;;  %4913 = vrcp.f32 %v2171_v39  ;;  %v2313_v39 = vsel %vm376_vm11, %v2297_v8, 0.0 }
 0xcae   :  { %v2430_v59 = vmul.f32 0.5, %v2429_v45  ;;  %v2262_v45 = vpop.f32.mrf.mxu3 }
 0xcb0   :  { %v2431_v17 = vsub.f32 1.5, %v2430_v59 }
 0xcb2   :  { %v4914_v2 = vpop.eup %4913  ;;  %v2432_v24 = vmul.f32 %v4910_v15, %v2431_v17 }
 0xcb3   :  { %v2179_v56 = vmul.f32 %v4914_v2, %v4906_v30 }
 0xcb4   :  { %v2436_v9 = vsel %vm2435_vm5, %v4910_v15, %v2432_v24 }
 0xcb5   :  { %v2480_v63 = vmul.f32 %v2436_v9, %v2344_v50  ;;  %v2181_v10 = vpack.c.bf16 %v2179_v56, %v2178_v27  ;;  %v2542_v50 = vadd.f32 %v2541_v35, %v6393_v36 }
 0xcb6   :  { %v2264_v32 = vpop.f32.mrf.mxu3 }
 0xcb7   :  { %4460 = vmatmul.msk.bf16.gmra.mxu0 %vm1671_vm13, %v2181_v10  ;;  %v2489_v43 = vmul.f32 %v6332_v47, %v2480_v63  ;;  %v2561_v0 = vmax.f32 %v2542_v50, 0.0 }
 0xcb9   :  { %v6390_v52 = vadd.f32 %v6336_v51, %v2489_v43  ;;  %v2569_v54 = vpack.c.bf16 %v2562_v16, %v2561_v0 }
 0xcbb   :  { %v2504_v44 = vpack.c.bf16 %v6390_v52, %v6387_v58 }
 0xcbd   :  { %4474 = vmatmul.msk.bf16.gmra.mxu2 %vm376_vm11, %v2504_v44 }
 0xcc7   :  { %4493 = vmatmul.msk.bf16.vlgmr.msrb.gmra.mxu0 %vm385_vm12, %v2569_v54 }
 0xd34   :  { %v2210_v29 = vpop.f32.mrf.mxu0 }
 0xd3c   :  { %v2212_v30 = vpop.f32.mrf.mxu0 }
 0xd3d   :  { %v2216_v60 = vpack.c.bf16 %v2212_v30, %v2210_v29 }
 0xd3f   :  { %4462 = vmatmul.msk.bf16.gmra.mxu1 %vm1635_vm8, %v2216_v60 }
 0xd40   :  { %v2546_v1 = vpop.f32.mrf.mxu2 }
 0xd41   :  { %v2547_v55 = vadd.f32 %v2546_v1, %v6393_v36 }
 0xd43   :  { %v2563_v18 = vmax.f32 %v2547_v55, 0.0 }
 0xd44   :  { %v2619_v11 = vpop.f32.mrf.mxu0 }
 0xd45   :  { %v2620_v6 = vadd.f32 %v2619_v11, %v6403_v38 }
 0xd47   :  { %v2639_v40 = vadd.f32 %v2620_v6, %v6342_v62 }
 0xd48   :  { %v2548_v4 = vpop.f32.mrf.mxu2 }
 0xd49   :  { %v2549_v25 = vadd.f32 %v2548_v4, %v6393_v36  ;;  %v2647_v37 = vsel %vm376_vm11, %v2639_v40, 0.0 }
 0xd4a   :  { %2648 = vadd.xlane.f32.xlu0 %v2647_v37 }
 0xd4b   :  { %v2564_v28 = vmax.f32 %v2549_v25, 0.0 }
 0xd4c   :  { %v2621_v15 = vpop.f32.mrf.mxu0 }
 0xd4d   :  { %v2570_v21 = vpack.c.bf16 %v2564_v28, %v2563_v18  ;;  %v2622_v14 = vadd.f32 %v2621_v15, %v6403_v38 }
 0xd4f   :  { %4494 = vmatmul.msk.bf16.gmra.mxu0 %vm385_vm12, %v2570_v21  ;;  %v2640_v62 = vadd.f32 %v2622_v14, %v6345_v49 }
 0xd51   :  { %v2650_v46 = vsel %vm376_vm11, %v2640_v62, 0.0 }
 0xd52   :  { %2651 = vadd.xlane.f32.xlu1 %v2650_v46  ;;  %2314 = vadd.xlane.f32.xlu0 %v2313_v39 }
 0xdbc   :  { %v2237_v23 = vpop.f32.mrf.mxu1 }
 0xdbd   :  { %v2263_v59 = vadd.f32 %v2262_v45, %v2237_v23  ;;  %v2649_v9 = vpop.xlane.xlu0 %2648 }
 0xdbf   :  { %v2274_v7 = vrot.slane %v2263_v59, 1 }
 0xdc1   :  { %v2275_v35 = vsel %vm7224_vm0, %v2272_v19, %v2274_v7 }
 0xdc2   :  { %v2290_v17 = vadd.f32 %v6269_v53, %v2275_v35 }
 0xdc4   :  { %v2239_v26 = vpop.f32.mrf.mxu1  ;;  %v2298_v2 = vadd.f32 %v2290_v17, %v6090_v3 }
 0xdc5   :  { %v2265_v24 = vadd.f32 %v2264_v32, %v2239_v26  ;;  %v2652_v56 = vpop.xlane.xlu1 %2651  ;;  %v2315_v54 = vpop.xlane.xlu0 %2314  ;;  %v4644_v26 = vld [vmem:[%s7212_s7 + $0x18] sm:$0xff] }
 0xdc6   :  { %v2316_v49 = vsel %vm376_vm11, %v2298_v2, 0.0  ;;  %v2672_v10 = vmul.f32 %v2652_v56, %v6296_v41  ;;  %v2337_v30 = vmul.f32 %v6296_v41, %v2315_v54  ;;  %2902 = vmatpush.bf16.msra.mxu1 %v4644_v26  ;;  %v4643_v56 = vld [vmem:[%s7212_s7 + $0x10] sm:$0xff] }
 0xdc7   :  { %v2276_v27 = vrot.slane %v2265_v24, 1  ;;  %2317 = vadd.xlane.f32.xlu1 %v2316_v49 }
 0xdc8   :  { %v6429_v61 = vsub.f32 %v2640_v62, %v2672_v10  ;;  %v6445_v1 = vsub.f32 %v2297_v8, %v2337_v30 }
 0xdc9   :  { %v2277_v63 = vsel %vm7224_vm0, %v2274_v7, %v2276_v27  ;;  %v2292_v16 = vadd.f32 %v6269_v53, %v2276_v27 }
 0xdca   :  { %v2291_v48 = vadd.f32 %v6269_v53, %v2277_v63  ;;  %v2688_v29 = vmul.f32 %v6429_v61, %v6429_v61  ;;  %2903 = vmatpush.bf16.msra.mxu1 %v4643_v56 }
 0xdcb   :  { %v2300_v60 = vadd.f32 %v2292_v16, %v6096_v13  ;;  %v2353_v13 = vmul.f32 %v6445_v1, %v6445_v1 }
 0xdcc   :  { %v2624_v43 = vpop.f32.mrf.mxu0  ;;  %v2299_v20 = vadd.f32 %v2291_v48, %v6100_v42  ;;  %v2671_v42 = vmul.f32 %v2649_v9, %v6296_v41 }
 0xdcd   :  { %v2625_v44 = vadd.f32 %v2624_v43, %v6403_v38  ;;  %v2323_v11 = vsel %vm2322_vm6, %v2300_v60, 0.0 }
 0xdce   :  { %v2319_v3 = vsel %vm376_vm11, %v2299_v20, 0.0  ;;  %v6443_v12 = vsub.f32 %v2639_v40, %v2671_v42 }
 0xdcf   :  { %2320 = vadd.xlane.f32.xlu1 %v2319_v3  ;;  %v2641_v50 = vadd.f32 %v2625_v44, %v6387_v58  ;;  %v2698_v58 = vsel %vm376_vm11, %v2688_v29, 0.0 }
 0xdd0   :  { %v2687_v6 = vmul.f32 %v6443_v12, %v6443_v12 }
 0xdd1   :  { %v2653_v0 = vsel %vm376_vm11, %v2641_v50, 0.0 }
 0xdd2   :  { %2654 = vadd.xlane.f32.xlu0 %v2653_v0  ;;  %v2695_v5 = vsel %vm376_vm11, %v2687_v6, 0.0 }
 0xdd4   :  { %v2626_v22 = vpop.f32.mrf.mxu0 }
 0xdd5   :  { %v2627_v31 = vadd.f32 %v2626_v22, %v6403_v38 }
 0xdd7   :  { %2699 = vadd.xlane.f32.xlu1 %v2698_v58  ;;  %v2642_v53 = vadd.f32 %v2627_v31, %v6390_v52  ;;  %v2369_v52 = vsel %vm376_vm11, %v2353_v13, 0.0 }
 0xdd9   :  { %v2656_v19 = vsel %vm376_vm11, %v2642_v53, 0.0 }
 0xdda   :  { %2657 = vadd.xlane.f32.xlu2 %v2656_v19  ;;  %2324 = vadd.xlane.f32.xlu0 %v2323_v11  ;;  %v6498_v11 = vperm.slane %v6329_v34, 7 }
 0xde2   :  { %2696 = vadd.xlane.f32.xlu2 %v2695_v5  ;;  %2370 = vadd.xlane.f32.xlu0 %v2369_v52 }
 0xe3a   :  { %v2318_v55 = vpop.xlane.xlu1 %2317 }
 0xe3b   :  { %v2338_v40 = vmul.f32 %v6296_v41, %v2318_v55 }
 0xe3d   :  { %v6456_v4 = vsub.f32 %v2298_v2, %v2338_v40 }
 0xe3f   :  { %v2354_v25 = vmul.f32 %v6456_v4, %v6456_v4 }
 0xe41   :  { %v2372_v37 = vsel %vm376_vm11, %v2354_v25, 0.0 }
 0xe42   :  { %2373 = vadd.xlane.f32.xlu2 %v2372_v37  ;;  %v2321_v33 = vpop.xlane.xlu1 %2320 }
 0xe43   :  { %v2339_v18 = vmul.f32 %v6296_v41, %v2321_v33 }
 0xe45   :  { %v6462_v28 = vsub.f32 %v2299_v20, %v2339_v18  ;;  %v2655_v15 = vpop.xlane.xlu0 %2654 }
 0xe46   :  { %v2673_v21 = vmul.f32 %v2655_v15, %v6296_v41 }
 0xe47   :  { %v2355_v14 = vmul.f32 %v6462_v28, %v6462_v28 }
 0xe48   :  { %v6467_v8 = vsub.f32 %v2641_v50, %v2673_v21 }
 0xe49   :  { %v2375_v62 = vsel %vm376_vm11, %v2355_v14, 0.0 }
 0xe4a   :  { %2376 = vadd.xlane.f32.xlu2 %v2375_v62  ;;  %v2700_v46 = vpop.xlane.xlu1 %2699  ;;  %v2689_v39 = vmul.f32 %v6467_v8, %v6467_v8 }
 0xe4b   :  { %v2720_v45 = vmul.f32 %v2700_v46, %v6296_v41 }
 0xe4c   :  { %v2701_v23 = vsel %vm376_vm11, %v2689_v39, 0.0 }
 0xe4d   :  { %v2728_v59 = vadd.f32 1e-05, %v2720_v45  ;;  %v2658_v7 = vpop.xlane.xlu2 %2657  ;;  %v2325_v35 = vpop.xlane.xlu0 %2324  ;;  %2702 = vadd.xlane.f32.xlu1 %v2701_v23 }
 0xe4e   :  { %v2674_v17 = vmul.f32 %v2658_v7, %v6296_v41  ;;  %v2340_v32 = vmul.f32 %v6296_v41, %v2325_v35 }
 0xe4f   :  { %4915 = vrsqrt.f32 %v2728_v59  ;;  %vm2751_vm10 = vweird.f32 %v2728_v59 }
 0xe50   :  { %v6479_v2 = vsub.f32 %v2642_v53, %v2674_v17  ;;  %v6481_v24 = vsub.f32 %v2300_v60, %v2340_v32  ;;  %v6494_v60 = vperm.slane %v6329_v34, 6 }
 0xe52   :  { %v2690_v49 = vmul.f32 %v6479_v2, %v6479_v2  ;;  %v2356_v27 = vmul.f32 %v6481_v24, %v6481_v24 }
 0xe54   :  { %v2704_v9 = vsel %vm376_vm11, %v2690_v49, 0.0  ;;  %v2378_v63 = vsel %vm2322_vm6, %v2356_v27, 0.0 }
 0xe55   :  { %v4916_v10 = vpop.eup %4915  ;;  %v2697_v48 = vpop.xlane.xlu2 %2696  ;;  %2705 = vadd.xlane.f32.xlu0 %v2704_v9  ;;  %2379 = vadd.xlane.f32.xlu1 %v2378_v63 }
 0xe56   :  { %v2746_v43 = vmul.f32 %v4916_v10, %v2728_v59  ;;  %v2719_v20 = vmul.f32 %v2697_v48, %v6296_v41  ;;  %vm2752_vm7 = vweird.f32 %v4916_v10  ;;  %v2371_v40 = vpop.xlane.xlu0 %2370 }
 0xe57   :  { %vm2753_vm14 = vmor %vm2751_vm10, %vm2752_vm7  ;;  %v2385_v34 = vmul.f32 %v2371_v40, %v6296_v41 }
 0xe58   :  { %v2747_v44 = vmul.f32 %v4916_v10, %v2746_v43  ;;  %v2727_v3 = vadd.f32 1e-05, %v2719_v20 }
 0xe59   :  { %v2393_v25 = vadd.f32 1e-05, %v2385_v34 }
 0xe5a   :  { %v2748_v50 = vmul.f32 0.5, %v2747_v44  ;;  %4917 = vrsqrt.f32 %v2727_v3  ;;  %vm2741_vm2 = vweird.f32 %v2727_v3 }
 0xe5b   :  { %4919 = vrsqrt.f32 %v2393_v25  ;;  %vm2443_vm7 = vweird.f32 %v2393_v25 }
 0xe5c   :  { %v2749_v16 = vsub.f32 1.5, %v2748_v50 }
 0xe5e   :  { %v2750_v54 = vmul.f32 %v4916_v10, %v2749_v16 }
 0xe60   :  { %v4918_v0 = vpop.eup %4917  ;;  %v2754_v42 = vsel %vm2753_vm14, %v4916_v10, %v2750_v54 }
 0xe61   :  { %v2736_v29 = vmul.f32 %v4918_v0, %v2727_v3  ;;  %vm2742_vm15 = vweird.f32 %v4918_v0  ;;  %v2816_v58 = vmul.f32 %v2754_v42, %v6429_v61  ;;  %v4920_v37 = vpop.eup %4919 }
 0xe62   :  { %vm2743_vm4 = vmor %vm2741_vm2, %vm2742_vm15  ;;  %vm2444_vm5 = vweird.f32 %v4920_v37 }
 0xe63   :  { %v2737_v22 = vmul.f32 %v4918_v0, %v2736_v29  ;;  %v2825_v6 = vmul.f32 %v6494_v60, %v2816_v58  ;;  %vm2445_vm10 = vmor %vm2443_vm7, %vm2444_vm5 }
 0xe65   :  { %v2738_v30 = vmul.f32 0.5, %v2737_v22  ;;  %v6504_v52 = vadd.f32 %v6498_v11, %v2825_v6 }
 0xe67   :  { %v2739_v31 = vsub.f32 1.5, %v2738_v30 }
 0xe69   :  { %v2740_v53 = vmul.f32 %v4918_v0, %v2739_v31 }
 0xe6b   :  { %v2744_v19 = vsel %vm2743_vm4, %v4918_v0, %v2740_v53 }
 0xe6c   :  { %v2815_v13 = vmul.f32 %v2744_v19, %v6443_v12  ;;  %v2438_v12 = vmul.f32 %v4920_v37, %v2393_v25 }
 0xe6e   :  { %v2824_v5 = vmul.f32 %v6494_v60, %v2815_v13  ;;  %v2439_v33 = vmul.f32 %v4920_v37, %v2438_v12 }
 0xe70   :  { %v6507_v55 = vadd.f32 %v6498_v11, %v2824_v5  ;;  %v2440_v14 = vmul.f32 0.5, %v2439_v33 }
 0xe72   :  { %v2867_v61 = vpack.c.bf16 %v6504_v52, %v6507_v55  ;;  %v2441_v62 = vsub.f32 1.5, %v2440_v14 }
 0xe74   :  { %4526 = vmatmul.msk.bf16.vlgmr.msra.gmra.mxu1 %vm376_vm11, %v2867_v61  ;;  %v2442_v7 = vmul.f32 %v4920_v37, %v2441_v62 }
 0xe76   :  { %v2446_v49 = vsel %vm2445_vm10, %v4920_v37, %v2442_v7 }
 0xe77   :  { %v2481_v63 = vmul.f32 %v2446_v49, %v6445_v1 }
 0xe79   :  { %v2490_v1 = vmul.f32 %v6332_v47, %v2481_v63 }
 0xe7b   :  { %v6523_v19 = vadd.f32 %v6336_v51, %v2490_v1 }
 0xeb5   :  { %v2374_v18 = vpop.xlane.xlu2 %2373 }
 0xeb6   :  { %v2386_v15 = vmul.f32 %v2374_v18, %v6296_v41 }
 0xeb8   :  { %v2394_v21 = vadd.f32 1e-05, %v2386_v15 }
 0xeba   :  { %4921 = vrsqrt.f32 %v2394_v21  ;;  %vm2453_vm15 = vweird.f32 %v2394_v21 }
 0xebd   :  { %v2377_v46 = vpop.xlane.xlu2 %2376 }
 0xebe   :  { %v2387_v39 = vmul.f32 %v2377_v46, %v6296_v41 }
 0xec0   :  { %v4922_v45 = vpop.eup %4921  ;;  %v2395_v23 = vadd.f32 1e-05, %v2387_v39  ;;  %v2703_v59 = vpop.xlane.xlu1 %2702 }
 0xec1   :  { %v2448_v35 = vmul.f32 %v4922_v45, %v2394_v21  ;;  %v2721_v17 = vmul.f32 %v2703_v59, %v6296_v41  ;;  %vm2454_vm14 = vweird.f32 %v4922_v45 }
 0xec2   :  { %4923 = vrsqrt.f32 %v2395_v23  ;;  %vm2455_vm2 = vmor %vm2453_vm15, %vm2454_vm14  ;;  %vm2463_vm10 = vweird.f32 %v2395_v23 }
 0xec3   :  { %v2449_v32 = vmul.f32 %v4922_v45, %v2448_v35  ;;  %v2729_v26 = vadd.f32 1e-05, %v2721_v17 }
 0xec5   :  { %v2450_v27 = vmul.f32 0.5, %v2449_v32  ;;  %4925 = vrsqrt.f32 %v2729_v26  ;;  %vm2761_vm7 = vweird.f32 %v2729_v26 }
 0xec7   :  { %v2451_v56 = vsub.f32 1.5, %v2450_v27 }
 0xec8   :  { %v4924_v9 = vpop.eup %4923  ;;  %v2706_v10 = vpop.xlane.xlu0 %2705 }
 0xec9   :  { %v2380_v48 = vpop.xlane.xlu1 %2379  ;;  %v2452_v43 = vmul.f32 %v4922_v45, %v2451_v56  ;;  %v2458_v20 = vmul.f32 %v4924_v9, %v2395_v23  ;;  %v2722_v44 = vmul.f32 %v2706_v10, %v6296_v41  ;;  %vm2464_vm5 = vweird.f32 %v4924_v9 }
 0xeca   :  { %v2388_v3 = vmul.f32 %v2380_v48, %v6296_v41  ;;  %vm2465_vm15 = vmor %vm2463_vm10, %vm2464_vm5 }
 0xecb   :  { %v4926_v50 = vpop.eup %4925  ;;  %v2456_v16 = vsel %vm2455_vm2, %v4922_v45, %v2452_v43  ;;  %v2459_v0 = vmul.f32 %v4924_v9, %v2458_v20  ;;  %v2730_v54 = vadd.f32 1e-05, %v2722_v44 }
 0xecc   :  { %v2482_v29 = vmul.f32 %v2456_v16, %v6456_v4  ;;  %v2756_v22 = vmul.f32 %v4926_v50, %v2729_v26  ;;  %v2396_v42 = vadd.f32 1e-05, %v2388_v3  ;;  %vm2762_vm4 = vweird.f32 %v4926_v50 }
 0xecd   :  { %v2460_v30 = vmul.f32 0.5, %v2459_v0  ;;  %4927 = vrsqrt.f32 %v2730_v54  ;;  %vm2763_vm14 = vmor %vm2761_vm7, %vm2762_vm4  ;;  %vm2771_vm0 = vweird.f32 %v2730_v54 }
 0xece   :  { %v2757_v31 = vmul.f32 %v4926_v50, %v2756_v22  ;;  %4929 = vrsqrt.f32 %v2396_v42  ;;  %v2491_v58 = vmul.f32 %v6332_v47, %v2482_v29  ;;  %vm2473_vm9 = vweird.f32 %v2396_v42 }
 0xecf   :  { %v2461_v13 = vsub.f32 1.5, %v2460_v30 }
 0xed0   :  { %v2758_v53 = vmul.f32 0.5, %v2757_v31  ;;  %v6526_v6 = vadd.f32 %v6336_v51, %v2491_v58 }
 0xed1   :  { %v2462_v37 = vmul.f32 %v4924_v9, %v2461_v13 }
 0xed2   :  { %v2759_v5 = vsub.f32 1.5, %v2758_v53  ;;  %v2505_v4 = vpack.c.bf16 %v6526_v6, %v6523_v19 }
 0xed3   :  { %v4928_v61 = vpop.eup %4927  ;;  %v2466_v14 = vsel %vm2465_vm15, %v4924_v9, %v2462_v37 }
 0xed4   :  { %v4930_v40 = vpop.eup %4929  ;;  %v2760_v34 = vmul.f32 %v4926_v50, %v2759_v5  ;;  %v2766_v25 = vmul.f32 %v4928_v61, %v2730_v54  ;;  %4475 = vmatmul.msk.bf16.gmra.mxu2 %vm376_vm11, %v2505_v4  ;;  %vm2772_vm2 = vweird.f32 %v4928_v61  ;;  %v2483_v59 = vmul.f32 %v2466_v14, %v6462_v28 }
 0xed5   :  { %v2468_v12 = vmul.f32 %v4930_v40, %v2396_v42  ;;  %vm2474_vm3 = vweird.f32 %v4930_v40  ;;  %vm2773_vm1 = vmor %vm2771_vm0, %vm2772_vm2  ;;  %vm7231_vm0 = vcmask 251904  }
 0xed6   :  { %v2767_v33 = vmul.f32 %v4928_v61, %v2766_v25  ;;  %v2764_v15 = vsel %vm2763_vm14, %v4926_v50, %v2760_v34  ;;  %vm2475_vm4 = vmor %vm2473_vm9, %vm2474_vm3 }
 0xed7   :  { %v2469_v18 = vmul.f32 %v4930_v40, %v2468_v12  ;;  %v2817_v39 = vmul.f32 %v2764_v15, %v6467_v8  ;;  %v2492_v8 = vmul.f32 %v6332_v47, %v2483_v59 }
 0xed8   :  { %v2768_v21 = vmul.f32 0.5, %v2767_v33 }
 0xed9   :  { %v2470_v62 = vmul.f32 0.5, %v2469_v18  ;;  %v2826_v26 = vmul.f32 %v6494_v60, %v2817_v39  ;;  %v2501_v63 = vadd.f32 %v6336_v51, %v2492_v8 }
 0xeda   :  { %v2769_v46 = vsub.f32 1.5, %v2768_v21 }
 0xedb   :  { %v2471_v45 = vsub.f32 1.5, %v2470_v62  ;;  %v6540_v56 = vadd.f32 %v6498_v11, %v2826_v26 }
 0xedc   :  { %v2770_v7 = vmul.f32 %v4928_v61, %v2769_v46 }
 0xedd   :  { %v2472_v35 = vmul.f32 %v4930_v40, %v2471_v45 }
 0xede   :  { %v2774_v23 = vsel %vm2773_vm1, %v4928_v61, %v2770_v7 }
 0xedf   :  { %v2818_v17 = vmul.f32 %v2774_v23, %v6479_v2  ;;  %v2476_v32 = vsel %vm2475_vm4, %v4930_v40, %v2472_v35 }
 0xee0   :  { %v2484_v49 = vmul.f32 %v2476_v32, %v6481_v24 }
 0xee1   :  { %v2827_v27 = vmul.f32 %v6494_v60, %v2818_v17 }
 0xee2   :  { %v2493_v28 = vmul.f32 %v6332_v47, %v2484_v49  ;;  %v6554_v47 = vld [vmem:[%s7216_s11 + $0x8] sm:$0xff] }
 0xee3   :  { %v6543_v9 = vadd.f32 %v6498_v11, %v2827_v27  ;;  %v6557_v43 = vperm.slane %v6554_v47, 0 }
 0xee4   :  { %v2502_v2 = vadd.f32 %v6336_v51, %v2493_v28 }
 0xee5   :  { %v2868_v10 = vpack.c.bf16 %v6543_v9, %v6540_v56 }
 0xee6   :  { %v2506_v24 = vpack.c.bf16 %v2502_v2, %v2501_v63 }
 0xee7   :  { %4527 = vmatmul.msk.bf16.gmra.mxu1 %vm376_vm11, %v2868_v10 }
 0xee8   :  { %4476 = vmatmul.msk.bf16.gmra.mxu2 %vm376_vm11, %v2506_v24 }
 0xef1   :  { %v2905_v48 = vpop.f32.mrf.mxu1 }
 0xef2   :  { %v2906_v51 = vadd.f32 %v2905_v48, %v6557_v43 }
 0xef9   :  { %v2907_v20 = vpop.f32.mrf.mxu1 }
 0xefa   :  { %v2908_v44 = vadd.f32 %v2907_v20, %v6557_v43 }
 0xefc   :  { %v6561_v3 = vpack.c.bf16 %v2908_v44, %v2906_v51 }
 0xefe   :  { %3049 = vrot.lane.b32.xlu1 %v6561_v3, %s5075_s19  ;;  %3053 = vrot.lane.b32.xlu2 %v6561_v3, %s5076_s20 }
 0xf57   :  { %v2551_v50 = vpop.f32.mrf.mxu2 }
 0xf58   :  { %v2552_v16 = vadd.f32 %v2551_v50, %v6393_v36 }
 0xf5a   :  { %v2565_v29 = vmax.f32 %v2552_v16, 0.0 }
 0xf5f   :  { %v2553_v0 = vpop.f32.mrf.mxu2 }
 0xf60   :  { %v2554_v54 = vadd.f32 %v2553_v0, %v6393_v36 }
 0xf62   :  { %v2566_v22 = vmax.f32 %v2554_v54, 0.0 }
 0xf64   :  { %v2571_v42 = vpack.c.bf16 %v2566_v22, %v2565_v29  ;;  %v2910_v1 = vpop.f32.mrf.mxu1 }
 0xf65   :  { %v2911_v58 = vadd.f32 %v2910_v1, %v6557_v43 }
 0xf66   :  { %4495 = vmatmul.msk.bf16.gmra.mxu0 %vm385_vm12, %v2571_v42 }
 0xf6b   :  { %v2556_v30 = vpop.f32.mrf.mxu2 }
 0xf6c   :  { %v2912_v31 = vpop.f32.mrf.mxu1  ;;  %v2557_v5 = vadd.f32 %v2556_v30, %v6393_v36 }
 0xf6d   :  { %v6572_v53 = vadd.f32 %v2912_v31, %v6557_v43 }
 0xf6e   :  { %v2567_v40 = vmax.f32 %v2557_v5, 0.0 }
 0xf6f   :  { %v6575_v13 = vpack.c.bf16 %v6572_v53, %v2911_v58 }
 0xf70   :  { %v3050_v59 = vpop.permute.xlu1 %3049 }
 0xf71   :  { %3055 = vrot.lane.b32.xlu0 %v6575_v13, %s5076_s20 }
 0xf73   :  { %v2558_v4 = vpop.f32.mrf.mxu2 }
 0xf74   :  { %v2559_v61 = vadd.f32 %v2558_v4, %v6393_v36  ;;  %v3054_v36 = vpop.permute.xlu2 %3053 }
 0xf75   :  { %v3064_v62 = vsel %vm1635_vm8, %v3054_v36, 0 }
 0xf76   :  { %v2568_v34 = vmax.f32 %v2559_v61, 0.0 }
 0xf78   :  { %v2572_v25 = vpack.c.bf16 %v2568_v34, %v2567_v40 }
 0xf79   :  { %3051 = vrot.lane.b32.xlu0 %v6575_v13, %s5075_s19 }
 0xf7a   :  { %4496 = vmatmul.msk.bf16.gmra.mxu0 %vm385_vm12, %v2572_v25 }
 0xfe3   :  { %v2629_v37 = vpop.f32.mrf.mxu0  ;;  %v3056_v12 = vpop.permute.xlu0 %3055 }
 0xfe4   :  { %v2630_v33 = vadd.f32 %v2629_v37, %v6403_v38  ;;  %v3067_v18 = vsel %vm1635_vm8, %v3056_v12, 0 }
 0xfe5   :  { %3075 = vmatpush.bf16.xpose.msrb.mxu2 %v3067_v18 }
 0xfe6   :  { %v2643_v15 = vadd.f32 %v2630_v33, %v6523_v19 }
 0xfe8   :  { %v2659_v21 = vsel %vm376_vm11, %v2643_v15, 0.0 }
 0xfe9   :  { %2660 = vadd.xlane.f32.xlu2 %v2659_v21 }
 0xfeb   :  { %v2631_v14 = vpop.f32.mrf.mxu0  ;;  %v3052_v49 = vpop.permute.xlu0 %3051 }
 0xfec   :  { %v2632_v46 = vadd.f32 %v2631_v14, %v6403_v38 }
 0xfed   :  { %3076 = vmatpush.bf16.xpose.msrb.mxu2 %v3064_v62 }
 0xfee   :  { %v2644_v39 = vadd.f32 %v2632_v46, %v6526_v6 }
 0xff0   :  { %v2662_v45 = vsel %vm376_vm11, %v2644_v39, 0.0 }
 0xff1   :  { %2663 = vadd.xlane.f32.xlu0 %v2662_v45 }
 0xff4   :  { %4534 = vmatmul.msk.bf16.vlgmr.msrb.gmra.mxu2 %vm1635_vm8, %v3050_v59 }
 0xff7   :  { %v2634_v7 = vpop.f32.mrf.mxu0 }
 0xff8   :  { %v2635_v19 = vadd.f32 %v2634_v7, %v6403_v38 }
 0xffa   :  { %v2645_v35 = vadd.f32 %v2635_v19, %v2501_v63 }
 0xffc   :  { %v2665_v23 = vsel %vm376_vm11, %v2645_v35, 0.0 }
 0xffd   :  { %2666 = vadd.xlane.f32.xlu1 %v2665_v23 }
 0xfff   :  { %v2636_v17 = vpop.f32.mrf.mxu0 }
0x1000   :  { %v2637_v32 = vadd.f32 %v2636_v17, %v6403_v38 }
0x1002   :  { %v2646_v26 = vadd.f32 %v2637_v32, %v2502_v2 }
0x1004   :  { %v2668_v6 = vsel %vm2322_vm6, %v2646_v26, 0.0  ;;  %4535 = vmatmul.msk.bf16.gmra.mxu2 %vm1635_vm8, %v3052_v49 }
0x1005   :  { %2669 = vadd.xlane.f32.xlu2 %v2668_v6 }
0x105c   :  { %v2661_v8 = vpop.xlane.xlu2 %2660 }
0x105d   :  { %v2675_v27 = vmul.f32 %v2661_v8, %v6296_v41 }
0x105f   :  { %v6599_v28 = vsub.f32 %v2643_v15, %v2675_v27 }
0x1061   :  { %v2691_v63 = vmul.f32 %v6599_v28, %v6599_v28 }
0x1063   :  { %v2707_v10 = vsel %vm376_vm11, %v2691_v63, 0.0 }
0x1064   :  { %2708 = vadd.xlane.f32.xlu0 %v2707_v10  ;;  %v2664_v24 = vpop.xlane.xlu0 %2663 }
0x1065   :  { %v2676_v38 = vmul.f32 %v2664_v24, %v6296_v41 }
0x1067   :  { %v6605_v2 = vsub.f32 %v2644_v39, %v2676_v38 }
0x1069   :  { %v2692_v48 = vmul.f32 %v6605_v2, %v6605_v2 }
0x106b   :  { %v2710_v20 = vsel %vm376_vm11, %v2692_v48, 0.0 }
0x106c   :  { %2711 = vadd.xlane.f32.xlu1 %v2710_v20 }
0x1070   :  { %v2667_v51 = vpop.xlane.xlu1 %2666 }
0x1071   :  { %v2677_v44 = vmul.f32 %v2667_v51, %v6296_v41 }
0x1073   :  { %v6611_v50 = vsub.f32 %v2645_v35, %v2677_v44 }
0x1075   :  { %v2693_v16 = vmul.f32 %v6611_v50, %v6611_v50 }
0x1077   :  { %v3078_v0 = vpop.f32.mrf.mxu2  ;;  %v2713_v54 = vsel %vm376_vm11, %v2693_v16, 0.0 }
0x1078   :  { %v2670_v29 = vpop.xlane.xlu2 %2669  ;;  %2714 = vadd.xlane.f32.xlu1 %v2713_v54  ;;  %2929 = vrot.lane.b32.xlu0 %v6561_v3, %s5077_s21  ;;  %v6624_v58 = vmul.f32 0.25, %v3078_v0 }
0x1079   :  { %v2678_v22 = vmul.f32 %v2670_v29, %v6296_v41 }
0x107a   :  { %v3092_v5 = vsel %vm1671_vm13, %v6624_v58, -inf }
0x107b   :  { %v6619_v42 = vsub.f32 %v2646_v26, %v2678_v22 }
0x107d   :  { %v2694_v1 = vmul.f32 %v6619_v42, %v6619_v42 }
0x107f   :  { %v2716_v30 = vsel %vm2322_vm6, %v2694_v1, 0.0  ;;  %v3080_v31 = vpop.f32.mrf.mxu2 }
0x1080   :  { %2717 = vadd.xlane.f32.xlu2 %v2716_v30  ;;  %v6632_v25 = vmul.f32 0.25, %v3080_v31 }
0x1082   :  { %v3095_v37 = vsel %vm1671_vm13, %v6632_v25, -inf }
0x1087   :  { %v3083_v4 = vpop.f32.mrf.mxu2 }
0x1088   :  { %3093 = vmax.xlane.f32.xlu2 %v3092_v5  ;;  %v6638_v12 = vmul.f32 0.25, %v3083_v4 }
0x108a   :  { %v3098_v33 = vsel %vm1671_vm13, %v6638_v12, -inf }
0x108f   :  { %v3085_v61 = vpop.f32.mrf.mxu2 }
0x1090   :  { %v6628_v40 = vmul.f32 0.25, %v3085_v61 }
0x1092   :  { %v3101_v34 = vsel %vm7231_vm0, %v6628_v40, -inf }
0x1093   :  { %3102 = vmax.xlane.f32.xlu1 %v3101_v34 }
0x10a0   :  { %2931 = vrot.lane.b32.xlu2 %v6575_v13, %s5077_s21 }
0x10a2   :  { %3096 = vmax.xlane.f32.xlu0 %v3095_v37 }
0x10aa   :  { %3099 = vmax.xlane.f32.xlu0 %v3098_v33 }
0x10be   :  { %3138 = vrot.lane.b32.xlu0 %v6561_v3, %s5078_s6 }
0x10d7   :  { %v2709_v18 = vpop.xlane.xlu0 %2708 }
0x10d8   :  { %v2723_v15 = vmul.f32 %v2709_v18, %v6296_v41 }
0x10da   :  { %v2731_v21 = vadd.f32 1e-05, %v2723_v15 }
0x10dc   :  { %4931 = vrsqrt.f32 %v2731_v21  ;;  %vm2781_vm9 = vweird.f32 %v2731_v21 }
0x10df   :  { %v2712_v36 = vpop.xlane.xlu1 %2711 }
0x10e0   :  { %v2724_v14 = vmul.f32 %v2712_v36, %v6296_v41 }
0x10e2   :  { %v4932_v62 = vpop.eup %4931  ;;  %v2732_v46 = vadd.f32 1e-05, %v2724_v14 }
0x10e3   :  { %v2776_v39 = vmul.f32 %v4932_v62, %v2731_v21  ;;  %vm2782_vm3 = vweird.f32 %v4932_v62 }
0x10e4   :  { %4933 = vrsqrt.f32 %v2732_v46  ;;  %vm2783_vm1 = vmor %vm2781_vm9, %vm2782_vm3  ;;  %vm2791_vm7 = vweird.f32 %v2732_v46  ;;  %vm7232_vm9 = vcmask 251904  }
0x10e5   :  { %v2777_v45 = vmul.f32 %v4932_v62, %v2776_v39 }
0x10e7   :  { %v2778_v59 = vmul.f32 0.5, %v2777_v45 }
0x10e9   :  { %v2779_v7 = vsub.f32 1.5, %v2778_v59 }
0x10ea   :  { %v4934_v19 = vpop.eup %4933 }
0x10eb   :  { %v2780_v35 = vmul.f32 %v4932_v62, %v2779_v7  ;;  %v2786_v23 = vmul.f32 %v4934_v19, %v2732_v46  ;;  %v2715_v17 = vpop.xlane.xlu1 %2714  ;;  %vm2792_vm5 = vweird.f32 %v4934_v19  ;;  %v2930_v7 = vpop.permute.xlu0 %2929 }
0x10ec   :  { %v2725_v32 = vmul.f32 %v2715_v17, %v6296_v41  ;;  %vm2793_vm10 = vmor %vm2791_vm7, %vm2792_vm5 }
0x10ed   :  { %v2787_v26 = vmul.f32 %v4934_v19, %v2786_v23  ;;  %v2784_v6 = vsel %vm2783_vm1, %v4932_v62, %v2780_v35  ;;  %vm7233_vm1 = vsmask.f32 4352  ;;  %vm7235_vm7 = vmmov %vm7232_vm9 }
0x10ee   :  { %v2733_v49 = vadd.f32 1e-05, %v2725_v32  ;;  %v2819_v63 = vmul.f32 %v2784_v6, %v6599_v28  ;;  %vm7234_vm5 = vmmov %vm7233_vm1 }
0x10ef   :  { %v2788_v8 = vmul.f32 0.5, %v2787_v26 }
0x10f0   :  { %4935 = vrsqrt.f32 %v2733_v49  ;;  %v2828_v16 = vmul.f32 %v6494_v60, %v2819_v63  ;;  %vm2801_vm15 = vweird.f32 %v2733_v49 }
0x10f1   :  { %v2789_v27 = vsub.f32 1.5, %v2788_v8 }
0x10f2   :  { %v6653_v28 = vadd.f32 %v6498_v11, %v2828_v16 }
0x10f3   :  { %v2790_v10 = vmul.f32 %v4934_v19, %v2789_v27  ;;  %v2718_v24 = vpop.xlane.xlu2 %2717 }
0x10f4   :  { %v2726_v38 = vmul.f32 %v2718_v24, %v6296_v41 }
0x10f5   :  { %v2794_v48 = vsel %vm2793_vm10, %v4934_v19, %v2790_v10  ;;  %vm7236_vm10 = vmmov %vm7235_vm7 }
0x10f6   :  { %v4936_v20 = vpop.eup %4935  ;;  %v2820_v51 = vmul.f32 %v2794_v48, %v6605_v2  ;;  %v2734_v44 = vadd.f32 1e-05, %v2726_v38 }
0x10f7   :  { %v2796_v0 = vmul.f32 %v4936_v20, %v2733_v49  ;;  %vm2802_vm14 = vweird.f32 %v4936_v20 }
0x10f8   :  { %4937 = vrsqrt.f32 %v2734_v44  ;;  %v2829_v54 = vmul.f32 %v6494_v60, %v2820_v51  ;;  %vm2803_vm2 = vmor %vm2801_vm15, %vm2802_vm14  ;;  %vm2811_vm0 = vweird.f32 %v2734_v44 }
0x10f9   :  { %v2797_v29 = vmul.f32 %v4936_v20, %v2796_v0  ;;  %vm7237_vm14 = vmmov %vm7235_vm7 }
0x10fa   :  { %v6656_v22 = vadd.f32 %v6498_v11, %v2829_v54  ;;  %vm7238_vm15 = vmmov %vm7235_vm7 }
0x10fb   :  { %v2798_v1 = vmul.f32 0.5, %v2797_v29  ;;  %v3094_v30 = vpop.xlane.xlu2 %3093 }
0x10fc   :  { %v3104_v31 = vsub.f32 %v6624_v58, %v3094_v30  ;;  %v2869_v2 = vpack.c.bf16 %v6656_v22, %v6653_v28 }
0x10fd   :  { %v2799_v5 = vsub.f32 1.5, %v2798_v1 }
0x10fe   :  { %v4938_v4 = vpop.eup %4937  ;;  %v3108_v61 = vmul.f32 1.442695, %v3104_v31  ;;  %4528 = vmatmul.msk.bf16.gmra.mxu1 %vm376_vm11, %v2869_v2 }
0x10ff   :  { %v2800_v34 = vmul.f32 %v4936_v20, %v2799_v5  ;;  %v2806_v37 = vmul.f32 %v4938_v4, %v2734_v44  ;;  %vm2812_vm4 = vweird.f32 %v4938_v4 }
0x1100   :  { %4939 = vpow2.f32 %v3108_v61  ;;  %vm2813_vm3 = vmor %vm2811_vm0, %vm2812_vm4 }
0x1101   :  { %v2807_v33 = vmul.f32 %v4938_v4, %v2806_v37  ;;  %v2804_v18 = vsel %vm2803_vm2, %v4936_v20, %v2800_v34 }
0x1102   :  { %v2821_v62 = vmul.f32 %v2804_v18, %v6611_v50  ;;  %v2940_v50 = vsel %vm1635_vm8, %v2930_v7, 0 }
0x1103   :  { %v2808_v15 = vmul.f32 0.5, %v2807_v33  ;;  %v2932_v21 = vpop.permute.xlu2 %2931 }
0x1104   :  { %v2943_v58 = vsel %vm1635_vm8, %v2932_v21, 0  ;;  %v2830_v17 = vmul.f32 %v6494_v60, %v2821_v62 }
0x1105   :  { %v2809_v36 = vsub.f32 1.5, %v2808_v15  ;;  %2951 = vmatpush.bf16.xpose.msrb.mxu3 %v2943_v58 }
0x1106   :  { %v6663_v14 = vpop.eup %4939  ;;  %v3103_v46 = vpop.xlane.xlu1 %3102 }
0x1107   :  { %v2810_v39 = vmul.f32 %v4938_v4, %v2809_v36  ;;  %v3107_v45 = vsub.f32 %v6628_v40, %v3103_v46  ;;  %v3116_v59 = vsel %vm1671_vm13, %v6663_v14, 0.0  ;;  %v6674_v40 = vadd.f32 %v6498_v11, %v2830_v17 }
0x1108   :  { %3117 = vadd.xlane.f32.xlu1 %v3116_v59 }
0x1109   :  { %v2814_v19 = vsel %vm2813_vm3, %v4938_v4, %v2810_v39  ;;  %v3114_v35 = vmul.f32 1.442695, %v3107_v45 }
0x110a   :  { %v2822_v23 = vmul.f32 %v2814_v19, %v6619_v42 }
0x110b   :  { %4941 = vpow2.f32 %v3114_v35 }
0x110c   :  { %v2831_v32 = vmul.f32 %v6494_v60, %v2822_v23 }
0x110d   :  { %2952 = vmatpush.bf16.xpose.msrb.mxu3 %v2940_v50 }
0x110e   :  { %v6677_v26 = vadd.f32 %v6498_v11, %v2831_v32 }
0x1110   :  { %v2870_v49 = vpack.c.bf16 %v6677_v26, %v6674_v40 }
0x1111   :  { %v6681_v6 = vpop.eup %4941 }
0x1112   :  { %4529 = vmatmul.msk.bf16.gmra.mxu1 %vm376_vm11, %v2870_v49  ;;  %v3125_v42 = vsel %vm7232_vm9, %v6681_v6, 0.0  ;;  %vm7239_vm9 = vcmask 1046528  }
0x1113   :  { %3126 = vadd.xlane.f32.xlu0 %v3125_v42 }
0x1114   :  { %4530 = vmatmul.msk.bf16.vlgmr.msrb.gmra.mxu3 %vm1635_vm8, %v6561_v3 }
0x1115   :  { %v3097_v60 = vpop.xlane.xlu0 %3096 }
0x1116   :  { %v3105_v8 = vsub.f32 %v6632_v25, %v3097_v60 }
0x1118   :  { %v3110_v27 = vmul.f32 1.442695, %v3105_v8 }
0x111a   :  { %4943 = vpow2.f32 %v3110_v27 }
0x111d   :  { %v3100_v11 = vpop.xlane.xlu0 %3099 }
0x111e   :  { %v3106_v63 = vsub.f32 %v6638_v12, %v3100_v11 }
0x1120   :  { %v4944_v10 = vpop.eup %4943  ;;  %v3112_v24 = vmul.f32 1.442695, %v3106_v63 }
0x1121   :  { %v3119_v38 = vsel %vm1671_vm13, %v4944_v10, 0.0 }
0x1122   :  { %4945 = vpow2.f32 %v3112_v24  ;;  %3120 = vadd.xlane.f32.xlu1 %v3119_v38 }
0x1124   :  { %4531 = vmatmul.msk.bf16.gmra.mxu3 %vm1635_vm8, %v6575_v13 }
0x1128   :  { %v6693_v48 = vpop.eup %4945 }
0x1129   :  { %v3122_v20 = vsel %vm1671_vm13, %v6693_v48, 0.0 }
0x112a   :  { %3123 = vadd.xlane.f32.xlu2 %v3122_v20 }
0x1130   :  { %v3139_v8 = vpop.permute.xlu0 %3138 }
0x113b   :  { %3140 = vrot.lane.b32.xlu1 %v6575_v13, %s5078_s6 }
0x117b   :  { %v2915_v25 = vpop.f32.mrf.mxu1  ;;  %v3118_v45 = vpop.xlane.xlu1 %3117 }
0x117c   :  { %v2916_v51 = vadd.f32 %v2915_v25, %v6557_v43 }
0x117e   :  { %v3235_v44 = vpack.c.bf16 %v2916_v51, %v6572_v53 }
0x1180   :  { %v3239_v0 = vshrl.u32 %v3235_v44, 16  ;;  %v3242_v54 = vshll.u32 %v3235_v44, 16 }
0x1182   :  { %v3241_v31 = vrot.slane %v3239_v0, 3  ;;  %v3244_v2 = vrot.slane %v3242_v54, 4 }
0x1183   :  { %v2917_v12 = vpop.f32.mrf.mxu1 }
0x1184   :  { %v2918_v29 = vadd.f32 %v2917_v12, %v6557_v43  ;;  %v3245_v18 = vor.u32 %v3244_v2, %v3241_v31 }
0x1186   :  { %v3127_v20 = vpop.xlane.xlu0 %3126 }
0x118f   :  { %v2920_v16 = vpop.f32.mrf.mxu1 }
0x1190   :  { %v2921_v1 = vadd.f32 %v2920_v16, %v6557_v43 }
0x1192   :  { %v3236_v30 = vpack.c.bf16 %v2921_v1, %v2918_v29  ;;  %v4646_v1 = vld [vmem:[%s7213_s8 + $0x18] sm:$0xff] }
0x1193   :  { %3192 = vmatpush.bf16.msrb.mxu1 %v4646_v1 }
0x1194   :  { %v3247_v5 = vshrl.u32 %v3236_v30, 16  ;;  %v3250_v4 = vshll.u32 %v3236_v30, 16 }
0x1195   :  { %v3121_v23 = vpop.xlane.xlu1 %3120 }
0x1196   :  { %v3249_v61 = vrot.slane %v3247_v5, 3  ;;  %v3252_v34 = vrot.slane %v3250_v4, 4  ;;  %4947 = vrcp.f32 %v3121_v23 }
0x1197   :  { %v2922_v37 = vpop.f32.mrf.mxu1  ;;  %v2954_v33 = vpop.f32.mrf.mxu3  ;;  %4949 = vrcp.f32 %v3118_v45 }
0x1198   :  { %v3253_v15 = vor.u32 %v3252_v34, %v3249_v61  ;;  %v2923_v53 = vadd.f32 %v2922_v37, %v6557_v43  ;;  %v2964_v21 = vmul.f32 0.25, %v2954_v33 }
0x119a   :  { %v3237_v58 = vpack.c.bf16 %v2923_v53, %v2923_v53  ;;  %v6705_v36 = vsel %vm7233_vm1, %v3245_v18, %v3253_v15  ;;  %v2968_v62 = vsel %vm1671_vm13, %v2964_v21, -inf }
0x119b   :  { %3264 = vrot.lane.b32.xlu2 %v6705_v36, %s5077_s21  ;;  %2969 = vmax.xlane.f32.xlu0 %v2968_v62 }
0x119c   :  { %v3256_v46 = vshrl.u32 %v3237_v58, 16  ;;  %v3259_v39 = vshll.u32 %v3237_v58, 16  ;;  %v4948_v42 = vpop.eup %4947 }
0x119d   :  { %v4950_v27 = vpop.eup %4949  ;;  %v3133_v11 = vmul.f32 %v4948_v42, %v4944_v10  ;;  %v3124_v38 = vpop.xlane.xlu2 %3123 }
0x119e   :  { %v3258_v59 = vrot.slane %v3256_v46, 3  ;;  %v3261_v7 = vrot.slane %v3259_v39, 4  ;;  %v3132_v63 = vmul.f32 %v4950_v27, %v6663_v14  ;;  %4951 = vrcp.f32 %v3124_v38 }
0x119f   :  { %v2956_v19 = vpop.f32.mrf.mxu3  ;;  %4953 = vrcp.f32 %v3127_v20 }
0x11a0   :  { %v3262_v35 = vor.u32 %v3261_v7, %v3258_v59  ;;  %v3136_v24 = vpack.c.bf16 %v3133_v11, %v3132_v63  ;;  %v2965_v54 = vmul.f32 0.25, %v2956_v19 }
0x11a2   :  { %v6711_v43 = vsel %vm7234_vm5, %v3253_v15, %v3262_v35  ;;  %v2971_v29 = vsel %vm1671_vm13, %v2965_v54, -inf }
0x11a3   :  { %3390 = vrot.lane.b32.xlu1 %v6711_v43, %s5076_s20 }
0x11a4   :  { %v4952_v12 = vpop.eup %4951 }
0x11a5   :  { %v4954_v10 = vpop.eup %4953  ;;  %v3134_v14 = vmul.f32 %v4952_v12, %v6693_v48 }
0x11a6   :  { %v3135_v44 = vmul.f32 %v4954_v10, %v6681_v6 }
0x11a7   :  { %v2959_v17 = vpop.f32.mrf.mxu3 }
0x11a8   :  { %v6715_v50 = vmul.f32 0.25, %v2959_v17  ;;  %v3137_v0 = vpack.c.bf16 %v3135_v44, %v3134_v14 }
0x11aa   :  { %v2974_v32 = vsel %vm1671_vm13, %v6715_v50, -inf }
0x11ab   :  { %3266 = vrot.lane.b32.xlu1 %v6711_v43, %s5077_s21  ;;  %2975 = vmax.xlane.f32.xlu0 %v2974_v32 }
0x11ad   :  { %v3141_v49 = vpop.permute.xlu1 %3140 }
0x11ae   :  { %v3150_v60 = vand.u32 %v3141_v49, %v6151_v57 }
0x11af   :  { %v2961_v25 = vpop.f32.mrf.mxu3 }
0x11b0   :  { %3158 = vmatpush.bf16.msra.mxu0 %v3150_v60  ;;  %v2967_v51 = vmul.f32 0.25, %v2961_v25 }
0x11b2   :  { %v2977_v16 = vsel %vm7235_vm7, %v2967_v51, -inf }
0x11b3   :  { %3388 = vrot.lane.b32.xlu1 %v6705_v36, %s5076_s20 }
0x11b4   :  { %3159 = vmatpush.bf16.msra.mxu0 %v3139_v8 }
0x11b7   :  { %4536 = vmatmul.msk.bf16.vlgmr.msra.gmra.mxu0 %vm1671_vm13, %v3136_v24 }
0x11bb   :  { %3384 = vrot.lane.b32.xlu1 %v6705_v36, %s5075_s19 }
0x11c4   :  { %2978 = vmax.xlane.f32.xlu2 %v2977_v16 }
0x11c7   :  { %4537 = vmatmul.msk.bf16.gmra.mxu0 %vm1671_vm13, %v3137_v0 }
0x11e5   :  { %2972 = vmax.xlane.f32.xlu1 %v2971_v29 }
0x11f5   :  { %v3265_v37 = vpop.permute.xlu2 %3264 }
0x11f6   :  { %v3275_v33 = vsel %vm1635_vm8, %v3265_v37, 0 }
0x11fe   :  { %3014 = vrot.lane.b32.xlu1 %v6561_v3, %s5073_s18 }
0x120e   :  { %v2970_v48 = vpop.xlane.xlu0 %2969 }
0x120f   :  { %v2980_v6 = vsub.f32 %v2964_v21, %v2970_v48 }
0x1211   :  { %v2984_v30 = vmul.f32 1.442695, %v2980_v6 }
0x1213   :  { %4955 = vpow2.f32 %v2984_v30 }
0x1215   :  { %v3391_v31 = vpop.permute.xlu1 %3390 }
0x1216   :  { %v3402_v2 = vsel %vm1635_vm8, %v3391_v31, 0 }
0x1217   :  { %3410 = vmatpush.bf16.xpose.msra.mxu1 %v3402_v2 }
0x1219   :  { %v6739_v5 = vpop.eup %4955 }
0x121a   :  { %v2992_v4 = vsel %vm1671_vm13, %v6739_v5, 0.0 }
0x121b   :  { %2993 = vadd.xlane.f32.xlu0 %v2992_v4 }
0x121d   :  { %v3267_v61 = vpop.permute.xlu1 %3266 }
0x121e   :  { %v3278_v34 = vsel %vm1635_vm8, %v3267_v61, 0  ;;  %v2976_v60 = vpop.xlane.xlu0 %2975 }
0x121f   :  { %3286 = vmatpush.bf16.xpose.msra.mxu2 %v3278_v34  ;;  %v2982_v8 = vsub.f32 %v6715_v50, %v2976_v60 }
0x1221   :  { %v2988_v27 = vmul.f32 1.442695, %v2982_v8 }
0x1225   :  { %v3389_v3 = vpop.permute.xlu1 %3388 }
0x1226   :  { %v3399_v18 = vsel %vm1635_vm8, %v3389_v3, 0 }
0x1227   :  { %3287 = vmatpush.bf16.xpose.msra.mxu2 %v3275_v33  ;;  %3411 = vmatpush.bf16.xpose.msra.mxu1 %v3399_v18 }
0x122d   :  { %v3385_v35 = vpop.permute.xlu1 %3384 }
0x122e   :  { %4550 = vmatmul.msk.bf16.vlgmr.msra.gmra.mxu2 %vm1635_vm8, %v6705_v36 }
0x122f   :  { %3521 = vmatpush.bf16.msrb.mxu2 %v4646_v1 }
0x1234   :  { %v3161_v15 = vpop.f32.mrf.mxu0 }
0x1237   :  { %v2979_v53 = vpop.xlane.xlu2 %2978 }
0x1238   :  { %v2983_v21 = vsub.f32 %v2967_v51, %v2979_v53 }
0x123a   :  { %v2990_v58 = vmul.f32 1.442695, %v2983_v21 }
0x123c   :  { %4957 = vpow2.f32 %v2990_v58  ;;  %v3163_v62 = vpop.f32.mrf.mxu0 }
0x123d   :  { %v3171_v46 = vpack.c.bf16 %v3163_v62, %v3161_v15 }
0x123e   :  { %4551 = vmatmul.msk.bf16.gmra.mxu2 %vm1635_vm8, %v6711_v43 }
0x123f   :  { %4542 = vmatmul.msk.bf16.vlgmr.msrb.gmra.mxu1 %vm1635_vm8, %v3171_v46 }
0x1242   :  { %v6751_v39 = vpop.eup %4957 }
0x1243   :  { %v3001_v45 = vsel %vm7236_vm10, %v6751_v39, 0.0 }
0x1244   :  { %3002 = vadd.xlane.f32.xlu2 %v3001_v45  ;;  %v3166_v59 = vpop.f32.mrf.mxu0 }
0x124c   :  { %v3168_v7 = vpop.f32.mrf.mxu0 }
0x124d   :  { %v3172_v19 = vpack.c.bf16 %v3168_v7, %v3166_v59 }
0x124f   :  { %4543 = vmatmul.msk.bf16.gmra.mxu1 %vm1635_vm8, %v3172_v19 }
0x1258   :  { %v2973_v23 = vpop.xlane.xlu1 %2972 }
0x1259   :  { %v2981_v17 = vsub.f32 %v2965_v54, %v2973_v23 }
0x125b   :  { %v2986_v32 = vmul.f32 1.442695, %v2981_v17 }
0x125d   :  { %4959 = vpow2.f32 %v2986_v32 }
0x125e   :  { %4961 = vpow2.f32 %v2988_v27 }
0x125f   :  { %4554 = vmatmul.msk.bf16.vlgmr.msra.gmra.mxu1 %vm1635_vm8, %v3385_v35 }
0x1263   :  { %v4960_v49 = vpop.eup %4959 }
0x1264   :  { %v2995_v42 = vsel %vm1671_vm13, %v4960_v49, 0.0  ;;  %v4962_v11 = vpop.eup %4961 }
0x1265   :  { %2996 = vadd.xlane.f32.xlu0 %v2995_v42  ;;  %v2998_v63 = vsel %vm1671_vm13, %v4962_v11, 0.0 }
0x1270   :  { %v3015_v34 = vpop.permute.xlu1 %3014 }
0x1279   :  { %3016 = vrot.lane.b32.xlu0 %v6575_v13, %s5073_s18 }
0x128e   :  { %v2994_v13 = vpop.xlane.xlu0 %2993 }
0x12a3   :  { %2999 = vadd.xlane.f32.xlu0 %v2998_v63 }
0x12b1   :  { %v3289_v51 = vpop.f32.mrf.mxu2 }
0x12b2   :  { %v3299_v14 = vmul.f32 0.25, %v3289_v51 }
0x12b4   :  { %v3303_v54 = vsel %vm1671_vm13, %v3299_v14, -inf }
0x12b7   :  { %3473 = vrot.lane.b32.xlu0 %v6705_v36, %s5078_s6  ;;  %v3003_v33 = vpop.xlane.xlu2 %3002 }
0x12b9   :  { %v3291_v1 = vpop.f32.mrf.mxu2 }
0x12ba   :  { %v3300_v48 = vmul.f32 0.25, %v3291_v1 }
0x12bc   :  { %v6764_v24 = vpop.f32.mrf.mxu1  ;;  %v3306_v61 = vsel %vm1671_vm13, %v3300_v48, -inf }
0x12c4   :  { %v6766_v38 = vpop.f32.mrf.mxu1 }
0x12cc   :  { %v6768_v20 = vpop.f32.mrf.mxu1 }
0x12d4   :  { %v6770_v25 = vpop.f32.mrf.mxu1 }
0x12d8   :  { %v2997_v44 = vpop.xlane.xlu0 %2996 }
0x12d9   :  { %4963 = vrcp.f32 %v2997_v44 }
0x12da   :  { %4965 = vrcp.f32 %v2994_v13 }
0x12db   :  { %4967 = vrcp.f32 %v3003_v33 }
0x12dc   :  { %v3413_v12 = vpop.f32.mrf.mxu1 }
0x12dd   :  { %v3423_v50 = vmul.f32 0.25, %v3413_v12 }
0x12df   :  { %v3427_v10 = vsel %vm1671_vm13, %v3423_v50, -inf  ;;  %v4964_v30 = vpop.eup %4963 }
0x12e0   :  { %3428 = vmax.xlane.f32.xlu2 %v3427_v10  ;;  %v4966_v2 = vpop.eup %4965  ;;  %v3009_v4 = vmul.f32 %v4964_v30, %v4960_v49  ;;  %v3294_v10 = vpop.f32.mrf.mxu2 }
0x12e1   :  { %v3008_v37 = vmul.f32 %v4966_v2, %v6739_v5  ;;  %v4968_v15 = vpop.eup %4967 }
0x12e2   :  { %v3011_v21 = vmul.f32 %v4968_v15, %v6751_v39  ;;  %v4645_v39 = vld [vmem:[%s7213_s8 + $0x10] sm:$0xff] }
0x12e3   :  { %v3012_v3 = vpack.c.bf16 %v3009_v4, %v3008_v37 }
0x12e4   :  { %v3415_v16 = vpop.f32.mrf.mxu1 }
0x12e5   :  { %v3424_v0 = vmul.f32 0.25, %v3415_v16  ;;  %v3301_v16 = vmul.f32 0.25, %v3294_v10 }
0x12e7   :  { %v3430_v29 = vsel %vm1671_vm13, %v3424_v0, -inf }
0x12e8   :  { %3304 = vmax.xlane.f32.xlu2 %v3303_v54  ;;  %3431 = vmax.xlane.f32.xlu1 %v3430_v29  ;;  %v3309_v29 = vsel %vm1671_vm13, %v3301_v16, -inf }
0x12eb   :  { %v3017_v6 = vpop.permute.xlu0 %3016 }
0x12ec   :  { %v3026_v31 = vand.u32 %v3017_v6, %v6151_v57 }
0x12ee   :  { %3034 = vmatpush.bf16.msra.mxu3 %v3026_v31 }
0x12f0   :  { %3307 = vmax.xlane.f32.xlu2 %v3306_v61 }
0x12f2   :  { %3035 = vmatpush.bf16.msra.mxu3 %v3015_v34 }
0x12f5   :  { %4532 = vmatmul.msk.bf16.vlgmr.msra.gmra.mxu3 %vm1671_vm13, %v3012_v3 }
0x12f6   :  { %3223 = vmatpush.bf16.msrb.mxu3 %v4645_v39 }
0x1316   :  { %v3000_v18 = vpop.xlane.xlu0 %2999 }
0x1317   :  { %4969 = vrcp.f32 %v3000_v18 }
0x131d   :  { %v4970_v53 = vpop.eup %4969 }
0x131e   :  { %v3010_v58 = vmul.f32 %v4970_v53, %v4962_v11 }
0x1320   :  { %v3013_v62 = vpack.c.bf16 %v3011_v21, %v3010_v58 }
0x1322   :  { %4533 = vmatmul.msk.bf16.gmra.mxu3 %vm1671_vm13, %v3013_v62 }
0x1329   :  { %v3474_v31 = vpop.permute.xlu0 %3473 }
0x1353   :  { %v3429_v46 = vpop.xlane.xlu2 %3428 }
0x1354   :  { %v3439_v45 = vsub.f32 %v3423_v50, %v3429_v46 }
0x1356   :  { %v3443_v59 = vmul.f32 1.442695, %v3439_v45 }
0x1358   :  { %4971 = vpow2.f32 %v3443_v59 }
0x135b   :  { %v3305_v5 = vpop.xlane.xlu2 %3304  ;;  %v3432_v7 = vpop.xlane.xlu1 %3431 }
0x135c   :  { %v3315_v19 = vsub.f32 %v3299_v14, %v3305_v5  ;;  %v3440_v35 = vsub.f32 %v3424_v0, %v3432_v7  ;;  %v3296_v0 = vpop.f32.mrf.mxu2 }
0x135e   :  { %v4972_v23 = vpop.eup %4971  ;;  %v3319_v17 = vmul.f32 1.442695, %v3315_v19  ;;  %v3445_v32 = vmul.f32 1.442695, %v3440_v35 }
0x135f   :  { %v3451_v49 = vsel %vm1671_vm13, %v4972_v23, 0.0 }
0x1360   :  { %4973 = vpow2.f32 %v3319_v17  ;;  %3452 = vadd.xlane.f32.xlu2 %v3451_v49 }
0x1361   :  { %4975 = vpow2.f32 %v3445_v32 }
0x1363   :  { %v3308_v12 = vpop.xlane.xlu2 %3307 }
0x1364   :  { %v3316_v50 = vsub.f32 %v3300_v48, %v3308_v12 }
0x1366   :  { %v4974_v42 = vpop.eup %4973  ;;  %v3321_v51 = vmul.f32 1.442695, %v3316_v50 }
0x1367   :  { %v4976_v60 = vpop.eup %4975  ;;  %v3327_v8 = vsel %vm1671_vm13, %v4974_v42, 0.0 }
0x1368   :  { %3328 = vadd.xlane.f32.xlu1 %v3327_v8  ;;  %v3454_v27 = vsel %vm1671_vm13, %v4976_v60, 0.0  ;;  %4977 = vpow2.f32 %v3321_v51  ;;  %v6807_v8 = vperm.slane %v6554_v47, 1 }
0x1369   :  { %3455 = vadd.xlane.f32.xlu0 %v3454_v27 }
0x136e   :  { %v4978_v14 = vpop.eup %4977 }
0x136f   :  { %v3330_v44 = vsel %vm1671_vm13, %v4978_v14, 0.0 }
0x1378   :  { %v3037_v11 = vpop.f32.mrf.mxu3  ;;  %3475 = vrot.lane.b32.xlu2 %v6711_v43, %s5078_s6 }
0x137d   :  { %3349 = vrot.lane.b32.xlu0 %v6705_v36, %s5073_s18  ;;  %v3302_v36 = vmul.f32 0.25, %v3296_v0 }
0x137f   :  { %v3312_v1 = vsel %vm7237_vm14, %v3302_v36, -inf }
0x1380   :  { %v3039_v63 = vpop.f32.mrf.mxu3 }
0x1381   :  { %v3047_v13 = vpack.c.bf16 %v3039_v63, %v3037_v11  ;;  %3351 = vrot.lane.b32.xlu1 %v6711_v43, %s5073_s18 }
0x1383   :  { %4548 = vmatmul.msk.bf16.vlgmr.msrb.gmra.mxu3 %vm1635_vm8, %v3047_v13 }
0x13a1   :  { %3331 = vadd.xlane.f32.xlu2 %v3330_v44 }
0x13a5   :  { %v3042_v54 = vpop.f32.mrf.mxu3 }
0x13a7   :  { %3310 = vmax.xlane.f32.xlu0 %v3309_v29 }
0x13ab   :  { %3313 = vmax.xlane.f32.xlu1 %v3312_v1 }
0x13ad   :  { %v3044_v6 = vpop.f32.mrf.mxu3 }
0x13ae   :  { %v3048_v30 = vpack.c.bf16 %v3044_v6, %v3042_v54 }
0x13b0   :  { %4549 = vmatmul.msk.bf16.gmra.mxu3 %vm1635_vm8, %v3048_v30 }
0x13bb   :  { %3386 = vrot.lane.b32.xlu0 %v6711_v43, %s5075_s19 }
0x13d3   :  { %v3453_v48 = vpop.xlane.xlu2 %3452 }
0x13d4   :  { %4979 = vrcp.f32 %v3453_v48 }
0x13da   :  { %v4980_v34 = vpop.eup %4979 }
0x13db   :  { %v3476_v2 = vpop.permute.xlu2 %3475  ;;  %v3467_v3 = vmul.f32 %v4980_v34, %v4972_v23  ;;  %v3329_v15 = vpop.xlane.xlu1 %3328 }
0x13dc   :  { %v3485_v4 = vand.u32 %v3476_v2, %v6151_v57  ;;  %v3456_v61 = vpop.xlane.xlu0 %3455 }
0x13dd   :  { %4981 = vrcp.f32 %v3456_v61 }
0x13de   :  { %3493 = vmatpush.bf16.msra.mxu3 %v3485_v4  ;;  %4983 = vrcp.f32 %v3329_v15 }
0x13e2   :  { %3494 = vmatpush.bf16.msra.mxu3 %v3474_v31 }
0x13e3   :  { %v4982_v37 = vpop.eup %4981 }
0x13e4   :  { %v3468_v33 = vmul.f32 %v4982_v37, %v4976_v60  ;;  %v4984_v62 = vpop.eup %4983 }
0x13e5   :  { %v3343_v5 = vmul.f32 %v4984_v62, %v4974_v42 }
0x13e6   :  { %v3471_v18 = vpack.c.bf16 %v3468_v33, %v3467_v3 }
0x13e8   :  { %4556 = vmatmul.msk.bf16.vlgmr.msra.gmra.mxu3 %vm1671_vm13, %v3471_v18 }
0x13ef   :  { %v3350_v21 = vpop.permute.xlu0 %3349 }
0x13f3   :  { %v3352_v53 = vpop.permute.xlu1 %3351 }
0x13f4   :  { %v3361_v43 = vand.u32 %v3352_v53, %v6151_v57 }
0x13f6   :  { %3369 = vmatpush.bf16.msrb.mxu0 %v3361_v43 }
0x13fa   :  { %3370 = vmatpush.bf16.msrb.mxu0 %v3350_v21 }
0x13fe   :  { %3546 = vmatpush.bf16.msra.mxu0 %v4645_v39 }
0x1406   :  { %v3225_v57 = vpop.f32.mrf.mxu3 }
0x1407   :  { %v3226_v60 = vadd.f32 %v3225_v57, %v6764_v24 }
0x1409   :  { %v3576_v63 = vadd.f32 %v6807_v8, %v3226_v60 }
0x140b   :  { %v3584_v50 = vadd.f32 %v3576_v63, %v6507_v55 }
0x140e   :  { %v3227_v27 = vpop.f32.mrf.mxu3 }
0x140f   :  { %v3228_v12 = vadd.f32 %v3227_v27, %v6766_v38 }
0x1411   :  { %v3577_v47 = vadd.f32 %v6807_v8, %v3228_v12 }
0x1413   :  { %v3585_v0 = vadd.f32 %v3577_v47, %v6504_v52 }
0x1414   :  { %v3332_v58 = vpop.xlane.xlu2 %3331 }
0x1415   :  { %4985 = vrcp.f32 %v3332_v58  ;;  %v3595_v38 = vsel %vm376_vm11, %v3585_v0, 0.0 }
0x141a   :  { %v3311_v46 = vpop.xlane.xlu0 %3310 }
0x141b   :  { %v4986_v45 = vpop.eup %4985  ;;  %v3317_v59 = vsub.f32 %v3301_v16, %v3311_v46 }
0x141c   :  { %v3344_v7 = vmul.f32 %v4986_v45, %v4978_v14  ;;  %v3592_v14 = vsel %vm376_vm11, %v3584_v50, 0.0 }
0x141d   :  { %v3323_v19 = vmul.f32 1.442695, %v3317_v59 }
0x141e   :  { %v3347_v35 = vpack.c.bf16 %v3344_v7, %v3343_v5  ;;  %v3314_v23 = vpop.xlane.xlu1 %3313 }
0x141f   :  { %4987 = vpow2.f32 %v3323_v19  ;;  %v3318_v17 = vsub.f32 %v3302_v36, %v3314_v23 }
0x1420   :  { %4552 = vmatmul.msk.bf16.vlgmr.msrb.gmra.mxu0 %vm1671_vm13, %v3347_v35 }
0x1421   :  { %v3325_v32 = vmul.f32 1.442695, %v3318_v17  ;;  %v4648_v17 = vld [vmem:[%s7214_s9 + $0x18] sm:$0xff] }
0x1422   :  { %3821 = vmatpush.bf16.msrb.mxu1 %v4648_v17 }
0x1423   :  { %4989 = vpow2.f32 %v3325_v32  ;;  %v4647_v32 = vld [vmem:[%s7214_s9 + $0x10] sm:$0xff] }
0x1425   :  { %v4988_v49 = vpop.eup %4987 }
0x1426   :  { %v3333_v39 = vsel %vm1671_vm13, %v4988_v49, 0.0  ;;  %3822 = vmatpush.bf16.msrb.mxu1 %v4647_v32 }
0x1427   :  { %3334 = vadd.xlane.f32.xlu2 %v3333_v39 }
0x1429   :  { %v4990_v42 = vpop.eup %4989 }
0x142a   :  { %v3336_v13 = vsel %vm7238_vm15, %v4990_v42, 0.0 }
0x142d   :  { %v3387_v11 = vpop.permute.xlu0 %3386 }
0x142e   :  { %4555 = vmatmul.msk.bf16.gmra.mxu1 %vm1635_vm8, %v3387_v11 }
0x142f   :  { %3337 = vadd.xlane.f32.xlu2 %v3336_v13 }
0x1433   :  { %v3230_v51 = vpop.f32.mrf.mxu3 }
0x1434   :  { %v3231_v24 = vadd.f32 %v3230_v51, %v6768_v20 }
0x1436   :  { %v3578_v10 = vadd.f32 %v6807_v8, %v3231_v24 }
0x1437   :  { %3593 = vadd.xlane.f32.xlu2 %v3592_v14 }
0x1438   :  { %v3586_v44 = vadd.f32 %v3578_v10, %v6540_v56 }
0x143a   :  { %v3598_v16 = vsel %vm376_vm11, %v3586_v44, 0.0 }
0x143b   :  { %3599 = vadd.xlane.f32.xlu1 %v3598_v16  ;;  %v6822_v55 = vpop.f32.mrf.mxu3 }
0x143f   :  { %3596 = vadd.xlane.f32.xlu2 %v3595_v38 }
0x146b   :  { %v3496_v20 = vpop.f32.mrf.mxu3 }
0x1473   :  { %v3498_v54 = vpop.f32.mrf.mxu3 }
0x1474   :  { %v3506_v36 = vpack.c.bf16 %v3498_v54, %v3496_v20 }
0x1476   :  { %4558 = vmatmul.msk.bf16.vlgmr.msrb.gmra.mxu2 %vm1635_vm8, %v3506_v36 }
0x149a   :  { %v3335_v29 = vpop.xlane.xlu2 %3334 }
0x149b   :  { %4991 = vrcp.f32 %v3335_v29  ;;  %v3233_v29 = vadd.f32 %v6822_v55, %v6770_v25 }
0x149d   :  { %v3372_v34 = vpop.f32.mrf.mxu0 }
0x14a1   :  { %v4992_v56 = vpop.eup %4991 }
0x14a2   :  { %v3338_v1 = vpop.xlane.xlu2 %3337  ;;  %v3345_v30 = vmul.f32 %v4992_v56, %v4988_v49 }
0x14a3   :  { %4993 = vrcp.f32 %v3338_v1 }
0x14a5   :  { %v3374_v62 = vpop.f32.mrf.mxu0 }
0x14a6   :  { %v3382_v5 = vpack.c.bf16 %v3374_v62, %v3372_v34 }
0x14a9   :  { %v4994_v6 = vpop.eup %4993 }
0x14aa   :  { %v3346_v48 = vmul.f32 %v4994_v6, %v4990_v42  ;;  %v3594_v52 = vpop.xlane.xlu2 %3593 }
0x14ab   :  { %v3616_v31 = vmul.f32 %v3594_v52, %v6296_v41  ;;  %v3418_v59 = vpop.f32.mrf.mxu1 }
0x14ac   :  { %v3348_v2 = vpack.c.bf16 %v3346_v48, %v3345_v30  ;;  %v3425_v7 = vmul.f32 0.25, %v3418_v59 }
0x14ad   :  { %v6826_v4 = vsub.f32 %v3584_v50, %v3616_v31  ;;  %v6870_v31 = vld [vmem:[%s7216_s11 + $0x8] sm:$0xff] }
0x14ae   :  { %4553 = vmatmul.msk.bf16.gmra.mxu0 %vm1671_vm13, %v3348_v2  ;;  %v3600_v61 = vpop.xlane.xlu1 %3599  ;;  %v3433_v19 = vsel %vm1671_vm13, %v3425_v7, -inf  ;;  %v6873_v2 = vperm.slane %v6870_v31, 2 }
0x14af   :  { %v3618_v37 = vmul.f32 %v3600_v61, %v6296_v41  ;;  %v3632_v3 = vmul.f32 %v6826_v4, %v6826_v4 }
0x14b1   :  { %v6832_v33 = vsub.f32 %v3586_v44, %v3618_v37  ;;  %v3640_v18 = vsel %vm376_vm11, %v3632_v3, 0.0 }
0x14b2   :  { %3641 = vadd.xlane.f32.xlu2 %v3640_v18  ;;  %v3597_v15 = vpop.xlane.xlu2 %3596  ;;  %v6881_v18 = vperm.slane %v6870_v31, 3 }
0x14b3   :  { %v3617_v53 = vmul.f32 %v3597_v15, %v6296_v41  ;;  %v3634_v21 = vmul.f32 %v6832_v33, %v6832_v33 }
0x14b5   :  { %v6836_v43 = vsub.f32 %v3585_v0, %v3617_v53  ;;  %v3646_v45 = vsel %vm376_vm11, %v3634_v21, 0.0 }
0x14b7   :  { %v3633_v58 = vmul.f32 %v6836_v43, %v6836_v43 }
0x14b9   :  { %v3643_v46 = vsel %vm376_vm11, %v3633_v58, 0.0 }
0x14ba   :  { %3644 = vadd.xlane.f32.xlu1 %v3643_v46  ;;  %3647 = vadd.xlane.f32.xlu2 %v3646_v45 }
0x14be   :  { %4560 = vmatmul.msk.bf16.vlgmr.msra.gmra.mxu0 %vm1635_vm8, %v3382_v5 }
0x14c2   :  { %3434 = vmax.xlane.f32.xlu2 %v3433_v19 }
0x14f9   :  { %v3523_v38 = vpop.f32.mrf.mxu2 }
0x1525   :  { %v3642_v35 = vpop.xlane.xlu2 %3641 }
0x1526   :  { %v3664_v23 = vmul.f32 %v3642_v35, %v6296_v41 }
0x1528   :  { %v3672_v57 = vadd.f32 1e-05, %v3664_v23 }
0x152a   :  { %4995 = vrsqrt.f32 %v3672_v57  ;;  %vm3686_vm4 = vweird.f32 %v3672_v57 }
0x152b   :  { %v3377_v49 = vpop.f32.mrf.mxu0 }
0x152d   :  { %v6853_v39 = vpop.xlane.xlu2 %3647  ;;  %v3645_v60 = vpop.xlane.xlu1 %3644 }
0x152e   :  { %v3665_v42 = vmul.f32 %v3645_v60, %v6296_v41  ;;  %v3666_v23 = vmul.f32 %v6853_v39, %v6296_v41 }
0x1530   :  { %v4996_v27 = vpop.eup %4995  ;;  %v3673_v11 = vadd.f32 1e-05, %v3665_v42  ;;  %v3674_v17 = vadd.f32 1e-05, %v3666_v23 }
0x1531   :  { %v3681_v63 = vmul.f32 %v4996_v27, %v3672_v57  ;;  %vm3687_vm2 = vweird.f32 %v4996_v27 }
0x1532   :  { %4997 = vrsqrt.f32 %v3673_v11  ;;  %vm3688_vm0 = vmor %vm3686_vm4, %vm3687_vm2  ;;  %vm3696_vm1 = vweird.f32 %v3673_v11  ;;  %vm3706_vm14 = vweird.f32 %v3674_v17 }
0x1533   :  { %v3682_v13 = vmul.f32 %v4996_v27, %v3681_v63  ;;  %v3379_v12 = vpop.f32.mrf.mxu0 }
0x1534   :  { %v3383_v50 = vpack.c.bf16 %v3379_v12, %v3377_v49 }
0x1535   :  { %v3683_v51 = vmul.f32 0.5, %v3682_v13  ;;  %v3435_v24 = vpop.xlane.xlu2 %3434 }
0x1536   :  { %v3441_v47 = vsub.f32 %v3425_v7, %v3435_v24  ;;  %4561 = vmatmul.msk.bf16.gmra.mxu0 %vm1635_vm8, %v3383_v50  ;;  %v3420_v7 = vpop.f32.mrf.mxu1 }
0x1537   :  { %v3684_v10 = vsub.f32 1.5, %v3683_v51  ;;  %v3426_v19 = vmul.f32 0.25, %v3420_v7 }
0x1538   :  { %v3447_v14 = vmul.f32 1.442695, %v3441_v47  ;;  %v4998_v44 = vpop.eup %4997 }
0x1539   :  { %v3685_v16 = vmul.f32 %v4996_v27, %v3684_v10  ;;  %v3691_v0 = vmul.f32 %v4998_v44, %v3673_v11  ;;  %vm3697_vm3 = vweird.f32 %v4998_v44  ;;  %v3436_v35 = vsel %vm7235_vm7, %v3426_v19, -inf }
0x153a   :  { %4999 = vpow2.f32 %v3447_v14  ;;  %vm3698_vm5 = vmor %vm3696_vm1, %vm3697_vm3 }
0x153b   :  { %v3548_v20 = vpop.f32.mrf.mxu0  ;;  %v3692_v54 = vmul.f32 %v4998_v44, %v3691_v0  ;;  %v3689_v1 = vsel %vm3688_vm0, %v4996_v27, %v3685_v16  ;;  %5001 = vrsqrt.f32 %v3674_v17  ;;  %vm7240_vm0 = vmmov %vm7235_vm7 }
0x153c   :  { %v6857_v36 = vadd.f32 %v3548_v20, %v3523_v38  ;;  %v3760_v25 = vmul.f32 %v3689_v1, %v6826_v4 }
0x153d   :  { %v3693_v56 = vmul.f32 0.5, %v3692_v54 }
0x153e   :  { %v3562_v6 = vrot.slane %v6857_v36, 1  ;;  %v3769_v15 = vmul.f32 %v6873_v2, %v3760_v25 }
0x153f   :  { %v3694_v48 = vsub.f32 1.5, %v3693_v56 }
0x1540   :  { %v6862_v30 = vpop.eup %4999  ;;  %v3574_v52 = vsel %vm7239_vm9, %v3233_v29, %v3562_v6  ;;  %v6888_v58 = vadd.f32 %v6881_v18, %v3769_v15 }
0x1541   :  { %v3457_v55 = vsel %vm1671_vm13, %v6862_v30, 0.0  ;;  %v3579_v61 = vadd.f32 %v6807_v8, %v3574_v52  ;;  %v3695_v34 = vmul.f32 %v4998_v44, %v3694_v48  ;;  %v5002_v57 = vpop.eup %5001 }
0x1542   :  { %3458 = vadd.xlane.f32.xlu2 %v3457_v55  ;;  %v3701_v32 = vmul.f32 %v5002_v57, %v3674_v17  ;;  %vm3707_vm10 = vweird.f32 %v5002_v57  ;;  %v4651_v55 = vld [vmem:[%s7215_s10 + $0x30] sm:$0xff] }
0x1543   :  { %v3587_v37 = vadd.f32 %v3579_v61, %v6543_v9  ;;  %v3699_v3 = vsel %vm3698_vm5, %v4998_v44, %v3695_v34  ;;  %vm3708_vm15 = vmor %vm3706_vm14, %vm3707_vm10  ;;  %v4650_v61 = vld [vmem:[%s7215_s10 + $0x28] sm:$0xff]  ;;  %v4649_v34 = vld [vmem:[%s7215_s10 + $0x20] sm:$0xff] }
0x1544   :  { %v3761_v53 = vmul.f32 %v3699_v3, %v6836_v43  ;;  %v3702_v49 = vmul.f32 %v5002_v57, %v3701_v32 }
0x1545   :  { %v3601_v4 = vsel %vm376_vm11, %v3587_v37, 0.0 }
0x1546   :  { %3602 = vadd.xlane.f32.xlu0 %v3601_v4  ;;  %v3770_v21 = vmul.f32 %v6873_v2, %v3761_v53  ;;  %v3703_v11 = vmul.f32 0.5, %v3702_v49 }
0x1548   :  { %v6891_v62 = vadd.f32 %v6881_v18, %v3770_v21  ;;  %v3704_v63 = vsub.f32 1.5, %v3703_v11 }
0x154a   :  { %v3786_v9 = vpack.c.bf16 %v6891_v62, %v6888_v58  ;;  %v3705_v24 = vmul.f32 %v5002_v57, %v3704_v63  ;;  %v3525_v63 = vpop.f32.mrf.mxu2 }
0x154c   :  { %4570 = vmatmul.msk.bf16.vlgmr.msrb.gmra.mxu1 %vm376_vm11, %v3786_v9  ;;  %v3709_v10 = vsel %vm3708_vm15, %v5002_v57, %v3705_v24 }
0x154d   :  { %v3762_v0 = vmul.f32 %v3709_v10, %v6832_v33  ;;  %v4652_v33 = vld [vmem:[%s7215_s10 + $0x38] sm:$0xff] }
0x154e   :  { %3897 = vmatpush.bf16.msrb.mxu3 %v4652_v33 }
0x154f   :  { %v3771_v1 = vmul.f32 %v6873_v2, %v3762_v0 }
0x1551   :  { %v6907_v48 = vadd.f32 %v6881_v18, %v3771_v1 }
0x1552   :  { %3898 = vmatpush.bf16.msrb.mxu3 %v4651_v55 }
0x1556   :  { %3899 = vmatpush.bf16.msrb.mxu3 %v4650_v61 }
0x155a   :  { %3900 = vmatpush.bf16.msrb.mxu3 %v4649_v34 }
0x15b9   :  { %v3603_v46 = vpop.xlane.xlu0 %3602 }
0x15ba   :  { %v3619_v45 = vmul.f32 %v3603_v46, %v6296_v41 }
0x15bc   :  { %v3627_v43 = vsub.f32 %v3587_v37, %v3619_v45  ;;  %v3459_v37 = vpop.xlane.xlu2 %3458 }
0x15be   :  { %v3635_v59 = vmul.f32 %v3627_v43, %v3627_v43 }
0x15c0   :  { %v3649_v5 = vsel %vm376_vm11, %v3635_v59, 0.0 }
0x15c1   :  { %3650 = vadd.xlane.f32.xlu1 %v3649_v5 }
0x15c9   :  { %3437 = vmax.xlane.f32.xlu1 %v3436_v35  ;;  %v3824_v15 = vpop.f32.mrf.mxu1 }
0x15d1   :  { %v3826_v45 = vpop.f32.mrf.mxu1 }
0x1634   :  { %v3651_v60 = vpop.xlane.xlu1 %3650 }
0x1635   :  { %v3667_v42 = vmul.f32 %v3651_v60, %v6296_v41 }
0x1637   :  { %v3675_v27 = vadd.f32 1e-05, %v3667_v42 }
0x1639   :  { %5003 = vrsqrt.f32 %v3675_v27  ;;  %vm3716_vm4 = vweird.f32 %v3675_v27 }
0x163c   :  { %v3438_v13 = vpop.xlane.xlu1 %3437 }
0x163d   :  { %v3442_v12 = vsub.f32 %v3426_v19, %v3438_v13 }
0x163f   :  { %v5004_v50 = vpop.eup %5003  ;;  %v3449_v51 = vmul.f32 1.442695, %v3442_v12 }
0x1640   :  { %v3711_v47 = vmul.f32 %v5004_v50, %v3675_v27  ;;  %vm3717_vm2 = vweird.f32 %v5004_v50  ;;  %v3550_v27 = vpop.f32.mrf.mxu0 }
0x1641   :  { %5005 = vpow2.f32 %v3449_v51  ;;  %vm3718_vm3 = vmor %vm3716_vm4, %vm3717_vm2  ;;  %v3551_v12 = vadd.f32 %v3550_v27, %v3525_v63  ;;  %vm4127_vm2 = vcmask 260096   ;;  %vm4130_vm4 = vcmask 261127  }
0x1642   :  { %v3712_v39 = vmul.f32 %v5004_v50, %v3711_v47  ;;  %5007 = vrcp.f32 %v3459_v37 }
0x1643   :  { %v3563_v51 = vrot.slane %v3551_v12, 1 }
0x1644   :  { %v3713_v14 = vmul.f32 0.5, %v3712_v39 }
0x1646   :  { %v3714_v44 = vsub.f32 1.5, %v3713_v14 }
0x1647   :  { %v5006_v16 = vpop.eup %5005 }
0x1648   :  { %v3715_v38 = vmul.f32 %v5004_v50, %v3714_v44  ;;  %v3460_v20 = vsel %vm7240_vm0, %v5006_v16, 0.0  ;;  %v5008_v53 = vpop.eup %5007  ;;  %vm4141_vm0 = vcmask 254976  }
0x1649   :  { %3461 = vadd.xlane.f32.xlu1 %v3460_v20  ;;  %v3469_v21 = vmul.f32 %v5008_v53, %v6862_v30 }
0x164a   :  { %v3719_v54 = vsel %vm3718_vm3, %v5004_v50, %v3715_v38  ;;  %v6937_v50 = vperm.slane %v6870_v31, 5  ;;  %vm7244_vm3 = vcmask 1040384  }
0x164b   :  { %v3763_v29 = vmul.f32 %v3719_v54, %v3627_v43  ;;  %v6927_v43 = vperm.slane %v6870_v31, 4 }
0x164d   :  { %v3772_v56 = vmul.f32 %v6873_v2, %v3763_v29  ;;  %v3827_v59 = vadd.f32 %v3826_v45, %v6927_v43  ;;  %v3825_v5 = vadd.f32 %v3824_v15, %v6927_v43 }
0x164f   :  { %v3781_v52 = vadd.f32 %v6881_v18, %v3772_v56  ;;  %v3845_v19 = vmax.f32 %v3827_v59, 0.0  ;;  %v3844_v35 = vmax.f32 %v3825_v5, 0.0  ;;  %v3553_v56 = vpop.f32.mrf.mxu0 }
0x1651   :  { %v3787_v25 = vpack.c.bf16 %v3781_v52, %v6907_v48  ;;  %v3852_v23 = vpack.c.bf16 %v3845_v19, %v3844_v35 }
0x1653   :  { %4571 = vmatmul.msk.bf16.gmra.mxu1 %vm376_vm11, %v3787_v25 }
0x1657   :  { %v3555_v34 = vpop.f32.mrf.mxu0 }
0x16bc   :  { %v3462_v3 = vpop.xlane.xlu1 %3461 }
0x16bd   :  { %5009 = vrcp.f32 %v3462_v3 }
0x16c3   :  { %v5010_v4 = vpop.eup %5009 }
0x16c4   :  { %v3470_v9 = vmul.f32 %v5010_v4, %v5006_v16 }
0x16c6   :  { %v3472_v46 = vpack.c.bf16 %v3470_v9, %v3469_v21 }
0x16c8   :  { %4557 = vmatmul.msk.bf16.gmra.mxu3 %vm1671_vm13, %v3472_v46  ;;  %vm7241_vm13 = vmmov %vm7239_vm9 }
0x16c9   :  { %v3564_v39 = vsel %vm7241_vm13, %v3562_v6, %v3563_v51 }
0x16ca   :  { %v3580_v44 = vadd.f32 %v6807_v8, %v3564_v39 }
0x16cc   :  { %v3588_v0 = vadd.f32 %v3580_v44, %v6653_v28  ;;  %v6985_v44 = vperm.slane %v6870_v31, 6 }
0x16ce   :  { %v3604_v38 = vsel %vm376_vm11, %v3588_v0, 0.0 }
0x16d0   :  { %v3829_v7 = vpop.f32.mrf.mxu1 }
0x16d1   :  { %v3830_v57 = vadd.f32 %v3829_v7, %v6927_v43 }
0x16d3   :  { %v3846_v49 = vmax.f32 %v3830_v57, 0.0 }
0x16d8   :  { %4590 = vmatmul.msk.bf16.vlgmr.msrb.gmra.mxu3 %vm385_vm12, %v3852_v23  ;;  %v3831_v17 = vpop.f32.mrf.mxu1 }
0x16d9   :  { %v3832_v30 = vadd.f32 %v3831_v17, %v6927_v43 }
0x16db   :  { %v3847_v32 = vmax.f32 %v3832_v30, 0.0 }
0x16dd   :  { %v3853_v60 = vpack.c.bf16 %v3847_v32, %v3846_v49 }
0x16e8   :  { %4591 = vmatmul.msk.bf16.gmra.mxu3 %vm385_vm12, %v3853_v60 }
0x174b   :  { %v3501_v42 = vpop.f32.mrf.mxu3 }
0x1753   :  { %v3503_v11 = vpop.f32.mrf.mxu3 }
0x1754   :  { %v3507_v13 = vpack.c.bf16 %v3503_v11, %v3501_v42 }
0x1756   :  { %4559 = vmatmul.msk.bf16.gmra.mxu2 %vm1635_vm8, %v3507_v13  ;;  %vm7242_vm8 = vmmov %vm7239_vm9 }
0x1757   :  { %vm7243_vm9 = vmmov %vm7242_vm8 }
0x175b   :  { %v3902_v24 = vpop.f32.mrf.mxu3 }
0x175c   :  { %v3903_v47 = vadd.f32 %v3902_v24, %v6937_v50 }
0x175e   :  { %v3922_v10 = vadd.f32 %v3903_v47, %v6888_v58 }
0x1760   :  { %v3930_v14 = vsel %vm376_vm11, %v3922_v10, 0.0 }
0x1761   :  { %3931 = vadd.xlane.f32.xlu1 %v3930_v14 }
0x1763   :  { %v6946_v16 = vpop.f32.mrf.mxu3 }
0x1769   :  { %3605 = vadd.xlane.f32.xlu1 %v3604_v38 }
0x176b   :  { %v6950_v20 = vpop.f32.mrf.mxu3 }
0x1773   :  { %v3909_v54 = vpop.f32.mrf.mxu3 }
0x1774   :  { %v3910_v36 = vadd.f32 %v3909_v54, %v6937_v50 }
0x1776   :  { %v3925_v6 = vadd.f32 %v3910_v36, %v3781_v52  ;;  %v6989_v36 = vperm.slane %v6870_v31, 7 }
0x1778   :  { %v3939_v58 = vsel %vm376_vm11, %v3925_v6, 0.0 }
0x1779   :  { %3940 = vadd.xlane.f32.xlu2 %v3939_v58 }
0x17d4   :  { %v3932_v29 = vpop.xlane.xlu1 %3931 }
0x17d5   :  { %v3954_v1 = vmul.f32 %v3932_v29, %v6296_v41 }
0x17d7   :  { %v3962_v25 = vsub.f32 %v3922_v10, %v3954_v1 }
0x17d9   :  { %v3528_v33 = vpop.f32.mrf.mxu2  ;;  %v3970_v55 = vmul.f32 %v3962_v25, %v3962_v25 }
0x17da   :  { %v3554_v61 = vadd.f32 %v3553_v56, %v3528_v33 }
0x17db   :  { %v3978_v28 = vsel %vm376_vm11, %v3970_v55, 0.0 }
0x17dc   :  { %3979 = vadd.xlane.f32.xlu0 %v3978_v28  ;;  %v3565_v15 = vrot.slane %v3554_v61, 1  ;;  %v3606_v53 = vpop.xlane.xlu1 %3605 }
0x17dd   :  { %v3620_v9 = vmul.f32 %v3606_v53, %v6296_v41 }
0x17df   :  { %v6965_v7 = vsub.f32 %v3588_v0, %v3620_v9 }
0x17e1   :  { %v3530_v37 = vpop.f32.mrf.mxu2  ;;  %v3636_v30 = vmul.f32 %v6965_v7, %v6965_v7 }
0x17e2   :  { %v3556_v3 = vadd.f32 %v3555_v34, %v3530_v37 }
0x17e3   :  { %v3652_v32 = vsel %vm376_vm11, %v3636_v30, 0.0 }
0x17e4   :  { %v3567_v52 = vrot.slane %v3556_v3, 1 }
0x17e6   :  { %v3568_v4 = vsel %vm7242_vm8, %v3565_v15, %v3567_v52  ;;  %v3583_v21 = vadd.f32 %v6807_v8, %v3567_v52 }
0x17e7   :  { %v3582_v46 = vadd.f32 %v6807_v8, %v3568_v4 }
0x17e8   :  { %v3591_v45 = vadd.f32 %v3583_v21, %v6677_v26  ;;  %v3566_v26 = vsel %vm7243_vm9, %v3563_v51, %v3565_v15 }
0x17e9   :  { %v6962_v59 = vadd.f32 %v3582_v46, %v6674_v40  ;;  %v3581_v49 = vadd.f32 %v6807_v8, %v3566_v26 }
0x17ea   :  { %v3613_v5 = vsel %vm2322_vm6, %v3591_v45, 0.0 }
0x17eb   :  { %3614 = vadd.xlane.f32.xlu1 %v3613_v5  ;;  %v3610_v19 = vsel %vm376_vm11, %v6962_v59, 0.0  ;;  %v3589_v60 = vadd.f32 %v3581_v49, %v6656_v22 }
0x17ec   :  { %v3941_v35 = vpop.xlane.xlu2 %3940  ;;  %3611 = vadd.xlane.f32.xlu0 %v3610_v19 }
0x17ed   :  { %v3957_v23 = vmul.f32 %v3941_v35, %v6296_v41  ;;  %v3607_v42 = vsel %vm376_vm11, %v3589_v60, 0.0 }
0x17ef   :  { %v3965_v17 = vsub.f32 %v3925_v6, %v3957_v23 }
0x17f1   :  { %v3973_v40 = vmul.f32 %v3965_v17, %v3965_v17 }
0x17f3   :  { %v3987_v57 = vsel %vm376_vm11, %v3973_v40, 0.0 }
0x17f4   :  { %3988 = vadd.xlane.f32.xlu2 %v3987_v57  ;;  %3653 = vadd.xlane.f32.xlu0 %v3652_v32 }
0x17fc   :  { %3608 = vadd.xlane.f32.xlu2 %v3607_v42 }
0x184f   :  { %v3980_v27 = vpop.xlane.xlu0 %3979 }
0x1850   :  { %v4002_v11 = vmul.f32 %v3980_v27, %v6296_v41 }
0x1852   :  { %v4010_v63 = vadd.f32 1e-05, %v4002_v11 }
0x1854   :  { %5011 = vrsqrt.f32 %v4010_v63  ;;  %vm4024_vm5 = vweird.f32 %v4010_v63 }
0x185a   :  { %v5012_v13 = vpop.eup %5011 }
0x185b   :  { %v4019_v12 = vmul.f32 %v5012_v13, %v4010_v63  ;;  %vm4025_vm1 = vweird.f32 %v5012_v13 }
0x185c   :  { %vm4026_vm7 = vmor %vm4024_vm5, %vm4025_vm1 }
0x185d   :  { %v4020_v51 = vmul.f32 %v5012_v13, %v4019_v12 }
0x185e   :  { %v3615_v24 = vpop.xlane.xlu1 %3614 }
0x185f   :  { %v4021_v47 = vmul.f32 0.5, %v4020_v51  ;;  %v3623_v39 = vmul.f32 %v3615_v24, %v6296_v41  ;;  %v3612_v21 = vpop.xlane.xlu0 %3611 }
0x1861   :  { %v4022_v8 = vsub.f32 1.5, %v4021_v47  ;;  %v6980_v10 = vsub.f32 %v3591_v45, %v3623_v39  ;;  %v3622_v45 = vmul.f32 %v3612_v21, %v6296_v41 }
0x1863   :  { %v4023_v22 = vmul.f32 %v5012_v13, %v4022_v8  ;;  %v3639_v14 = vmul.f32 %v6980_v10, %v6980_v10  ;;  %v7015_v35 = vsub.f32 %v6962_v59, %v3622_v45 }
0x1865   :  { %v4027_v0 = vsel %vm4026_vm7, %v5012_v13, %v4023_v22  ;;  %v3661_v38 = vsel %vm2322_vm6, %v3639_v14, 0.0 }
0x1866   :  { %v4098_v54 = vmul.f32 %v4027_v0, %v3962_v25  ;;  %3662 = vadd.xlane.f32.xlu0 %v3661_v38 }
0x1867   :  { %v3989_v6 = vpop.xlane.xlu2 %3988  ;;  %v3654_v26 = vpop.xlane.xlu0 %3653 }
0x1868   :  { %v4005_v58 = vmul.f32 %v3989_v6, %v6296_v41  ;;  %v4107_v29 = vmul.f32 %v6985_v44, %v4098_v54  ;;  %v3668_v40 = vmul.f32 %v3654_v26, %v6296_v41 }
0x186a   :  { %v4013_v1 = vadd.f32 1e-05, %v4005_v58  ;;  %v4116_v56 = vadd.f32 %v6989_v36, %v4107_v29  ;;  %v3676_v57 = vadd.f32 1e-05, %v3668_v40 }
0x186c   :  { %5013 = vrsqrt.f32 %v4013_v1  ;;  %4124 = vst.msk [vmem:[%s7220_s15] sm:$0xff] %vm376_vm11, %v4116_v56  ;;  %vm4054_vm14 = vweird.f32 %v4013_v1  ;;  %vm3726_vm8 = vweird.f32 %v3676_v57 }
0x186d   :  { %5015 = vrsqrt.f32 %v3676_v57 }
0x186f   :  { %v3609_v33 = vpop.xlane.xlu2 %3608 }
0x1870   :  { %v3621_v25 = vmul.f32 %v3609_v33, %v6296_v41 }
0x1872   :  { %v5014_v55 = vpop.eup %5013  ;;  %v6999_v31 = vsub.f32 %v3589_v60, %v3621_v25 }
0x1873   :  { %v4049_v28 = vmul.f32 %v5014_v55, %v4013_v1  ;;  %vm4055_vm10 = vweird.f32 %v5014_v55  ;;  %v5016_v32 = vpop.eup %5015 }
0x1874   :  { %v3637_v61 = vmul.f32 %v6999_v31, %v6999_v31  ;;  %vm4056_vm15 = vmor %vm4054_vm14, %vm4055_vm10  ;;  %v3721_v49 = vmul.f32 %v5016_v32, %v3676_v57  ;;  %vm3727_vm13 = vweird.f32 %v5016_v32 }
0x1875   :  { %v4050_v34 = vmul.f32 %v5014_v55, %v4049_v28  ;;  %vm3728_vm9 = vmor %vm3726_vm8, %vm3727_vm13 }
0x1876   :  { %v3655_v37 = vsel %vm376_vm11, %v3637_v61, 0.0  ;;  %v3722_v60 = vmul.f32 %v5016_v32, %v3721_v49  ;;  %v3905_v61 = vadd.f32 %v6946_v16, %v6937_v50 }
0x1877   :  { %v4051_v3 = vmul.f32 0.5, %v4050_v34  ;;  %3656 = vadd.xlane.f32.xlu1 %v3655_v37 }
0x1878   :  { %v3723_v63 = vmul.f32 0.5, %v3722_v60 }
0x1879   :  { %v4052_v15 = vsub.f32 1.5, %v4051_v3 }
0x187a   :  { %v3724_v12 = vsub.f32 1.5, %v3723_v63 }
0x187b   :  { %v4053_v53 = vmul.f32 %v5014_v55, %v4052_v15 }
0x187c   :  { %v3725_v47 = vmul.f32 %v5016_v32, %v3724_v12 }
0x187d   :  { %v4057_v52 = vsel %vm4056_vm15, %v5014_v55, %v4053_v53 }
0x187e   :  { %v4101_v4 = vmul.f32 %v4057_v52, %v3965_v17  ;;  %v3638_v17 = vmul.f32 %v7015_v35, %v7015_v35  ;;  %v3729_v22 = vsel %vm3728_vm9, %v5016_v32, %v3725_v47  ;;  %v7074_v47 = vld [vmem:[%s7219_s14] sm:$0x3f] }
0x187f   :  { %v3764_v58 = vmul.f32 %v3729_v22, %v6965_v7  ;;  %v4164_v22 = vperm.slane %v7074_v47, 0 }
0x1880   :  { %v4110_v9 = vmul.f32 %v6985_v44, %v4101_v4  ;;  %v3658_v30 = vsel %vm376_vm11, %v3638_v17, 0.0 }
0x1881   :  { %v3773_v28 = vmul.f32 %v6873_v2, %v3764_v58 }
0x1882   :  { %v4119_v46 = vadd.f32 %v6989_v36, %v4110_v9 }
0x1883   :  { %v7038_v53 = vadd.f32 %v6881_v18, %v3773_v28 }
0x1884   :  { %4128 = vst.msk [vmem:[%s7220_s15 + $0x18] sm:$0x7f] %vm4127_vm2, %v4119_v46  ;;  %v4138_v5 = vrot.slane %v4119_v46, 6 }
0x1885   :  { %4594 = vst.msk [vmem:[%s7220_s15 + $0x19] sm:$0x80] %vm4130_vm4, %v4119_v46 }
0x1886   :  { %v4140_v19 = vsel %vm7244_vm3, %v4116_v56, %v4138_v5 }
0x1887   :  { %v4142_v23 = vsel %vm4141_vm0, %v4140_v19, 0.0 }
0x1888   :  { %4143 = vadd.xlane.f32.xlu2 %v4142_v23 }
0x1890   :  { %3659 = vadd.xlane.f32.xlu2 %v3658_v30 }
0x18d9   :  { %v3663_v59 = vpop.xlane.xlu0 %3662 }
0x18da   :  { %v3671_v13 = vmul.f32 %v3663_v59, %v6296_v41 }
0x18dc   :  { %v3679_v51 = vadd.f32 1e-05, %v3671_v13 }
0x18de   :  { %vm3756_vm14 = vweird.f32 %v3679_v51 }
0x18ea   :  { %v3657_v42 = vpop.xlane.xlu1 %3656 }
0x18eb   :  { %v3669_v27 = vmul.f32 %v3657_v42, %v6296_v41 }
0x18ed   :  { %v3677_v11 = vadd.f32 1e-05, %v3669_v27 }
0x18ef   :  { %5017 = vrsqrt.f32 %v3677_v11  ;;  %vm3736_vm5 = vweird.f32 %v3677_v11 }
0x18f0   :  { %5019 = vrsqrt.f32 %v3679_v51 }
0x18f5   :  { %v5018_v24 = vpop.eup %5017 }
0x18f6   :  { %v3731_v39 = vmul.f32 %v5018_v24, %v3677_v11  ;;  %v5020_v38 = vpop.eup %5019  ;;  %vm3737_vm1 = vweird.f32 %v5018_v24 }
0x18f7   :  { %v3751_v56 = vmul.f32 %v5020_v38, %v3679_v51  ;;  %vm3738_vm7 = vmor %vm3736_vm5, %vm3737_vm1  ;;  %vm3757_vm10 = vweird.f32 %v5020_v38 }
0x18f8   :  { %v3732_v8 = vmul.f32 %v5018_v24, %v3731_v39  ;;  %vm3758_vm15 = vmor %vm3756_vm14, %vm3757_vm10 }
0x18f9   :  { %v3752_v7 = vmul.f32 %v5020_v38, %v3751_v56 }
0x18fa   :  { %v3733_v14 = vmul.f32 0.5, %v3732_v8 }
0x18fb   :  { %v4144_v0 = vpop.xlane.xlu2 %4143  ;;  %v3753_v16 = vmul.f32 0.5, %v3752_v7 }
0x18fc   :  { %v3734_v54 = vsub.f32 1.5, %v3733_v14  ;;  %v4145_v6 = vmul.f32 %v4144_v0, %v6296_v41  ;;  %v4166_v0 = vperm.slane %v7074_v47, 1 }
0x18fd   :  { %v3754_v46 = vsub.f32 1.5, %v3753_v16 }
0x18fe   :  { %v3735_v29 = vmul.f32 %v5018_v24, %v3734_v54  ;;  %v7026_v1 = vsub.f32 %v4140_v19, %v4145_v6 }
0x18ff   :  { %v3755_v5 = vmul.f32 %v5020_v38, %v3754_v46  ;;  %v3908_v46 = vadd.f32 %v6950_v20, %v6937_v50 }
0x1900   :  { %v3739_v33 = vsel %vm3738_vm7, %v5018_v24, %v3735_v29  ;;  %v4147_v25 = vmul.f32 %v7026_v1, %v7026_v1 }
0x1901   :  { %v3765_v55 = vmul.f32 %v3739_v33, %v6999_v31  ;;  %v7044_v31 = vadd.f32 %v3905_v61, %v6891_v62  ;;  %v3759_v23 = vsel %vm3758_vm15, %v5020_v38, %v3755_v5 }
0x1902   :  { %v4148_v34 = vsel %vm4141_vm0, %v4147_v25, 0.0  ;;  %v3767_v26 = vmul.f32 %v3759_v23, %v6980_v10  ;;  %v4654_v10 = vld [vmem:[%s7217_s12 + $0x8] sm:$0xff] }
0x1903   :  { %4149 = vadd.xlane.f32.xlu1 %v4148_v34  ;;  %v3660_v37 = vpop.xlane.xlu2 %3659  ;;  %v3774_v3 = vmul.f32 %v6873_v2, %v3765_v55  ;;  %v3933_v9 = vsel %vm376_vm11, %v7044_v31, 0.0  ;;  %4195 = vmatpush.bf16.msra.mxu2 %v4654_v10 }
0x1904   :  { %v3670_v15 = vmul.f32 %v3660_v37, %v6296_v41  ;;  %v3776_v49 = vmul.f32 %v6873_v2, %v3767_v26 }
0x1905   :  { %v7041_v52 = vadd.f32 %v6881_v18, %v3774_v3 }
0x1906   :  { %v3678_v4 = vadd.f32 1e-05, %v3670_v15  ;;  %v7059_v59 = vadd.f32 %v6881_v18, %v3776_v49 }
0x1907   :  { %v3788_v21 = vpack.c.bf16 %v7041_v52, %v7038_v53 }
0x1908   :  { %5021 = vrsqrt.f32 %v3678_v4  ;;  %vm3746_vm4 = vweird.f32 %v3678_v4 }
0x1909   :  { %4572 = vmatmul.msk.bf16.gmra.mxu1 %vm376_vm11, %v3788_v21 }
0x190b   :  { %3934 = vadd.xlane.f32.xlu1 %v3933_v9 }
0x190e   :  { %v5022_v45 = vpop.eup %5021 }
0x190f   :  { %v3741_v19 = vmul.f32 %v5022_v45, %v3678_v4  ;;  %vm3747_vm2 = vweird.f32 %v5022_v45  ;;  %v4173_v4 = vperm.slane %v7074_v47, 2 }
0x1910   :  { %vm3748_vm3 = vmor %vm3746_vm4, %vm3747_vm2 }
0x1911   :  { %v3742_v62 = vmul.f32 %v5022_v45, %v3741_v19  ;;  %v3924_v19 = vadd.f32 %v3908_v46, %v6907_v48 }
0x1913   :  { %v3743_v17 = vmul.f32 0.5, %v3742_v62  ;;  %v3936_v26 = vsel %vm376_vm11, %v3924_v19, 0.0 }
0x1915   :  { %v3744_v30 = vsub.f32 1.5, %v3743_v17 }
0x1917   :  { %v3745_v40 = vmul.f32 %v5022_v45, %v3744_v30 }
0x1919   :  { %v3749_v57 = vsel %vm3748_vm3, %v5022_v45, %v3745_v40 }
0x191a   :  { %v3766_v32 = vmul.f32 %v3749_v57, %v7015_v35 }
0x191c   :  { %v3775_v60 = vmul.f32 %v6873_v2, %v3766_v32  ;;  %v4653_v2 = vld [vmem:[%s7217_s12] sm:$0xff] }
0x191d   :  { %4196 = vmatpush.bf16.msra.mxu2 %v4653_v2 }
0x191e   :  { %v7056_v42 = vadd.f32 %v6881_v18, %v3775_v60 }
0x1920   :  { %v3789_v27 = vpack.c.bf16 %v7059_v59, %v7056_v42 }
0x1922   :  { %4573 = vmatmul.msk.bf16.gmra.mxu1 %vm376_vm11, %v3789_v27 }
0x1976   :  { %v4150_v35 = vpop.xlane.xlu1 %4149 }
0x1977   :  { %v4151_v11 = vmul.f32 %v4150_v35, %v6296_v41 }
0x1979   :  { %v4152_v18 = vadd.f32 1e-05, %v4151_v11 }
0x197b   :  { %5023 = vrsqrt.f32 %v4152_v18  ;;  %vm4159_vm8 = vweird.f32 %v4152_v18 }
0x197e   :  { %v3935_v5 = vpop.xlane.xlu1 %3934 }
0x197f   :  { %v3955_v23 = vmul.f32 %v3935_v5, %v6296_v41 }
0x1981   :  { %v5024_v63 = vpop.eup %5023  ;;  %v3963_v40 = vsub.f32 %v7044_v31, %v3955_v23 }
0x1982   :  { %v4154_v13 = vmul.f32 %v5024_v63, %v4152_v18  ;;  %vm4160_vm13 = vweird.f32 %v5024_v63 }
0x1983   :  { %vm4161_vm9 = vmor %vm4159_vm8, %vm4160_vm13  ;;  %v3971_v57 = vmul.f32 %v3963_v40, %v3963_v40 }
0x1984   :  { %v4155_v12 = vmul.f32 %v5024_v63, %v4154_v13 }
0x1985   :  { %v3981_v32 = vsel %vm376_vm11, %v3971_v57, 0.0 }
0x1986   :  { %v4156_v51 = vmul.f32 0.5, %v4155_v12  ;;  %v3834_v24 = vpop.f32.mrf.mxu1 }
0x1987   :  { %v3835_v54 = vadd.f32 %v3834_v24, %v6927_v43 }
0x1988   :  { %v4157_v39 = vsub.f32 1.5, %v4156_v51 }
0x1989   :  { %v3848_v33 = vmax.f32 %v3835_v54, 0.0 }
0x198a   :  { %v4158_v8 = vmul.f32 %v5024_v63, %v4157_v39 }
0x198c   :  { %v4162_v14 = vsel %vm4161_vm9, %v5024_v63, %v4158_v8 }
0x198d   :  { %v4163_v38 = vmul.f32 %v4162_v14, %v7026_v1 }
0x198e   :  { %v3836_v6 = vpop.f32.mrf.mxu1 }
0x198f   :  { %v4165_v58 = vmul.f32 %v4164_v22, %v4163_v38  ;;  %v3837_v29 = vadd.f32 %v3836_v6, %v6927_v43 }
0x1991   :  { %v4167_v56 = vadd.f32 %v4166_v0, %v4165_v58  ;;  %v3849_v25 = vmax.f32 %v3837_v29, 0.0 }
0x1993   :  { %v4168_v55 = vpack.c.bf16 %v4167_v56, %v4167_v56  ;;  %v3854_v28 = vpack.c.bf16 %v3849_v25, %v3848_v33 }
0x1995   :  { %4592 = vmatmul.msk.bf16.gmra.mxu3 %vm385_vm12, %v3854_v28  ;;  %4607 = vmatmul.msk.bf16.vlgmr.msra.gmra.mxu2 %vm376_vm11, %v4168_v55 }
0x199f   :  { %v3839_v61 = vpop.f32.mrf.mxu1 }
0x19a0   :  { %v3840_v34 = vadd.f32 %v3839_v61, %v6927_v43 }
0x19a2   :  { %v3850_v37 = vmax.f32 %v3840_v34, 0.0 }
0x19a7   :  { %v3841_v7 = vpop.f32.mrf.mxu1 }
0x19a8   :  { %v3842_v1 = vadd.f32 %v3841_v7, %v6927_v43 }
0x19aa   :  { %v3851_v3 = vmax.f32 %v3842_v1, 0.0 }
0x19ac   :  { %v3855_v15 = vpack.c.bf16 %v3851_v3, %v3850_v37 }
0x19ae   :  { %4593 = vmatmul.msk.bf16.gmra.mxu3 %vm385_vm12, %v3855_v15 }
0x1a18   :  { %v3912_v16 = vpop.f32.mrf.mxu3  ;;  %v4198_v21 = vpop.f32.mrf.mxu2 }
0x1a19   :  { %v4199_v9 = vadd.f32 %v4198_v21, %v4173_v4  ;;  %v3913_v35 = vadd.f32 %v3912_v16, %v6937_v50  ;;  %v4656_v21 = vld [vmem:[%s7218_s13 + $0x8] sm:$0xff] }
0x1a1a   :  { %4255 = vmatpush.bf16.msrb.mxu0 %v4656_v21 }
0x1a1b   :  { %v4202_v45 = vsel %vm4141_vm0, %v4199_v9, 0.0  ;;  %v3926_v13 = vadd.f32 %v3913_v35, %v7038_v53 }
0x1a1c   :  { %4203 = vadd.xlane.f32.xlu2 %v4202_v45 }
0x1a1d   :  { %v3942_v14 = vsel %vm376_vm11, %v3926_v13, 0.0 }
0x1a20   :  { %v3914_v43 = vpop.f32.mrf.mxu3  ;;  %v4200_v62 = vpop.f32.mrf.mxu2 }
0x1a21   :  { %v3915_v17 = vadd.f32 %v3914_v43, %v6937_v50 }
0x1a23   :  { %v3927_v30 = vadd.f32 %v3915_v17, %v7041_v52 }
0x1a24   :  { %3937 = vadd.xlane.f32.xlu2 %v3936_v26 }
0x1a25   :  { %v3945_v20 = vsel %vm376_vm11, %v3927_v30, 0.0 }
0x1a26   :  { %3946 = vadd.xlane.f32.xlu1 %v3945_v20 }
0x1a2e   :  { %3982 = vadd.xlane.f32.xlu1 %v3981_v32 }
0x1a31   :  { %v3917_v48 = vpop.f32.mrf.mxu3 }
0x1a32   :  { %v3918_v49 = vadd.f32 %v3917_v48, %v6937_v50 }
0x1a34   :  { %v3928_v60 = vadd.f32 %v3918_v49, %v7056_v42 }
0x1a36   :  { %v3948_v27 = vsel %vm376_vm11, %v3928_v60, 0.0 }
0x1a37   :  { %3949 = vadd.xlane.f32.xlu2 %v3948_v27 }
0x1a39   :  { %v3919_v24 = vpop.f32.mrf.mxu3 }
0x1a3a   :  { %v3920_v22 = vadd.f32 %v3919_v24, %v6937_v50 }
0x1a3c   :  { %v3929_v6 = vadd.f32 %v3920_v22, %v7059_v59 }
0x1a3e   :  { %v3951_v50 = vsel %vm2322_vm6, %v3929_v6, 0.0 }
0x1a8f   :  { %v4204_v52 = vpop.xlane.xlu2 %4203 }
0x1a90   :  { %v4205_v10 = vmul.f32 %v4204_v52, %v6296_v41 }
0x1a92   :  { %v7102_v2 = vsub.f32 %v4199_v9, %v4205_v10  ;;  %v4655_v9 = vld [vmem:[%s7218_s13] sm:$0xff] }
0x1a93   :  { %4256 = vmatpush.bf16.msrb.mxu0 %v4655_v9 }
0x1a94   :  { %v4207_v31 = vmul.f32 %v7102_v2, %v7102_v2 }
0x1a96   :  { %v4208_v11 = vsel %vm4141_vm0, %v4207_v31, 0.0 }
0x1a97   :  { %4209 = vadd.xlane.f32.xlu0 %v4208_v11  ;;  %v3938_v18 = vpop.xlane.xlu2 %3937 }
0x1a98   :  { %v3956_v63 = vmul.f32 %v3938_v18, %v6296_v41 }
0x1a99   :  { %v3947_v42 = vpop.xlane.xlu1 %3946 }
0x1a9a   :  { %v7110_v12 = vsub.f32 %v3924_v19, %v3956_v63  ;;  %v3959_v51 = vmul.f32 %v3947_v42, %v6296_v41 }
0x1a9c   :  { %v7113_v39 = vsub.f32 %v3927_v30, %v3959_v51  ;;  %v3972_v8 = vmul.f32 %v7110_v12, %v7110_v12 }
0x1a9e   :  { %v3984_v0 = vsel %vm376_vm11, %v3972_v8, 0.0  ;;  %v3975_v38 = vmul.f32 %v7113_v39, %v7113_v39 }
0x1a9f   :  { %3943 = vadd.xlane.f32.xlu0 %v3942_v14  ;;  %3985 = vadd.xlane.f32.xlu2 %v3984_v0  ;;  %v4226_v14 = vperm.slane %v7074_v47, 4 }
0x1aa0   :  { %v3993_v53 = vsel %vm376_vm11, %v3975_v38, 0.0 }
0x1aa1   :  { %3994 = vadd.xlane.f32.xlu1 %v3993_v53  ;;  %v3983_v54 = vpop.xlane.xlu1 %3982 }
0x1aa2   :  { %v4003_v58 = vmul.f32 %v3983_v54, %v6296_v41 }
0x1aa4   :  { %v4011_v29 = vadd.f32 1e-05, %v4003_v58 }
0x1aa6   :  { %5025 = vrsqrt.f32 %v4011_v29  ;;  %vm4034_vm0 = vweird.f32 %v4011_v29 }
0x1aa7   :  { %3952 = vadd.xlane.f32.xlu0 %v3951_v50 }
0x1aaa   :  { %v3950_v56 = vpop.xlane.xlu2 %3949 }
0x1aab   :  { %v3960_v33 = vmul.f32 %v3950_v56, %v6296_v41 }
0x1aac   :  { %v5026_v25 = vpop.eup %5025 }
0x1aad   :  { %v4029_v55 = vmul.f32 %v5026_v25, %v4011_v29  ;;  %v7127_v28 = vsub.f32 %v3928_v60, %v3960_v33  ;;  %vm4035_vm12 = vweird.f32 %v5026_v25 }
0x1aae   :  { %vm4036_vm1 = vmor %vm4034_vm0, %vm4035_vm12 }
0x1aaf   :  { %v4030_v61 = vmul.f32 %v5026_v25, %v4029_v55  ;;  %v3976_v34 = vmul.f32 %v7127_v28, %v7127_v28 }
0x1ab1   :  { %v4031_v7 = vmul.f32 0.5, %v4030_v61  ;;  %v3996_v59 = vsel %vm376_vm11, %v3976_v34, 0.0 }
0x1ab2   :  { %3997 = vadd.xlane.f32.xlu2 %v3996_v59 }
0x1ab3   :  { %v4032_v1 = vsub.f32 1.5, %v4031_v7 }
0x1ab5   :  { %v4033_v37 = vmul.f32 %v5026_v25, %v4032_v1 }
0x1ab7   :  { %v4037_v3 = vsel %vm4036_vm1, %v5026_v25, %v4033_v37 }
0x1ab8   :  { %v4099_v15 = vmul.f32 %v4037_v3, %v3963_v40 }
0x1aba   :  { %v4108_v4 = vmul.f32 %v6985_v44, %v4099_v15 }
0x1abc   :  { %v4117_v16 = vadd.f32 %v6989_v36, %v4108_v4 }
0x1abe   :  { %4125 = vst.msk [vmem:[%s7220_s15 + $0x8] sm:$0xff] %vm376_vm11, %v4117_v16 }
0x1b0a   :  { %v4210_v46 = vpop.xlane.xlu0 %4209 }
0x1b0b   :  { %v4211_v45 = vmul.f32 %v4210_v46, %v6296_v41 }
0x1b0d   :  { %v4212_v5 = vadd.f32 1e-05, %v4211_v45 }
0x1b0f   :  { %5027 = vrsqrt.f32 %v4212_v5  ;;  %vm4219_vm7 = vweird.f32 %v4212_v5 }
0x1b12   :  { %v3986_v19 = vpop.xlane.xlu2 %3985  ;;  %v3944_v43 = vpop.xlane.xlu0 %3943 }
0x1b13   :  { %v4004_v62 = vmul.f32 %v3986_v19, %v6296_v41  ;;  %v3958_v23 = vmul.f32 %v3944_v43, %v6296_v41 }
0x1b14   :  { %v3995_v17 = vpop.xlane.xlu1 %3994 }
0x1b15   :  { %v5028_v30 = vpop.eup %5027  ;;  %v4012_v26 = vadd.f32 1e-05, %v4004_v62  ;;  %v7147_v40 = vsub.f32 %v3926_v13, %v3958_v23  ;;  %v4007_v20 = vmul.f32 %v3995_v17, %v6296_v41  ;;  %v4224_v13 = vperm.slane %v7074_v47, 3 }
0x1b16   :  { %v4214_v57 = vmul.f32 %v5028_v30, %v4212_v5  ;;  %vm4220_vm5 = vweird.f32 %v5028_v30 }
0x1b17   :  { %5029 = vrsqrt.f32 %v4012_v26  ;;  %v4015_v32 = vadd.f32 1e-05, %v4007_v20  ;;  %v3974_v48 = vmul.f32 %v7147_v40, %v7147_v40  ;;  %vm4221_vm10 = vmor %vm4219_vm7, %vm4220_vm5  ;;  %vm4044_vm15 = vweird.f32 %v4012_v26 }
0x1b18   :  { %v4215_v49 = vmul.f32 %v5028_v30, %v4214_v57  ;;  %vm4262_vm7 = vcmask 24576  }
0x1b19   :  { %5031 = vrsqrt.f32 %v4015_v32  ;;  %v3990_v60 = vsel %vm376_vm11, %v3974_v48, 0.0  ;;  %vm4074_vm3 = vweird.f32 %v4015_v32 }
0x1b1a   :  { %v4216_v27 = vmul.f32 0.5, %v4215_v49  ;;  %3991 = vadd.xlane.f32.xlu0 %v3990_v60  ;;  %v3953_v52 = vpop.xlane.xlu0 %3952 }
0x1b1b   :  { %v3961_v10 = vmul.f32 %v3953_v52, %v6296_v41 }
0x1b1c   :  { %v4217_v31 = vsub.f32 1.5, %v4216_v27 }
0x1b1d   :  { %v5030_v35 = vpop.eup %5029  ;;  %v7154_v11 = vsub.f32 %v3929_v6, %v3961_v10 }
0x1b1e   :  { %v4218_v18 = vmul.f32 %v5028_v30, %v4217_v31  ;;  %v4039_v63 = vmul.f32 %v5030_v35, %v4012_v26  ;;  %vm4045_vm14 = vweird.f32 %v5030_v35 }
0x1b1f   :  { %v5032_v42 = vpop.eup %5031  ;;  %v3977_v51 = vmul.f32 %v7154_v11, %v7154_v11  ;;  %vm4046_vm4 = vmor %vm4044_vm15, %vm4045_vm14  ;;  %vm4265_vm14 = vcmask 25601  }
0x1b20   :  { %v4222_v24 = vsel %vm4221_vm10, %v5028_v30, %v4218_v18  ;;  %v4040_v8 = vmul.f32 %v5030_v35, %v4039_v63  ;;  %v4069_v22 = vmul.f32 %v5032_v42, %v4015_v32  ;;  %vm4075_vm2 = vweird.f32 %v5032_v42 }
0x1b21   :  { %v4223_v0 = vmul.f32 %v4222_v24, %v7102_v2  ;;  %v3999_v38 = vsel %vm2322_vm6, %v3977_v51, 0.0  ;;  %vm4076_vm13 = vmor %vm4074_vm3, %vm4075_vm2  ;;  %v4233_v18 = vperm.slane %v7074_v47, 5 }
0x1b22   :  { %v4041_v53 = vmul.f32 0.5, %v4040_v8  ;;  %v4070_v54 = vmul.f32 %v5032_v42, %v4069_v22  ;;  %4000 = vadd.xlane.f32.xlu0 %v3999_v38 }
0x1b23   :  { %v4225_v6 = vmul.f32 %v4224_v13, %v4223_v0 }
0x1b24   :  { %v4042_v58 = vsub.f32 1.5, %v4041_v53  ;;  %v4071_v29 = vmul.f32 0.5, %v4070_v54 }
0x1b25   :  { %v4227_v50 = vadd.f32 %v4226_v14, %v4225_v6  ;;  %v3998_v56 = vpop.xlane.xlu2 %3997 }
0x1b26   :  { %v4043_v33 = vmul.f32 %v5030_v35, %v4042_v58  ;;  %v4072_v25 = vsub.f32 1.5, %v4071_v29  ;;  %v4008_v55 = vmul.f32 %v3998_v56, %v6296_v41 }
0x1b27   :  { %v4228_v61 = vpack.c.bf16 %v4227_v50, %v4227_v50 }
0x1b28   :  { %v4047_v2 = vsel %vm4046_vm4, %v5030_v35, %v4043_v33  ;;  %v4073_v34 = vmul.f32 %v5032_v42, %v4072_v25  ;;  %v4016_v7 = vadd.f32 1e-05, %v4008_v55 }
0x1b29   :  { %v4100_v59 = vmul.f32 %v4047_v2, %v7110_v12  ;;  %4616 = vmatmul.msk.bf16.vlgmr.msrb.gmra.mxu0 %vm376_vm11, %v4228_v61 }
0x1b2a   :  { %v4077_v1 = vsel %vm4076_vm13, %v5032_v42, %v4073_v34  ;;  %5033 = vrsqrt.f32 %v4016_v7  ;;  %vm4084_vm9 = vweird.f32 %v4016_v7 }
0x1b2b   :  { %v4109_v37 = vmul.f32 %v6985_v44, %v4100_v59  ;;  %v4103_v3 = vmul.f32 %v4077_v1, %v7113_v39 }
0x1b2d   :  { %v4118_v15 = vadd.f32 %v6989_v36, %v4109_v37  ;;  %v4112_v4 = vmul.f32 %v6985_v44, %v4103_v3 }
0x1b2f   :  { %4126 = vst.msk [vmem:[%s7220_s15 + $0x10] sm:$0xff] %vm376_vm11, %v4118_v15  ;;  %v4121_v12 = vadd.f32 %v6989_v36, %v4112_v4 }
0x1b30   :  { %v5034_v16 = vpop.eup %5033 }
0x1b31   :  { %4596 = vst.msk [vmem:[%s7220_s15 + $0x29] sm:$0xff] %vm376_vm11, %v4121_v12  ;;  %v4079_v21 = vmul.f32 %v5034_v16, %v4016_v7  ;;  %vm4085_vm8 = vweird.f32 %v5034_v16 }
0x1b32   :  { %vm4086_vm12 = vmor %vm4084_vm9, %vm4085_vm8 }
0x1b33   :  { %v4080_v9 = vmul.f32 %v5034_v16, %v4079_v21 }
0x1b35   :  { %v4081_v39 = vmul.f32 0.5, %v4080_v9 }
0x1b37   :  { %v4082_v46 = vsub.f32 1.5, %v4081_v39 }
0x1b39   :  { %v4083_v45 = vmul.f32 %v5034_v16, %v4082_v46 }
0x1b3b   :  { %v4087_v5 = vsel %vm4086_vm12, %v5034_v16, %v4083_v45 }
0x1b3c   :  { %v4104_v19 = vmul.f32 %v4087_v5, %v7127_v28 }
0x1b3e   :  { %v4113_v43 = vmul.f32 %v6985_v44, %v4104_v19 }
0x1b40   :  { %v4122_v62 = vadd.f32 %v6989_v36, %v4113_v43 }
0x1b42   :  { %4597 = vst.msk [vmem:[%s7220_s15 + $0x31] sm:$0xff] %vm376_vm11, %v4122_v62 }
0x1b8d   :  { %v3992_v23 = vpop.xlane.xlu0 %3991 }
0x1b8e   :  { %v4006_v17 = vmul.f32 %v3992_v23, %v6296_v41 }
0x1b90   :  { %v4014_v30 = vadd.f32 1e-05, %v4006_v17 }
0x1b92   :  { %5035 = vrsqrt.f32 %v4014_v30  ;;  %vm4064_vm1 = vweird.f32 %v4014_v30 }
0x1b95   :  { %v4001_v26 = vpop.xlane.xlu0 %4000 }
0x1b96   :  { %v4009_v20 = vmul.f32 %v4001_v26, %v6296_v41 }
0x1b98   :  { %v5036_v57 = vpop.eup %5035  ;;  %v4017_v32 = vadd.f32 1e-05, %v4009_v20 }
0x1b99   :  { %v4059_v28 = vmul.f32 %v5036_v57, %v4014_v30  ;;  %vm4065_vm0 = vweird.f32 %v5036_v57 }
0x1b9a   :  { %5037 = vrsqrt.f32 %v4017_v32  ;;  %vm4066_vm5 = vmor %vm4064_vm1, %vm4065_vm0  ;;  %vm4094_vm15 = vweird.f32 %v4017_v32 }
0x1b9b   :  { %v4060_v48 = vmul.f32 %v5036_v57, %v4059_v28 }
0x1b9d   :  { %v4061_v49 = vmul.f32 0.5, %v4060_v48 }
0x1b9f   :  { %v4062_v60 = vsub.f32 1.5, %v4061_v49 }
0x1ba0   :  { %v5038_v27 = vpop.eup %5037 }
0x1ba1   :  { %v4063_v52 = vmul.f32 %v5036_v57, %v4062_v60  ;;  %v4089_v10 = vmul.f32 %v5038_v27, %v4017_v32  ;;  %vm4095_vm10 = vweird.f32 %v5038_v27 }
0x1ba2   :  { %vm4096_vm2 = vmor %vm4094_vm15, %vm4095_vm10 }
0x1ba3   :  { %v4067_v31 = vsel %vm4066_vm5, %v5036_v57, %v4063_v52  ;;  %v4090_v35 = vmul.f32 %v5038_v27, %v4089_v10 }
0x1ba4   :  { %v4102_v63 = vmul.f32 %v4067_v31, %v7147_v40 }
0x1ba5   :  { %v4091_v41 = vmul.f32 0.5, %v4090_v35 }
0x1ba6   :  { %v4111_v42 = vmul.f32 %v6985_v44, %v4102_v63  ;;  %v4258_v13 = vpop.f32.mrf.mxu0 }
0x1ba7   :  { %v4092_v51 = vsub.f32 1.5, %v4091_v41  ;;  %v4259_v24 = vadd.f32 %v4258_v13, %v4233_v18 }
0x1ba8   :  { %v4120_v8 = vadd.f32 %v6989_v36, %v4111_v42 }
0x1ba9   :  { %v4093_v47 = vmul.f32 %v5038_v27, %v4092_v51  ;;  %4263 = vst.msk [vmem:[#allocation2] sm:$0x1] %vm4262_vm7, %v4259_v24 }
0x1baa   :  { %4595 = vst.msk [vmem:[%s7220_s15 + $0x21] sm:$0xff] %vm376_vm11, %v4120_v8 }
0x1bab   :  { %v4097_v40 = vsel %vm4096_vm2, %v5038_v27, %v4093_v47  ;;  %4266 = vst.msk [vmem:[#allocation2] sm:$0x2] %vm4265_vm14, %v4259_v24 }
0x1bac   :  { %v4105_v22 = vmul.f32 %v4097_v40, %v7154_v11  ;;  %4281 = dma.vmem_to_hbm [thread:$0]  %s4274_s22, 32, %s4276_s3, [#allocation3], %s5082_s16, %s5082_s16, %s5083_s4  }
0x1bae   :  { %v4114_v14 = vmul.f32 %v6985_v44, %v4105_v22  ;;  %v4260_v0 = vpop.f32.mrf.mxu0 }
0x1bb0   :  { %v4123_v38 = vadd.f32 %v6989_v36, %v4114_v14 }
0x1bb2   :  { %4598 = vst.msk [vmem:[%s7220_s15 + $0x39] sm:$0x3f] %vm2322_vm6, %v4123_v38 }
0x1bb3   :  { %5069 = dma.done.wait [#allocation3], 32  }
0x1bb4   :  { %5070 = vsyncadd [#allocation3], 4294967264 }
0x1bb5   :  { %4288 = vsyncpa [#allocation3], 1 }

</bundles_post_ra>
